<compile_context>
chip_gen: v7x
topology: tpu7x:2x2x1
jax: 0.10.0
libtpu: 0.0.40
codegen_flags: <defaults>
</compile_context>

<pallas_src>
import math
import numpy as np
import jax
import jax.numpy as jnp
from jax.experimental import pallas as pl
from jax.experimental.pallas import tpu as pltpu

# ----------------------------- config (toy shapes; 768 -> 128 hidden) -----------------------------
VOCAB_SIZE = 30
TYPE_VOCAB_SIZE = 2
HIDDEN = 128
NUM_HEADS = 2
HEAD_DIM = HIDDEN // NUM_HEADS
INTERMEDIATE = 256
NUM_LAYERS = 2
SEQ = 8
BATCH = 2
NUM_CLASSES = 3
MAX_REL_POS = 16
LN_EPS = 1e-12
LANE = 128                      # lane-dense padded classifier width
ATT_SCALE = 1.0 / math.sqrt(HEAD_DIM)


# ----------------------------- in-kernel helpers -----------------------------
def _ln(x, g, b):
    mu = jnp.mean(x, axis=-1, keepdims=True)
    xc = x - mu
    var = jnp.mean(xc * xc, axis=-1, keepdims=True)
    return xc * jax.lax.rsqrt(var + LN_EPS) * g + b


def _gelu(y):
    # tanh-approx GELU
    # TODO(synk): exact erf-based GELU if bit-exact parity with torch's erf GELU is required.
    return 0.5 * y * (1.0 + jnp.tanh(0.7978845608028654 * (y + 0.044715 * y * y * y)))


# ----------------------------- the fused kernel -----------------------------
def _nezha_kernel(emb_ref, eg_ref, eb_ref, mask_ref, rel_ref,
                  qkvw_ref, qkvb_ref, aow_ref, aob_ref, alng_ref, alnb_ref,
                  iw_ref, ib_ref, ow_ref, ob_ref, olng_ref, olnb_ref,
                  pw_ref, pb_ref, cw_ref, cb_ref,
                  logits_ref, h_ref, ctx_ref):
    l = pl.program_id(0)

    # ---- layer 0: embeddings LayerNorm into the resident hidden state ----
    @pl.when(l == 0)
    def _():
        h_ref[...] = _ln(emb_ref[...], eg_ref[...], eb_ref[...])

    x = h_ref[...]                                   # (B*S, H)  residual input
    rel = rel_ref[...]                               # (S, S, D) NeZha relative-position table

    # ---- fused QKV projection: (B*S, H) @ (H, 3H) on the MXU ----
    qkv = jnp.dot(x, qkvw_ref[0], preferred_element_type=jnp.float32) + qkvb_ref[0]

    # ---- attention: all (batch, head) handled with static 2-D slices, no transposes ----
    for b in range(BATCH):
        mask_b = mask_ref[pl.ds(b, 1), :]            # (1, S) additive mask
        r0 = b * SEQ
        for hh in range(NUM_HEADS):
            c0 = hh * HEAD_DIM
            q = qkv[r0:r0 + SEQ, c0:c0 + HEAD_DIM] * ATT_SCALE          # scale folded into Q
            k = qkv[r0:r0 + SEQ, HIDDEN + c0:HIDDEN + c0 + HEAD_DIM]
            v = qkv[r0:r0 + SEQ, 2 * HIDDEN + c0:2 * HIDDEN + c0 + HEAD_DIM]

            s = jnp.dot(q, k.T, preferred_element_type=jnp.float32)     # (S, S)
            # relative-key term: sum_d q[i,d] * rel[i,j,d]  (MXU, batched over i)
            s = s + jnp.einsum('iad,ijd->iaj', q[:, None, :], rel,
                               preferred_element_type=jnp.float32)[:, 0, :]
            s = s + mask_b

            m = jnp.max(s, axis=-1, keepdims=True)
            p = jnp.exp(s - m)
            p = p * pl.reciprocal(jnp.sum(p, axis=-1, keepdims=True), approx=True)

            ctx = jnp.dot(p, v, preferred_element_type=jnp.float32)     # (S, D)
            # relative-value term: sum_j p[i,j] * rel[i,j,d]  (MXU, batched over i)
            ctx = ctx + jnp.einsum('iaj,ijd->iad', p[:, None, :], rel,
                                   preferred_element_type=jnp.float32)[:, 0, :]
            ctx_ref[pl.ds(r0, SEQ), pl.ds(c0, HEAD_DIM)] = ctx

    # ---- attention output projection + residual + LN ----
    attn_out = jnp.dot(ctx_ref[...], aow_ref[0], preferred_element_type=jnp.float32) + aob_ref[0]
    h1 = _ln(attn_out + x, alng_ref[0], alnb_ref[0])

    # ---- FFN + residual + LN ----
    inter = _gelu(jnp.dot(h1, iw_ref[0], preferred_element_type=jnp.float32) + ib_ref[0])
    ffn = jnp.dot(inter, ow_ref[0], preferred_element_type=jnp.float32) + ob_ref[0]
    h2 = _ln(ffn + h1, olng_ref[0], olnb_ref[0])
    h_ref[...] = h2

    # ---- last layer: pooler (tanh) + classifier, lane-dense padded output ----
    @pl.when(l == NUM_LAYERS - 1)
    def _():
        pooled = jnp.tanh(jnp.dot(h2, pw_ref[...], preferred_element_type=jnp.float32) + pb_ref[...])
        logits_all = jnp.dot(pooled, cw_ref[...], preferred_element_type=jnp.float32) + cb_ref[...]
        for b in range(BATCH):                       # keep only the [CLS] (first token) rows
            logits_ref[pl.ds(b, 1), :] = logits_all[b * SEQ:b * SEQ + 1, :].astype(logits_ref.dtype)


# ----------------------------- host-side glue -----------------------------
def nezha_relative_positions_encoding(length, depth, max_relative_position):
    """Sinusoidal relative-position table gathered to (length, length, depth) (host constant)."""
    vocab_size = max_relative_position * 2 + 1
    range_vec = np.arange(length)
    distance_mat = range_vec[None, :] - range_vec[:, None]
    distance_mat_clipped = np.clip(distance_mat, -max_relative_position, max_relative_position)
    final_mat = distance_mat_clipped + max_relative_position
    table = np.zeros((vocab_size, depth), dtype=np.float32)
    position = np.arange(vocab_size, dtype=np.float32)[:, None]
    div_term = np.exp(np.arange(0, depth, 2, dtype=np.float32) * -(math.log(10000.0) / depth))
    table[:, 0::2] = np.sin(position * div_term)
    table[:, 1::2] = np.cos(position * div_term)
    return jnp.asarray(table[final_mat])  # (length, length, depth)


def init_params(key):
    def nrm(k, shape):
        return 0.02 * jax.random.normal(k, shape, dtype=jnp.float32)

    keys = jax.random.split(key, 10)
    L, H, I = NUM_LAYERS, HIDDEN, INTERMEDIATE
    cls_w = jnp.zeros((H, LANE), jnp.float32).at[:, :NUM_CLASSES].set(nrm(keys[3], (H, NUM_CLASSES)))
    return dict(
        word_emb=nrm(keys[0], (VOCAB_SIZE, H)),
        type_emb=nrm(keys[1], (TYPE_VOCAB_SIZE, H)),
        emb_ln_g=jnp.ones((1, H), jnp.float32),
        emb_ln_b=jnp.zeros((1, H), jnp.float32),
        pool_w=nrm(keys[2], (H, H)),
        pool_b=jnp.zeros((1, H), jnp.float32),
        cls_w=cls_w,                                    # zero-padded to lane-dense width
        cls_b=jnp.zeros((1, LANE), jnp.float32),
        # per-layer weights stacked on a leading layer axis; Q|K|V fused to (H, 3H)
        qkv_w=nrm(keys[4], (L, H, 3 * H)),
        qkv_b=jnp.zeros((L, 1, 3 * H), jnp.float32),
        ao_w=nrm(keys[5], (L, H, H)),
        ao_b=jnp.zeros((L, 1, H), jnp.float32),
        a_ln_g=jnp.ones((L, 1, H), jnp.float32),
        a_ln_b=jnp.zeros((L, 1, H), jnp.float32),
        i_w=nrm(keys[6], (L, H, I)),
        i_b=jnp.zeros((L, 1, I), jnp.float32),
        o_w=nrm(keys[7], (L, I, H)),
        o_b=jnp.zeros((L, 1, H), jnp.float32),
        o_ln_g=jnp.ones((L, 1, H), jnp.float32),
        o_ln_b=jnp.zeros((L, 1, H), jnp.float32),
    )


def _full_spec(arr):
    nd = arr.ndim
    return pl.BlockSpec(arr.shape, lambda l, nd=nd: (0,) * nd)


def _layer_spec(arr):
    blk = (1,) + arr.shape[1:]
    nd = arr.ndim
    return pl.BlockSpec(blk, lambda l, nd=nd: (l,) + (0,) * (nd - 1))


@jax.jit
def nezha_for_sequence_classification(params, input_ids, attention_mask, token_type_ids):
    B, S = input_ids.shape

    # embeddings (NeZha: word + token_type; relative positions handled inside attention)
    emb = jnp.take(params["word_emb"], input_ids, axis=0) + \
          jnp.take(params["type_emb"], token_type_ids, axis=0)
    emb2d = emb.reshape(B * S, HIDDEN).astype(jnp.float32)

    # additive attention mask (B, S); dropout layers are identity in eval mode
    addmask = (1.0 - attention_mask.astype(jnp.float32)) * -10000.0
    rel = nezha_relative_positions_encoding(S, HEAD_DIM, MAX_REL_POS)   # trace-time constant

    operands = (
        emb2d, params["emb_ln_g"], params["emb_ln_b"], addmask, rel,
        params["qkv_w"], params["qkv_b"], params["ao_w"], params["ao_b"],
        params["a_ln_g"], params["a_ln_b"], params["i_w"], params["i_b"],
        params["o_w"], params["o_b"], params["o_ln_g"], params["o_ln_b"],
        params["pool_w"], params["pool_b"], params["cls_w"], params["cls_b"],
    )
    layer_stacked = {"qkv_w", "qkv_b", "ao_w", "ao_b", "a_ln_g", "a_ln_b",
                     "i_w", "i_b", "o_w", "o_b", "o_ln_g", "o_ln_b"}
    names = ("emb2d", "emb_ln_g", "emb_ln_b", "addmask", "rel",
             "qkv_w", "qkv_b", "ao_w", "ao_b", "a_ln_g", "a_ln_b",
             "i_w", "i_b", "o_w", "o_b", "o_ln_g", "o_ln_b",
             "pool_w", "pool_b", "cls_w", "cls_b")
    in_specs = [_layer_spec(op) if name in layer_stacked else _full_spec(op)
                for name, op in zip(names, operands)]

    logits_pad = pl.pallas_call(
        _nezha_kernel,
        out_shape=jax.ShapeDtypeStruct((B, LANE), jnp.float32),
        grid=(NUM_LAYERS,),
        in_specs=in_specs,
        out_specs=pl.BlockSpec((B, LANE), lambda l: (0, 0)),
        scratch_shapes=[pltpu.VMEM((B * S, HIDDEN), jnp.float32),   # resident hidden state
                        pltpu.VMEM((B * S, HIDDEN), jnp.float32)],  # attention context
        compiler_params=pltpu.CompilerParams(dimension_semantics=("arbitrary",)),
    )(*operands)

    return logits_pad[:, :NUM_CLASSES]


# ----------------------------- main -----------------------------
if __name__ == "__main__":
    key = jax.random.PRNGKey(0)
    pkey, dkey = jax.random.split(key)
    params = init_params(pkey)

    input_ids = jax.random.randint(dkey, (BATCH, SEQ), 0, VOCAB_SIZE, dtype=jnp.int32)
    attention_mask = jnp.ones((BATCH, SEQ), dtype=jnp.int32)
    token_type_ids = jnp.zeros((BATCH, SEQ), dtype=jnp.int32)

    logits = nezha_for_sequence_classification(params, input_ids, attention_mask, token_type_ids)
    logits = jax.block_until_ready(logits)
    assert logits.shape == (BATCH, NUM_CLASSES) and bool(jnp.all(jnp.isfinite(logits)))
    print("KERNEL_OK")
</pallas_src>

<mosaic_0001>
module attributes {stable_mosaic.version = 11 : i64} {
  func.func @_nezha_kernel(%arg0: i32, %arg1: memref<16x128xf32, #tpu.memory_space<vmem>>, %arg2: memref<1x128xf32, #tpu.memory_space<vmem>>, %arg3: memref<1x128xf32, #tpu.memory_space<vmem>>, %arg4: memref<2x8xf32, #tpu.memory_space<vmem>>, %arg5: memref<8x8x64xf32, #tpu.memory_space<vmem>>, %arg6: memref<1x128x384xf32, #tpu.memory_space<vmem>>, %arg7: memref<1x1x384xf32, #tpu.memory_space<vmem>>, %arg8: memref<1x128x128xf32, #tpu.memory_space<vmem>>, %arg9: memref<1x1x128xf32, #tpu.memory_space<vmem>>, %arg10: memref<1x1x128xf32, #tpu.memory_space<vmem>>, %arg11: memref<1x1x128xf32, #tpu.memory_space<vmem>>, %arg12: memref<1x128x256xf32, #tpu.memory_space<vmem>>, %arg13: memref<1x1x256xf32, #tpu.memory_space<vmem>>, %arg14: memref<1x256x128xf32, #tpu.memory_space<vmem>>, %arg15: memref<1x1x128xf32, #tpu.memory_space<vmem>>, %arg16: memref<1x1x128xf32, #tpu.memory_space<vmem>>, %arg17: memref<1x1x128xf32, #tpu.memory_space<vmem>>, %arg18: memref<128x128xf32, #tpu.memory_space<vmem>>, %arg19: memref<1x128xf32, #tpu.memory_space<vmem>>, %arg20: memref<128x128xf32, #tpu.memory_space<vmem>>, %arg21: memref<1x128xf32, #tpu.memory_space<vmem>>, %arg22: memref<2x128xf32, #tpu.memory_space<vmem>>, %arg23: memref<16x128xf32, #tpu.memory_space<vmem>>, %arg24: memref<16x128xf32, #tpu.memory_space<vmem>>) attributes {dimension_semantics = [#tpu.dimension_semantics<arbitrary>], iteration_bounds = array<i64: 2>, scalar_prefetch = 0 : i64, scratch_operands = 2 : i64, tpu.core_type = #tpu.core_type<tc>, window_params = [{pipeline_mode = #tpu.pipeline_mode<synchronous>, transform_indices = @transform_0, window_bounds = array<i64: 16, 128>}, {pipeline_mode = #tpu.pipeline_mode<synchronous>, transform_indices = @transform_1, window_bounds = array<i64: 1, 128>}, {pipeline_mode = #tpu.pipeline_mode<synchronous>, transform_indices = @transform_2, window_bounds = array<i64: 1, 128>}, {pipeline_mode = #tpu.pipeline_mode<synchronous>, transform_indices = @transform_3, window_bounds = array<i64: 2, 8>}, {pipeline_mode = #tpu.pipeline_mode<synchronous>, transform_indices = @transform_4, window_bounds = array<i64: 8, 8, 64>}, {transform_indices = @transform_5, window_bounds = array<i64: 1, 128, 384>}, {transform_indices = @transform_6, window_bounds = array<i64: 1, 1, 384>}, {transform_indices = @transform_7, window_bounds = array<i64: 1, 128, 128>}, {transform_indices = @transform_8, window_bounds = array<i64: 1, 1, 128>}, {transform_indices = @transform_9, window_bounds = array<i64: 1, 1, 128>}, {transform_indices = @transform_10, window_bounds = array<i64: 1, 1, 128>}, {transform_indices = @transform_11, window_bounds = array<i64: 1, 128, 256>}, {transform_indices = @transform_12, window_bounds = array<i64: 1, 1, 256>}, {transform_indices = @transform_13, window_bounds = array<i64: 1, 256, 128>}, {transform_indices = @transform_14, window_bounds = array<i64: 1, 1, 128>}, {transform_indices = @transform_15, window_bounds = array<i64: 1, 1, 128>}, {transform_indices = @transform_16, window_bounds = array<i64: 1, 1, 128>}, {pipeline_mode = #tpu.pipeline_mode<synchronous>, transform_indices = @transform_17, window_bounds = array<i64: 128, 128>}, {pipeline_mode = #tpu.pipeline_mode<synchronous>, transform_indices = @transform_18, window_bounds = array<i64: 1, 128>}, {pipeline_mode = #tpu.pipeline_mode<synchronous>, transform_indices = @transform_19, window_bounds = array<i64: 128, 128>}, {pipeline_mode = #tpu.pipeline_mode<synchronous>, transform_indices = @transform_20, window_bounds = array<i64: 1, 128>}, {pipeline_mode = #tpu.pipeline_mode<synchronous>, transform_indices = @transform_21, window_bounds = array<i64: 2, 128>}]} {
    %c0_i32 = arith.constant 0 : i32
    %0 = arith.cmpi eq, %arg0, %c0_i32 : i32
    %1 = arith.extui %0 : i1 to i32
    %c0_i32_0 = arith.constant 0 : i32
    %2 = arith.cmpi ne, %1, %c0_i32_0 : i32
    scf.if %2 {
      %c0_100 = arith.constant 0 : index
      %c0_101 = arith.constant 0 : index
      %219 = vector.load %arg1[%c0_100, %c0_101] : memref<16x128xf32, #tpu.memory_space<vmem>>, vector<16x128xf32>
      %c0_102 = arith.constant 0 : index
      %c0_103 = arith.constant 0 : index
      %220 = vector.load %arg2[%c0_102, %c0_103] : memref<1x128xf32, #tpu.memory_space<vmem>>, vector<1x128xf32>
      %c0_104 = arith.constant 0 : index
      %c0_105 = arith.constant 0 : index
      %221 = vector.load %arg3[%c0_104, %c0_105] : memref<1x128xf32, #tpu.memory_space<vmem>>, vector<1x128xf32>
      %cst_106 = arith.constant dense<0.000000e+00> : vector<16xf32>
      %222 = vector.multi_reduction <add>, %219, %cst_106 [1] : vector<16x128xf32> to vector<16xf32>
      %223 = vector.shape_cast %222 : vector<16xf32> to vector<16x1xf32>
      %cst_107 = arith.constant 1.280000e+02 : f32
      %224 = vector.broadcast %cst_107 : f32 to vector<16x1xf32>
      %225 = arith.divf %223, %224 : vector<16x1xf32>
      %226 = vector.broadcast %225 : vector<16x1xf32> to vector<16x128xf32>
      %227 = arith.subf %219, %226 : vector<16x128xf32>
      %228 = arith.mulf %227, %227 : vector<16x128xf32>
      %cst_108 = arith.constant dense<0.000000e+00> : vector<16xf32>
      %229 = vector.multi_reduction <add>, %228, %cst_108 [1] : vector<16x128xf32> to vector<16xf32>
      %230 = vector.shape_cast %229 : vector<16xf32> to vector<16x1xf32>
      %cst_109 = arith.constant 1.280000e+02 : f32
      %231 = vector.broadcast %cst_109 : f32 to vector<16x1xf32>
      %232 = arith.divf %230, %231 : vector<16x1xf32>
      %cst_110 = arith.constant 9.99999996E-13 : f32
      %233 = vector.broadcast %cst_110 : f32 to vector<16x1xf32>
      %234 = arith.addf %232, %233 : vector<16x1xf32>
      %235 = math.rsqrt %234 : vector<16x1xf32>
      %236 = vector.broadcast %235 : vector<16x1xf32> to vector<16x128xf32>
      %237 = arith.mulf %227, %236 : vector<16x128xf32>
      %238 = vector.broadcast %220 : vector<1x128xf32> to vector<16x128xf32>
      %239 = arith.mulf %237, %238 : vector<16x128xf32>
      %240 = vector.broadcast %221 : vector<1x128xf32> to vector<16x128xf32>
      %241 = arith.addf %239, %240 : vector<16x128xf32>
      %c0_111 = arith.constant 0 : index
      %c0_112 = arith.constant 0 : index
      %242 = vector.load %arg23[%c0_111, %c0_112] : memref<16x128xf32, #tpu.memory_space<vmem>>, vector<16x128xf32>
      tpu.vector_store %arg23[%c0_111, %c0_112], %241 {strides = array<i32>} : memref<16x128xf32, #tpu.memory_space<vmem>>, vector<16x128xf32>,
    } else {
    }
    %c0 = arith.constant 0 : index
    %c0_1 = arith.constant 0 : index
    %3 = vector.load %arg23[%c0, %c0_1] : memref<16x128xf32, #tpu.memory_space<vmem>>, vector<16x128xf32>
    %c0_2 = arith.constant 0 : index
    %c0_3 = arith.constant 0 : index
    %c0_4 = arith.constant 0 : index
    %4 = vector.load %arg5[%c0_2, %c0_3, %c0_4] : memref<8x8x64xf32, #tpu.memory_space<vmem>>, vector<8x8x64xf32>
    %c0_5 = arith.constant 0 : index
    %c0_6 = arith.constant 0 : index
    %c0_7 = arith.constant 0 : index
    %5 = vector.load %arg6[%c0_5, %c0_6, %c0_7] : memref<1x128x384xf32, #tpu.memory_space<vmem>>, vector<1x128x384xf32>
    %6 = vector.shape_cast %5 : vector<1x128x384xf32> to vector<128x384xf32>
    %cst = arith.constant dense<0.000000e+00> : vector<16x384xf32>
    %7 = tpu.matmul %3, %6, %cst {dimension_numbers = #tpu.dot_dimension_numbers<[1], [0], [0], [1], [0, 0, 1, 1], [], []>} : vector<16x128xf32>, vector<128x384xf32>, vector<16x384xf32> -> vector<16x384xf32>
    %c0_8 = arith.constant 0 : index
    %c0_9 = arith.constant 0 : index
    %c0_10 = arith.constant 0 : index
    %8 = vector.load %arg7[%c0_8, %c0_9, %c0_10] : memref<1x1x384xf32, #tpu.memory_space<vmem>>, vector<1x1x384xf32>
    %9 = vector.shape_cast %8 : vector<1x1x384xf32> to vector<1x384xf32>
    %10 = vector.broadcast %9 : vector<1x384xf32> to vector<16x384xf32>
    %11 = arith.addf %7, %10 : vector<16x384xf32>
    %c0_11 = arith.constant 0 : index
    %c0_12 = arith.constant 0 : index
    %12 = vector.load %arg4[%c0_11, %c0_12] : memref<2x8xf32, #tpu.memory_space<vmem>>, vector<1x8xf32>
    %13 = vector.extract_strided_slice %11 {offsets = [0, 0], sizes = [8, 64], strides = [1, 1]} : vector<16x384xf32> to vector<8x64xf32>
    %cst_13 = arith.constant 1.250000e-01 : f32
    %14 = vector.broadcast %cst_13 : f32 to vector<8x64xf32>
    %15 = arith.mulf %13, %14 : vector<8x64xf32>
    %16 = vector.extract_strided_slice %11 {offsets = [0, 128], sizes = [8, 64], strides = [1, 1]} : vector<16x384xf32> to vector<8x64xf32>
    %17 = vector.extract_strided_slice %11 {offsets = [0, 256], sizes = [8, 64], strides = [1, 1]} : vector<16x384xf32> to vector<8x64xf32>
    %18 = tpu.transpose %16, [1, 0] : vector<8x64xf32> -> vector<64x8xf32>
    %cst_14 = arith.constant dense<0.000000e+00> : vector<8x8xf32>
    %19 = tpu.matmul %15, %18, %cst_14 {dimension_numbers = #tpu.dot_dimension_numbers<[1], [0], [0], [1], [0, 0, 1, 1], [], []>} : vector<8x64xf32>, vector<64x8xf32>, vector<8x8xf32> -> vector<8x8xf32>
    %20 = vector.shape_cast %15 : vector<8x64xf32> to vector<8x1x64xf32>
    "tpu.trace_start"() <{level = 10 : i32, message = "iad,ijd->iaj"}> : () -> ()
    %cst_15 = arith.constant dense<0.000000e+00> : vector<8x1x8xf32>
    %21 = tpu.matmul %20, %4, %cst_15 {dimension_numbers = #tpu.dot_dimension_numbers<[2], [2], [1], [1], [0, 0, 0, 1, 1, 1], [0], [0]>} : vector<8x1x64xf32>, vector<8x8x64xf32>, vector<8x1x8xf32> -> vector<8x1x8xf32>
    "tpu.trace_stop"() : () -> ()
    %22 = vector.shape_cast %21 : vector<8x1x8xf32> to vector<8x8xf32>
    %23 = arith.addf %19, %22 : vector<8x8xf32>
    %24 = vector.broadcast %12 : vector<1x8xf32> to vector<8x8xf32>
    %25 = arith.addf %23, %24 : vector<8x8xf32>
    %cst_16 = arith.constant dense<0xFF800000> : vector<8xf32>
    %26 = vector.multi_reduction <maximumf>, %25, %cst_16 [1] : vector<8x8xf32> to vector<8xf32>
    %27 = vector.shape_cast %26 : vector<8xf32> to vector<8x1xf32>
    %28 = vector.broadcast %27 : vector<8x1xf32> to vector<8x8xf32>
    %29 = arith.subf %25, %28 : vector<8x8xf32>
    %30 = math.exp %29 : vector<8x8xf32>
    %cst_17 = arith.constant dense<0.000000e+00> : vector<8xf32>
    %31 = vector.multi_reduction <add>, %30, %cst_17 [1] : vector<8x8xf32> to vector<8xf32>
    %32 = vector.shape_cast %31 : vector<8xf32> to vector<8x1xf32>
    %33 = tpu.reciprocal %32 {approx = true} : vector<8x1xf32> -> vector<8x1xf32>
    %34 = vector.broadcast %33 : vector<8x1xf32> to vector<8x8xf32>
    %35 = arith.mulf %30, %34 : vector<8x8xf32>
    %cst_18 = arith.constant dense<0.000000e+00> : vector<8x64xf32>
    %36 = tpu.matmul %35, %17, %cst_18 {dimension_numbers = #tpu.dot_dimension_numbers<[1], [0], [0], [1], [0, 0, 1, 1], [], []>} : vector<8x8xf32>, vector<8x64xf32>, vector<8x64xf32> -> vector<8x64xf32>
    %37 = vector.shape_cast %35 : vector<8x8xf32> to vector<8x1x8xf32>
    "tpu.trace_start"() <{level = 10 : i32, message = "iaj,ijd->iad"}> : () -> ()
    %cst_19 = arith.constant dense<0.000000e+00> : vector<8x1x64xf32>
    %38 = tpu.matmul %37, %4, %cst_19 {dimension_numbers = #tpu.dot_dimension_numbers<[2], [1], [1], [2], [0, 0, 0, 1, 1, 2], [0], [0]>} : vector<8x1x8xf32>, vector<8x8x64xf32>, vector<8x1x64xf32> -> vector<8x1x64xf32>
    "tpu.trace_stop"() : () -> ()
    %39 = vector.shape_cast %38 : vector<8x1x64xf32> to vector<8x64xf32>
    %40 = arith.addf %36, %39 : vector<8x64xf32>
    %c0_20 = arith.constant 0 : index
    %c0_21 = arith.constant 0 : index
    %41 = vector.load %arg24[%c0_20, %c0_21] : memref<16x128xf32, #tpu.memory_space<vmem>>, vector<8x64xf32>
    tpu.vector_store %arg24[%c0_20, %c0_21], %40 {strides = array<i32>} : memref<16x128xf32, #tpu.memory_space<vmem>>, vector<8x64xf32>,
    %42 = vector.extract_strided_slice %11 {offsets = [0, 64], sizes = [8, 64], strides = [1, 1]} : vector<16x384xf32> to vector<8x64xf32>
    %cst_22 = arith.constant 1.250000e-01 : f32
    %43 = vector.broadcast %cst_22 : f32 to vector<8x64xf32>
    %44 = arith.mulf %42, %43 : vector<8x64xf32>
    %45 = vector.extract_strided_slice %11 {offsets = [0, 192], sizes = [8, 64], strides = [1, 1]} : vector<16x384xf32> to vector<8x64xf32>
    %46 = vector.extract_strided_slice %11 {offsets = [0, 320], sizes = [8, 64], strides = [1, 1]} : vector<16x384xf32> to vector<8x64xf32>
    %47 = tpu.transpose %45, [1, 0] : vector<8x64xf32> -> vector<64x8xf32>
    %cst_23 = arith.constant dense<0.000000e+00> : vector<8x8xf32>
    %48 = tpu.matmul %44, %47, %cst_23 {dimension_numbers = #tpu.dot_dimension_numbers<[1], [0], [0], [1], [0, 0, 1, 1], [], []>} : vector<8x64xf32>, vector<64x8xf32>, vector<8x8xf32> -> vector<8x8xf32>
    %49 = vector.shape_cast %44 : vector<8x64xf32> to vector<8x1x64xf32>
    "tpu.trace_start"() <{level = 10 : i32, message = "iad,ijd->iaj"}> : () -> ()
    %cst_24 = arith.constant dense<0.000000e+00> : vector<8x1x8xf32>
    %50 = tpu.matmul %49, %4, %cst_24 {dimension_numbers = #tpu.dot_dimension_numbers<[2], [2], [1], [1], [0, 0, 0, 1, 1, 1], [0], [0]>} : vector<8x1x64xf32>, vector<8x8x64xf32>, vector<8x1x8xf32> -> vector<8x1x8xf32>
    "tpu.trace_stop"() : () -> ()
    %51 = vector.shape_cast %50 : vector<8x1x8xf32> to vector<8x8xf32>
    %52 = arith.addf %48, %51 : vector<8x8xf32>
    %53 = vector.broadcast %12 : vector<1x8xf32> to vector<8x8xf32>
    %54 = arith.addf %52, %53 : vector<8x8xf32>
    %cst_25 = arith.constant dense<0xFF800000> : vector<8xf32>
    %55 = vector.multi_reduction <maximumf>, %54, %cst_25 [1] : vector<8x8xf32> to vector<8xf32>
    %56 = vector.shape_cast %55 : vector<8xf32> to vector<8x1xf32>
    %57 = vector.broadcast %56 : vector<8x1xf32> to vector<8x8xf32>
    %58 = arith.subf %54, %57 : vector<8x8xf32>
    %59 = math.exp %58 : vector<8x8xf32>
    %cst_26 = arith.constant dense<0.000000e+00> : vector<8xf32>
    %60 = vector.multi_reduction <add>, %59, %cst_26 [1] : vector<8x8xf32> to vector<8xf32>
    %61 = vector.shape_cast %60 : vector<8xf32> to vector<8x1xf32>
    %62 = tpu.reciprocal %61 {approx = true} : vector<8x1xf32> -> vector<8x1xf32>
    %63 = vector.broadcast %62 : vector<8x1xf32> to vector<8x8xf32>
    %64 = arith.mulf %59, %63 : vector<8x8xf32>
    %cst_27 = arith.constant dense<0.000000e+00> : vector<8x64xf32>
    %65 = tpu.matmul %64, %46, %cst_27 {dimension_numbers = #tpu.dot_dimension_numbers<[1], [0], [0], [1], [0, 0, 1, 1], [], []>} : vector<8x8xf32>, vector<8x64xf32>, vector<8x64xf32> -> vector<8x64xf32>
    %66 = vector.shape_cast %64 : vector<8x8xf32> to vector<8x1x8xf32>
    "tpu.trace_start"() <{level = 10 : i32, message = "iaj,ijd->iad"}> : () -> ()
    %cst_28 = arith.constant dense<0.000000e+00> : vector<8x1x64xf32>
    %67 = tpu.matmul %66, %4, %cst_28 {dimension_numbers = #tpu.dot_dimension_numbers<[2], [1], [1], [2], [0, 0, 0, 1, 1, 2], [0], [0]>} : vector<8x1x8xf32>, vector<8x8x64xf32>, vector<8x1x64xf32> -> vector<8x1x64xf32>
    "tpu.trace_stop"() : () -> ()
    %68 = vector.shape_cast %67 : vector<8x1x64xf32> to vector<8x64xf32>
    %69 = arith.addf %65, %68 : vector<8x64xf32>
    %c0_29 = arith.constant 0 : index
    %c64 = arith.constant 64 : index
    %70 = vector.load %arg24[%c0_29, %c64] : memref<16x128xf32, #tpu.memory_space<vmem>>, vector<8x64xf32>
    tpu.vector_store %arg24[%c0_29, %c64], %69 {strides = array<i32>} : memref<16x128xf32, #tpu.memory_space<vmem>>, vector<8x64xf32>,
    %c1 = arith.constant 1 : index
    %c0_30 = arith.constant 0 : index
    %71 = vector.load %arg4[%c1, %c0_30] : memref<2x8xf32, #tpu.memory_space<vmem>>, vector<1x8xf32>
    %72 = vector.extract_strided_slice %11 {offsets = [8, 0], sizes = [8, 64], strides = [1, 1]} : vector<16x384xf32> to vector<8x64xf32>
    %cst_31 = arith.constant 1.250000e-01 : f32
    %73 = vector.broadcast %cst_31 : f32 to vector<8x64xf32>
    %74 = arith.mulf %72, %73 : vector<8x64xf32>
    %75 = vector.extract_strided_slice %11 {offsets = [8, 128], sizes = [8, 64], strides = [1, 1]} : vector<16x384xf32> to vector<8x64xf32>
    %76 = vector.extract_strided_slice %11 {offsets = [8, 256], sizes = [8, 64], strides = [1, 1]} : vector<16x384xf32> to vector<8x64xf32>
    %77 = tpu.transpose %75, [1, 0] : vector<8x64xf32> -> vector<64x8xf32>
    %cst_32 = arith.constant dense<0.000000e+00> : vector<8x8xf32>
    %78 = tpu.matmul %74, %77, %cst_32 {dimension_numbers = #tpu.dot_dimension_numbers<[1], [0], [0], [1], [0, 0, 1, 1], [], []>} : vector<8x64xf32>, vector<64x8xf32>, vector<8x8xf32> -> vector<8x8xf32>
    %79 = vector.shape_cast %74 : vector<8x64xf32> to vector<8x1x64xf32>
    "tpu.trace_start"() <{level = 10 : i32, message = "iad,ijd->iaj"}> : () -> ()
    %cst_33 = arith.constant dense<0.000000e+00> : vector<8x1x8xf32>
    %80 = tpu.matmul %79, %4, %cst_33 {dimension_numbers = #tpu.dot_dimension_numbers<[2], [2], [1], [1], [0, 0, 0, 1, 1, 1], [0], [0]>} : vector<8x1x64xf32>, vector<8x8x64xf32>, vector<8x1x8xf32> -> vector<8x1x8xf32>
    "tpu.trace_stop"() : () -> ()
    %81 = vector.shape_cast %80 : vector<8x1x8xf32> to vector<8x8xf32>
    %82 = arith.addf %78, %81 : vector<8x8xf32>
    %83 = vector.broadcast %71 : vector<1x8xf32> to vector<8x8xf32>
    %84 = arith.addf %82, %83 : vector<8x8xf32>
    %cst_34 = arith.constant dense<0xFF800000> : vector<8xf32>
    %85 = vector.multi_reduction <maximumf>, %84, %cst_34 [1] : vector<8x8xf32> to vector<8xf32>
    %86 = vector.shape_cast %85 : vector<8xf32> to vector<8x1xf32>
    %87 = vector.broadcast %86 : vector<8x1xf32> to vector<8x8xf32>
    %88 = arith.subf %84, %87 : vector<8x8xf32>
    %89 = math.exp %88 : vector<8x8xf32>
    %cst_35 = arith.constant dense<0.000000e+00> : vector<8xf32>
    %90 = vector.multi_reduction <add>, %89, %cst_35 [1] : vector<8x8xf32> to vector<8xf32>
    %91 = vector.shape_cast %90 : vector<8xf32> to vector<8x1xf32>
    %92 = tpu.reciprocal %91 {approx = true} : vector<8x1xf32> -> vector<8x1xf32>
    %93 = vector.broadcast %92 : vector<8x1xf32> to vector<8x8xf32>
    %94 = arith.mulf %89, %93 : vector<8x8xf32>
    %cst_36 = arith.constant dense<0.000000e+00> : vector<8x64xf32>
    %95 = tpu.matmul %94, %76, %cst_36 {dimension_numbers = #tpu.dot_dimension_numbers<[1], [0], [0], [1], [0, 0, 1, 1], [], []>} : vector<8x8xf32>, vector<8x64xf32>, vector<8x64xf32> -> vector<8x64xf32>
    %96 = vector.shape_cast %94 : vector<8x8xf32> to vector<8x1x8xf32>
    "tpu.trace_start"() <{level = 10 : i32, message = "iaj,ijd->iad"}> : () -> ()
    %cst_37 = arith.constant dense<0.000000e+00> : vector<8x1x64xf32>
    %97 = tpu.matmul %96, %4, %cst_37 {dimension_numbers = #tpu.dot_dimension_numbers<[2], [1], [1], [2], [0, 0, 0, 1, 1, 2], [0], [0]>} : vector<8x1x8xf32>, vector<8x8x64xf32>, vector<8x1x64xf32> -> vector<8x1x64xf32>
    "tpu.trace_stop"() : () -> ()
    %98 = vector.shape_cast %97 : vector<8x1x64xf32> to vector<8x64xf32>
    %99 = arith.addf %95, %98 : vector<8x64xf32>
    %c8 = arith.constant 8 : index
    %c0_38 = arith.constant 0 : index
    %100 = vector.load %arg24[%c8, %c0_38] : memref<16x128xf32, #tpu.memory_space<vmem>>, vector<8x64xf32>
    tpu.vector_store %arg24[%c8, %c0_38], %99 {strides = array<i32>} : memref<16x128xf32, #tpu.memory_space<vmem>>, vector<8x64xf32>,
    %101 = vector.extract_strided_slice %11 {offsets = [8, 64], sizes = [8, 64], strides = [1, 1]} : vector<16x384xf32> to vector<8x64xf32>
    %cst_39 = arith.constant 1.250000e-01 : f32
    %102 = vector.broadcast %cst_39 : f32 to vector<8x64xf32>
    %103 = arith.mulf %101, %102 : vector<8x64xf32>
    %104 = vector.extract_strided_slice %11 {offsets = [8, 192], sizes = [8, 64], strides = [1, 1]} : vector<16x384xf32> to vector<8x64xf32>
    %105 = vector.extract_strided_slice %11 {offsets = [8, 320], sizes = [8, 64], strides = [1, 1]} : vector<16x384xf32> to vector<8x64xf32>
    %106 = tpu.transpose %104, [1, 0] : vector<8x64xf32> -> vector<64x8xf32>
    %cst_40 = arith.constant dense<0.000000e+00> : vector<8x8xf32>
    %107 = tpu.matmul %103, %106, %cst_40 {dimension_numbers = #tpu.dot_dimension_numbers<[1], [0], [0], [1], [0, 0, 1, 1], [], []>} : vector<8x64xf32>, vector<64x8xf32>, vector<8x8xf32> -> vector<8x8xf32>
    %108 = vector.shape_cast %103 : vector<8x64xf32> to vector<8x1x64xf32>
    "tpu.trace_start"() <{level = 10 : i32, message = "iad,ijd->iaj"}> : () -> ()
    %cst_41 = arith.constant dense<0.000000e+00> : vector<8x1x8xf32>
    %109 = tpu.matmul %108, %4, %cst_41 {dimension_numbers = #tpu.dot_dimension_numbers<[2], [2], [1], [1], [0, 0, 0, 1, 1, 1], [0], [0]>} : vector<8x1x64xf32>, vector<8x8x64xf32>, vector<8x1x8xf32> -> vector<8x1x8xf32>
    "tpu.trace_stop"() : () -> ()
    %110 = vector.shape_cast %109 : vector<8x1x8xf32> to vector<8x8xf32>
    %111 = arith.addf %107, %110 : vector<8x8xf32>
    %112 = vector.broadcast %71 : vector<1x8xf32> to vector<8x8xf32>
    %113 = arith.addf %111, %112 : vector<8x8xf32>
    %cst_42 = arith.constant dense<0xFF800000> : vector<8xf32>
    %114 = vector.multi_reduction <maximumf>, %113, %cst_42 [1] : vector<8x8xf32> to vector<8xf32>
    %115 = vector.shape_cast %114 : vector<8xf32> to vector<8x1xf32>
    %116 = vector.broadcast %115 : vector<8x1xf32> to vector<8x8xf32>
    %117 = arith.subf %113, %116 : vector<8x8xf32>
    %118 = math.exp %117 : vector<8x8xf32>
    %cst_43 = arith.constant dense<0.000000e+00> : vector<8xf32>
    %119 = vector.multi_reduction <add>, %118, %cst_43 [1] : vector<8x8xf32> to vector<8xf32>
    %120 = vector.shape_cast %119 : vector<8xf32> to vector<8x1xf32>
    %121 = tpu.reciprocal %120 {approx = true} : vector<8x1xf32> -> vector<8x1xf32>
    %122 = vector.broadcast %121 : vector<8x1xf32> to vector<8x8xf32>
    %123 = arith.mulf %118, %122 : vector<8x8xf32>
    %cst_44 = arith.constant dense<0.000000e+00> : vector<8x64xf32>
    %124 = tpu.matmul %123, %105, %cst_44 {dimension_numbers = #tpu.dot_dimension_numbers<[1], [0], [0], [1], [0, 0, 1, 1], [], []>} : vector<8x8xf32>, vector<8x64xf32>, vector<8x64xf32> -> vector<8x64xf32>
    %125 = vector.shape_cast %123 : vector<8x8xf32> to vector<8x1x8xf32>
    "tpu.trace_start"() <{level = 10 : i32, message = "iaj,ijd->iad"}> : () -> ()
    %cst_45 = arith.constant dense<0.000000e+00> : vector<8x1x64xf32>
    %126 = tpu.matmul %125, %4, %cst_45 {dimension_numbers = #tpu.dot_dimension_numbers<[2], [1], [1], [2], [0, 0, 0, 1, 1, 2], [0], [0]>} : vector<8x1x8xf32>, vector<8x8x64xf32>, vector<8x1x64xf32> -> vector<8x1x64xf32>
    "tpu.trace_stop"() : () -> ()
    %127 = vector.shape_cast %126 : vector<8x1x64xf32> to vector<8x64xf32>
    %128 = arith.addf %124, %127 : vector<8x64xf32>
    %c8_46 = arith.constant 8 : index
    %c64_47 = arith.constant 64 : index
    %129 = vector.load %arg24[%c8_46, %c64_47] : memref<16x128xf32, #tpu.memory_space<vmem>>, vector<8x64xf32>
    tpu.vector_store %arg24[%c8_46, %c64_47], %128 {strides = array<i32>} : memref<16x128xf32, #tpu.memory_space<vmem>>, vector<8x64xf32>,
    %c0_48 = arith.constant 0 : index
    %c0_49 = arith.constant 0 : index
    %130 = vector.load %arg24[%c0_48, %c0_49] : memref<16x128xf32, #tpu.memory_space<vmem>>, vector<16x128xf32>
    %c0_50 = arith.constant 0 : index
    %c0_51 = arith.constant 0 : index
    %c0_52 = arith.constant 0 : index
    %131 = vector.load %arg8[%c0_50, %c0_51, %c0_52] : memref<1x128x128xf32, #tpu.memory_space<vmem>>, vector<1x128x128xf32>
    %132 = vector.shape_cast %131 : vector<1x128x128xf32> to vector<128x128xf32>
    %cst_53 = arith.constant dense<0.000000e+00> : vector<16x128xf32>
    %133 = tpu.matmul %130, %132, %cst_53 {dimension_numbers = #tpu.dot_dimension_numbers<[1], [0], [0], [1], [0, 0, 1, 1], [], []>} : vector<16x128xf32>, vector<128x128xf32>, vector<16x128xf32> -> vector<16x128xf32>
    %c0_54 = arith.constant 0 : index
    %c0_55 = arith.constant 0 : index
    %c0_56 = arith.constant 0 : index
    %134 = vector.load %arg9[%c0_54, %c0_55, %c0_56] : memref<1x1x128xf32, #tpu.memory_space<vmem>>, vector<1x1x128xf32>
    %135 = vector.shape_cast %134 : vector<1x1x128xf32> to vector<1x128xf32>
    %136 = vector.broadcast %135 : vector<1x128xf32> to vector<16x128xf32>
    %137 = arith.addf %133, %136 : vector<16x128xf32>
    %138 = arith.addf %137, %3 : vector<16x128xf32>
    %c0_57 = arith.constant 0 : index
    %c0_58 = arith.constant 0 : index
    %c0_59 = arith.constant 0 : index
    %139 = vector.load %arg10[%c0_57, %c0_58, %c0_59] : memref<1x1x128xf32, #tpu.memory_space<vmem>>, vector<1x1x128xf32>
    %140 = vector.shape_cast %139 : vector<1x1x128xf32> to vector<1x128xf32>
    %c0_60 = arith.constant 0 : index
    %c0_61 = arith.constant 0 : index
    %c0_62 = arith.constant 0 : index
    %141 = vector.load %arg11[%c0_60, %c0_61, %c0_62] : memref<1x1x128xf32, #tpu.memory_space<vmem>>, vector<1x1x128xf32>
    %142 = vector.shape_cast %141 : vector<1x1x128xf32> to vector<1x128xf32>
    %cst_63 = arith.constant dense<0.000000e+00> : vector<16xf32>
    %143 = vector.multi_reduction <add>, %138, %cst_63 [1] : vector<16x128xf32> to vector<16xf32>
    %144 = vector.shape_cast %143 : vector<16xf32> to vector<16x1xf32>
    %cst_64 = arith.constant 1.280000e+02 : f32
    %145 = vector.broadcast %cst_64 : f32 to vector<16x1xf32>
    %146 = arith.divf %144, %145 : vector<16x1xf32>
    %147 = vector.broadcast %146 : vector<16x1xf32> to vector<16x128xf32>
    %148 = arith.subf %138, %147 : vector<16x128xf32>
    %149 = arith.mulf %148, %148 : vector<16x128xf32>
    %cst_65 = arith.constant dense<0.000000e+00> : vector<16xf32>
    %150 = vector.multi_reduction <add>, %149, %cst_65 [1] : vector<16x128xf32> to vector<16xf32>
    %151 = vector.shape_cast %150 : vector<16xf32> to vector<16x1xf32>
    %cst_66 = arith.constant 1.280000e+02 : f32
    %152 = vector.broadcast %cst_66 : f32 to vector<16x1xf32>
    %153 = arith.divf %151, %152 : vector<16x1xf32>
    %cst_67 = arith.constant 9.99999996E-13 : f32
    %154 = vector.broadcast %cst_67 : f32 to vector<16x1xf32>
    %155 = arith.addf %153, %154 : vector<16x1xf32>
    %156 = math.rsqrt %155 : vector<16x1xf32>
    %157 = vector.broadcast %156 : vector<16x1xf32> to vector<16x128xf32>
    %158 = arith.mulf %148, %157 : vector<16x128xf32>
    %159 = vector.broadcast %140 : vector<1x128xf32> to vector<16x128xf32>
    %160 = arith.mulf %158, %159 : vector<16x128xf32>
    %161 = vector.broadcast %142 : vector<1x128xf32> to vector<16x128xf32>
    %162 = arith.addf %160, %161 : vector<16x128xf32>
    %c0_68 = arith.constant 0 : index
    %c0_69 = arith.constant 0 : index
    %c0_70 = arith.constant 0 : index
    %163 = vector.load %arg12[%c0_68, %c0_69, %c0_70] : memref<1x128x256xf32, #tpu.memory_space<vmem>>, vector<1x128x256xf32>
    %164 = vector.shape_cast %163 : vector<1x128x256xf32> to vector<128x256xf32>
    %cst_71 = arith.constant dense<0.000000e+00> : vector<16x256xf32>
    %165 = tpu.matmul %162, %164, %cst_71 {dimension_numbers = #tpu.dot_dimension_numbers<[1], [0], [0], [1], [0, 0, 1, 1], [], []>} : vector<16x128xf32>, vector<128x256xf32>, vector<16x256xf32> -> vector<16x256xf32>
    %c0_72 = arith.constant 0 : index
    %c0_73 = arith.constant 0 : index
    %c0_74 = arith.constant 0 : index
    %166 = vector.load %arg13[%c0_72, %c0_73, %c0_74] : memref<1x1x256xf32, #tpu.memory_space<vmem>>, vector<1x1x256xf32>
    %167 = vector.shape_cast %166 : vector<1x1x256xf32> to vector<1x256xf32>
    %168 = vector.broadcast %167 : vector<1x256xf32> to vector<16x256xf32>
    %169 = arith.addf %165, %168 : vector<16x256xf32>
    %cst_75 = arith.constant 5.000000e-01 : f32
    %170 = vector.broadcast %cst_75 : f32 to vector<16x256xf32>
    %171 = arith.mulf %170, %169 : vector<16x256xf32>
    %cst_76 = arith.constant 4.471500e-02 : f32
    %172 = vector.broadcast %cst_76 : f32 to vector<16x256xf32>
    %173 = arith.mulf %172, %169 : vector<16x256xf32>
    %174 = arith.mulf %173, %169 : vector<16x256xf32>
    %175 = arith.mulf %174, %169 : vector<16x256xf32>
    %176 = arith.addf %169, %175 : vector<16x256xf32>
    %cst_77 = arith.constant 0.797884583 : f32
    %177 = vector.broadcast %cst_77 : f32 to vector<16x256xf32>
    %178 = arith.mulf %177, %176 : vector<16x256xf32>
    %179 = math.tanh %178 : vector<16x256xf32>
    %cst_78 = arith.constant 1.000000e+00 : f32
    %180 = vector.broadcast %cst_78 : f32 to vector<16x256xf32>
    %181 = arith.addf %180, %179 : vector<16x256xf32>
    %182 = arith.mulf %171, %181 : vector<16x256xf32>
    %c0_79 = arith.constant 0 : index
    %c0_80 = arith.constant 0 : index
    %c0_81 = arith.constant 0 : index
    %183 = vector.load %arg14[%c0_79, %c0_80, %c0_81] : memref<1x256x128xf32, #tpu.memory_space<vmem>>, vector<1x256x128xf32>
    %184 = vector.shape_cast %183 : vector<1x256x128xf32> to vector<256x128xf32>
    %cst_82 = arith.constant dense<0.000000e+00> : vector<16x128xf32>
    %185 = tpu.matmul %182, %184, %cst_82 {dimension_numbers = #tpu.dot_dimension_numbers<[1], [0], [0], [1], [0, 0, 1, 1], [], []>} : vector<16x256xf32>, vector<256x128xf32>, vector<16x128xf32> -> vector<16x128xf32>
    %c0_83 = arith.constant 0 : index
    %c0_84 = arith.constant 0 : index
    %c0_85 = arith.constant 0 : index
    %186 = vector.load %arg15[%c0_83, %c0_84, %c0_85] : memref<1x1x128xf32, #tpu.memory_space<vmem>>, vector<1x1x128xf32>
    %187 = vector.shape_cast %186 : vector<1x1x128xf32> to vector<1x128xf32>
    %188 = vector.broadcast %187 : vector<1x128xf32> to vector<16x128xf32>
    %189 = arith.addf %185, %188 : vector<16x128xf32>
    %190 = arith.addf %189, %162 : vector<16x128xf32>
    %c0_86 = arith.constant 0 : index
    %c0_87 = arith.constant 0 : index
    %c0_88 = arith.constant 0 : index
    %191 = vector.load %arg16[%c0_86, %c0_87, %c0_88] : memref<1x1x128xf32, #tpu.memory_space<vmem>>, vector<1x1x128xf32>
    %192 = vector.shape_cast %191 : vector<1x1x128xf32> to vector<1x128xf32>
    %c0_89 = arith.constant 0 : index
    %c0_90 = arith.constant 0 : index
    %c0_91 = arith.constant 0 : index
    %193 = vector.load %arg17[%c0_89, %c0_90, %c0_91] : memref<1x1x128xf32, #tpu.memory_space<vmem>>, vector<1x1x128xf32>
    %194 = vector.shape_cast %193 : vector<1x1x128xf32> to vector<1x128xf32>
    %cst_92 = arith.constant dense<0.000000e+00> : vector<16xf32>
    %195 = vector.multi_reduction <add>, %190, %cst_92 [1] : vector<16x128xf32> to vector<16xf32>
    %196 = vector.shape_cast %195 : vector<16xf32> to vector<16x1xf32>
    %cst_93 = arith.constant 1.280000e+02 : f32
    %197 = vector.broadcast %cst_93 : f32 to vector<16x1xf32>
    %198 = arith.divf %196, %197 : vector<16x1xf32>
    %199 = vector.broadcast %198 : vector<16x1xf32> to vector<16x128xf32>
    %200 = arith.subf %190, %199 : vector<16x128xf32>
    %201 = arith.mulf %200, %200 : vector<16x128xf32>
    %cst_94 = arith.constant dense<0.000000e+00> : vector<16xf32>
    %202 = vector.multi_reduction <add>, %201, %cst_94 [1] : vector<16x128xf32> to vector<16xf32>
    %203 = vector.shape_cast %202 : vector<16xf32> to vector<16x1xf32>
    %cst_95 = arith.constant 1.280000e+02 : f32
    %204 = vector.broadcast %cst_95 : f32 to vector<16x1xf32>
    %205 = arith.divf %203, %204 : vector<16x1xf32>
    %cst_96 = arith.constant 9.99999996E-13 : f32
    %206 = vector.broadcast %cst_96 : f32 to vector<16x1xf32>
    %207 = arith.addf %205, %206 : vector<16x1xf32>
    %208 = math.rsqrt %207 : vector<16x1xf32>
    %209 = vector.broadcast %208 : vector<16x1xf32> to vector<16x128xf32>
    %210 = arith.mulf %200, %209 : vector<16x128xf32>
    %211 = vector.broadcast %192 : vector<1x128xf32> to vector<16x128xf32>
    %212 = arith.mulf %210, %211 : vector<16x128xf32>
    %213 = vector.broadcast %194 : vector<1x128xf32> to vector<16x128xf32>
    %214 = arith.addf %212, %213 : vector<16x128xf32>
    %c0_97 = arith.constant 0 : index
    %c0_98 = arith.constant 0 : index
    %215 = vector.load %arg23[%c0_97, %c0_98] : memref<16x128xf32, #tpu.memory_space<vmem>>, vector<16x128xf32>
    tpu.vector_store %arg23[%c0_97, %c0_98], %214 {strides = array<i32>} : memref<16x128xf32, #tpu.memory_space<vmem>>, vector<16x128xf32>,
    %c1_i32 = arith.constant 1 : i32
    %216 = arith.cmpi eq, %arg0, %c1_i32 : i32
    %217 = arith.extui %216 : i1 to i32
    %c0_i32_99 = arith.constant 0 : i32
    %218 = arith.cmpi ne, %217, %c0_i32_99 : i32
    scf.if %218 {
      %c0_100 = arith.constant 0 : index
      %c0_101 = arith.constant 0 : index
      %219 = vector.load %arg18[%c0_100, %c0_101] : memref<128x128xf32, #tpu.memory_space<vmem>>, vector<128x128xf32>
      %cst_102 = arith.constant dense<0.000000e+00> : vector<16x128xf32>
      %220 = tpu.matmul %214, %219, %cst_102 {dimension_numbers = #tpu.dot_dimension_numbers<[1], [0], [0], [1], [0, 0, 1, 1], [], []>} : vector<16x128xf32>, vector<128x128xf32>, vector<16x128xf32> -> vector<16x128xf32>
      %c0_103 = arith.constant 0 : index
      %c0_104 = arith.constant 0 : index
      %221 = vector.load %arg19[%c0_103, %c0_104] : memref<1x128xf32, #tpu.memory_space<vmem>>, vector<1x128xf32>
      %222 = vector.broadcast %221 : vector<1x128xf32> to vector<16x128xf32>
      %223 = arith.addf %220, %222 : vector<16x128xf32>
      %224 = math.tanh %223 : vector<16x128xf32>
      %c0_105 = arith.constant 0 : index
      %c0_106 = arith.constant 0 : index
      %225 = vector.load %arg20[%c0_105, %c0_106] : memref<128x128xf32, #tpu.memory_space<vmem>>, vector<128x128xf32>
      %cst_107 = arith.constant dense<0.000000e+00> : vector<16x128xf32>
      %226 = tpu.matmul %224, %225, %cst_107 {dimension_numbers = #tpu.dot_dimension_numbers<[1], [0], [0], [1], [0, 0, 1, 1], [], []>} : vector<16x128xf32>, vector<128x128xf32>, vector<16x128xf32> -> vector<16x128xf32>
      %c0_108 = arith.constant 0 : index
      %c0_109 = arith.constant 0 : index
      %227 = vector.load %arg21[%c0_108, %c0_109] : memref<1x128xf32, #tpu.memory_space<vmem>>, vector<1x128xf32>
      %228 = vector.broadcast %227 : vector<1x128xf32> to vector<16x128xf32>
      %229 = arith.addf %226, %228 : vector<16x128xf32>
      %230 = vector.extract_strided_slice %229 {offsets = [0, 0], sizes = [1, 128], strides = [1, 1]} : vector<16x128xf32> to vector<1x128xf32>
      %c0_110 = arith.constant 0 : index
      %c0_111 = arith.constant 0 : index
      %231 = vector.load %arg22[%c0_110, %c0_111] : memref<2x128xf32, #tpu.memory_space<vmem>>, vector<1x128xf32>
      tpu.vector_store %arg22[%c0_110, %c0_111], %230 {strides = array<i32>} : memref<2x128xf32, #tpu.memory_space<vmem>>, vector<1x128xf32>,
      %232 = vector.extract_strided_slice %229 {offsets = [8, 0], sizes = [1, 128], strides = [1, 1]} : vector<16x128xf32> to vector<1x128xf32>
      %c1_112 = arith.constant 1 : index
      %c0_113 = arith.constant 0 : index
      %233 = vector.load %arg22[%c1_112, %c0_113] : memref<2x128xf32, #tpu.memory_space<vmem>>, vector<1x128xf32>
      tpu.vector_store %arg22[%c1_112, %c0_113], %232 {strides = array<i32>} : memref<2x128xf32, #tpu.memory_space<vmem>>, vector<1x128xf32>,
    } else {
    }
    return
  }
  func.func @transform_0(%arg0: i32) -> (i32, i32) {
    %c0_i32 = arith.constant 0 : i32
    %c0_i32_0 = arith.constant 0 : i32
    %c0_i32_1 = arith.constant 0 : i32
    return %c0_i32, %c0_i32_0 : i32, i32
  }
  func.func @transform_1(%arg0: i32) -> (i32, i32) {
    %c0_i32 = arith.constant 0 : i32
    %c0_i32_0 = arith.constant 0 : i32
    %c0_i32_1 = arith.constant 0 : i32
    return %c0_i32, %c0_i32_0 : i32, i32
  }
  func.func @transform_2(%arg0: i32) -> (i32, i32) {
    %c0_i32 = arith.constant 0 : i32
    %c0_i32_0 = arith.constant 0 : i32
    %c0_i32_1 = arith.constant 0 : i32
    return %c0_i32, %c0_i32_0 : i32, i32
  }
  func.func @transform_3(%arg0: i32) -> (i32, i32) {
    %c0_i32 = arith.constant 0 : i32
    %c0_i32_0 = arith.constant 0 : i32
    %c0_i32_1 = arith.constant 0 : i32
    return %c0_i32, %c0_i32_0 : i32, i32
  }
  func.func @transform_4(%arg0: i32) -> (i32, i32, i32) {
    %c0_i32 = arith.constant 0 : i32
    %c0_i32_0 = arith.constant 0 : i32
    %c0_i32_1 = arith.constant 0 : i32
    %c0_i32_2 = arith.constant 0 : i32
    return %c0_i32, %c0_i32_0, %c0_i32_1 : i32, i32, i32
  }
  func.func @transform_5(%arg0: i32) -> (i32, i32, i32) {
    %c0_i32 = arith.constant 0 : i32
    %c0_i32_0 = arith.constant 0 : i32
    %c0_i32_1 = arith.constant 0 : i32
    return %arg0, %c0_i32, %c0_i32_0 : i32, i32, i32
  }
  func.func @transform_6(%arg0: i32) -> (i32, i32, i32) {
    %c0_i32 = arith.constant 0 : i32
    %c0_i32_0 = arith.constant 0 : i32
    %c0_i32_1 = arith.constant 0 : i32
    return %arg0, %c0_i32, %c0_i32_0 : i32, i32, i32
  }
  func.func @transform_7(%arg0: i32) -> (i32, i32, i32) {
    %c0_i32 = arith.constant 0 : i32
    %c0_i32_0 = arith.constant 0 : i32
    %c0_i32_1 = arith.constant 0 : i32
    return %arg0, %c0_i32, %c0_i32_0 : i32, i32, i32
  }
  func.func @transform_8(%arg0: i32) -> (i32, i32, i32) {
    %c0_i32 = arith.constant 0 : i32
    %c0_i32_0 = arith.constant 0 : i32
    %c0_i32_1 = arith.constant 0 : i32
    return %arg0, %c0_i32, %c0_i32_0 : i32, i32, i32
  }
  func.func @transform_9(%arg0: i32) -> (i32, i32, i32) {
    %c0_i32 = arith.constant 0 : i32
    %c0_i32_0 = arith.constant 0 : i32
    %c0_i32_1 = arith.constant 0 : i32
    return %arg0, %c0_i32, %c0_i32_0 : i32, i32, i32
  }
  func.func @transform_10(%arg0: i32) -> (i32, i32, i32) {
    %c0_i32 = arith.constant 0 : i32
    %c0_i32_0 = arith.constant 0 : i32
    %c0_i32_1 = arith.constant 0 : i32
    return %arg0, %c0_i32, %c0_i32_0 : i32, i32, i32
  }
  func.func @transform_11(%arg0: i32) -> (i32, i32, i32) {
    %c0_i32 = arith.constant 0 : i32
    %c0_i32_0 = arith.constant 0 : i32
    %c0_i32_1 = arith.constant 0 : i32
    return %arg0, %c0_i32, %c0_i32_0 : i32, i32, i32
  }
  func.func @transform_12(%arg0: i32) -> (i32, i32, i32) {
    %c0_i32 = arith.constant 0 : i32
    %c0_i32_0 = arith.constant 0 : i32
    %c0_i32_1 = arith.constant 0 : i32
    return %arg0, %c0_i32, %c0_i32_0 : i32, i32, i32
  }
  func.func @transform_13(%arg0: i32) -> (i32, i32, i32) {
    %c0_i32 = arith.constant 0 : i32
    %c0_i32_0 = arith.constant 0 : i32
    %c0_i32_1 = arith.constant 0 : i32
    return %arg0, %c0_i32, %c0_i32_0 : i32, i32, i32
  }
  func.func @transform_14(%arg0: i32) -> (i32, i32, i32) {
    %c0_i32 = arith.constant 0 : i32
    %c0_i32_0 = arith.constant 0 : i32
    %c0_i32_1 = arith.constant 0 : i32
    return %arg0, %c0_i32, %c0_i32_0 : i32, i32, i32
  }
  func.func @transform_15(%arg0: i32) -> (i32, i32, i32) {
    %c0_i32 = arith.constant 0 : i32
    %c0_i32_0 = arith.constant 0 : i32
    %c0_i32_1 = arith.constant 0 : i32
    return %arg0, %c0_i32, %c0_i32_0 : i32, i32, i32
  }
  func.func @transform_16(%arg0: i32) -> (i32, i32, i32) {
    %c0_i32 = arith.constant 0 : i32
    %c0_i32_0 = arith.constant 0 : i32
    %c0_i32_1 = arith.constant 0 : i32
    return %arg0, %c0_i32, %c0_i32_0 : i32, i32, i32
  }
  func.func @transform_17(%arg0: i32) -> (i32, i32) {
    %c0_i32 = arith.constant 0 : i32
    %c0_i32_0 = arith.constant 0 : i32
    %c0_i32_1 = arith.constant 0 : i32
    return %c0_i32, %c0_i32_0 : i32, i32
  }
  func.func @transform_18(%arg0: i32) -> (i32, i32) {
    %c0_i32 = arith.constant 0 : i32
    %c0_i32_0 = arith.constant 0 : i32
    %c0_i32_1 = arith.constant 0 : i32
    return %c0_i32, %c0_i32_0 : i32, i32
  }
  func.func @transform_19(%arg0: i32) -> (i32, i32) {
    %c0_i32 = arith.constant 0 : i32
    %c0_i32_0 = arith.constant 0 : i32
    %c0_i32_1 = arith.constant 0 : i32
    return %c0_i32, %c0_i32_0 : i32, i32
  }
  func.func @transform_20(%arg0: i32) -> (i32, i32) {
    %c0_i32 = arith.constant 0 : i32
    %c0_i32_0 = arith.constant 0 : i32
    %c0_i32_1 = arith.constant 0 : i32
    return %c0_i32, %c0_i32_0 : i32, i32
  }
  func.func @transform_21(%arg0: i32) -> (i32, i32) {
    %c0_i32 = arith.constant 0 : i32
    %c0_i32_0 = arith.constant 0 : i32
    %c0_i32_1 = arith.constant 0 : i32
    return %c0_i32, %c0_i32_0 : i32, i32
  }
}

</mosaic_0001>

<bundles_post_ra>
// kernel: nezha_for_sequence_classification.1
= control target key start
LH: loop header
LB: loop body
LE: loop exit
PB: predicated region body
PF: predicated region fallthrough
CT: control target
= control target key end

     0   :  { %s10848_s0 = inlined_call_operand.vmem [shape: f32[16,128], index: 0, kind: input, shape index: {}]   ;;  %s10849_s1 = inlined_call_operand.vmem [shape: f32[1,128], index: 1, kind: input, shape index: {}]   ;;  %s10850_s2 = inlined_call_operand.vmem [shape: f32[1,128], index: 2, kind: input, shape index: {}]   ;;  %s10851_s3 = inlined_call_operand.vmem [shape: f32[2,8], index: 3, kind: input, shape index: {}]   ;;  %s10852_s4 = inlined_call_operand.vmem [shape: f32[8,8,64], index: 4, kind: input, shape index: {}]   ;;  %s10853_s5 = inlined_call_operand.hbm [shape: f32[2,128,384], index: 5, kind: input, shape index: {}]   ;;  %s10854_s6 = inlined_call_operand.vmem [shape: f32[2,1,384], index: 6, kind: input, shape index: {}]   ;;  %s10855_s7 = inlined_call_operand.hbm [shape: f32[2,128,128], index: 7, kind: input, shape index: {}]   ;;  %s10856_s8 = inlined_call_operand.vmem [shape: f32[2,1,128], index: 8, kind: input, shape index: {}]   ;;  %s10857_s9 = inlined_call_operand.vmem [shape: f32[2,1,128], index: 9, kind: input, shape index: {}]   ;;  %s10858_s10 = inlined_call_operand.vmem [shape: f32[2,1,128], index: 10, kind: input, shape index: {}]   ;;  %s10859_s11 = inlined_call_operand.hbm [shape: f32[2,128,256], index: 11, kind: input, shape index: {}]   ;;  %s10860_s12 = inlined_call_operand.vmem [shape: f32[2,1,256], index: 12, kind: input, shape index: {}]   ;;  %s10861_s13 = inlined_call_operand.hbm [shape: f32[2,256,128], index: 13, kind: input, shape index: {}]   ;;  %s10862_s14 = inlined_call_operand.vmem [shape: f32[2,1,128], index: 14, kind: input, shape index: {}]   ;;  %s10863_s15 = inlined_call_operand.vmem [shape: f32[2,1,128], index: 15, kind: input, shape index: {}]   ;;  %s10864_s16 = inlined_call_operand.vmem [shape: f32[2,1,128], index: 16, kind: input, shape index: {}]   ;;  %s10865_s17 = inlined_call_operand.vmem [shape: f32[128,128], index: 17, kind: input, shape index: {}]   ;;  %s10866_s18 = inlined_call_operand.vmem [shape: f32[1,128], index: 18, kind: input, shape index: {}]   ;;  %s10867_s19 = inlined_call_operand.vmem [shape: f32[128,128], index: 19, kind: input, shape index: {}]   ;;  %s10868_s20 = inlined_call_operand.vmem [shape: f32[1,128], index: 20, kind: input, shape index: {}]   ;;  %s10869_s21 = inlined_call_operand.hbm [shape: f32[2,128], index: 21, kind: output, shape index: {}]  }
   0x1   :  { %10884 = sst [smem:[#allocation20_spill]] %s10848_s0 }
   0x2   :  { %10885 = sst [smem:[#allocation21_spill]] %s10849_s1 }
   0x3   :  { %10886 = sst [smem:[#allocation22_spill]] %s10850_s2 }
   0x4   :  { %10887 = sst [smem:[#allocation23_spill]] %s10851_s3 }
   0x5   :  { %10888 = sst [smem:[#allocation24_spill]] %s10852_s4 }
   0x6   :  { %10889 = sst [smem:[#allocation25_spill]] %s10853_s5 }
   0x7   :  { %10890 = sst [smem:[#allocation26_spill]] %s10855_s7 }
   0x8   :  { %10891 = sst [smem:[#allocation27_spill]] %s10859_s11 }
   0x9   :  { %10892 = sst [smem:[#allocation28_spill]] %s10861_s13 }
   0xa   :  { %10893 = sst [smem:[#allocation29_spill]] %s10864_s16 }
   0xb   :  { %10894 = sst [smem:[#allocation30_spill]] %s10865_s17 }
   0xc   :  { %10895 = sst [smem:[#allocation31_spill]] %s10866_s18 }
   0xd   :  { %10896 = sst [smem:[#allocation32_spill]] %s10867_s19 }
   0xe   :  { %10897 = sst [smem:[#allocation33_spill]] %s10868_s20 }
   0xf   :  { %10898 = sst [smem:[#allocation34_spill]] %s10869_s21 }
  0x10   :  { %26 = vsyncpa [#allocation5], 0 }
  0x11   :  { %28 = vsyncpa [#allocation5 + $0x1], 0 }
  0x12   :  { %29 = vsyncpa [#allocation8], 0 }
  0x13   :  { %31 = vsyncpa [#allocation8 + $0x1], 0 }
  0x14   :  { %32 = vsyncpa [#allocation11], 0 }
  0x15   :  { %34 = vsyncpa [#allocation11 + $0x1], 0 }
  0x16   :  { %35 = vsyncpa [#allocation6], 0  ;;  %s9502_s2 = smov 0   ;;  %s9504_s25 = smov 0  }
  0x17   :  { %s9506_s26 = smov 0   ;;  %s9508_s27 = smov 0  }
  0x18 LB: > { %10899 = sst [smem:[#allocation17_spill]] %s9371_s26  ;;  %s9521_s3 = sadd.s32 4294967295, %s9375_s27   ;;  %s9375_s27 = sphi %s9508_s27, %s10931_s27   ;;  %s9371_s26 = sphi %s9506_s26, %s10933_s26   ;;  %s9367_s25 = sphi %s9504_s25, %s10935_s25   ;;  %s9363_s2 = sphi %s9502_s2, %s10934_s2  }
  0x19   : > { %s9524_s28 = sadd.s32 1, %s9375_s27   ;;  %s153_s0 = sadd.s32 1, %s9371_s26 }
  0x1a   : > { %10900 = sst [smem:[#allocation18_spill]] %s9524_s28  ;;  %s150_s29 = ssub.s32 %s9375_s27, %s9524_s28 }
  0x1b   : > { %p151_p0 = scmp.eq.s32.totalorder %s150_s29, 0  ;;  %p160_p1 = scmp.ne.s32.totalorder %s9371_s26, %s9367_s25 }
  0x1c   : > { %p161_p2 = scmp.eq.s32.totalorder %s9375_s27, 0  ;;  %p166_p3 = scmp.ne.s32.totalorder %s9367_s25, %s9363_s2 }
  0x1d   : > { %s9534_s4 = scalar_select %p151_p0, %s9371_s26, %s153_s0  }
  0x1e   : > { %p162_p4 = por %p161_p2, %p160_p1  ;;  %p167_p5 = scmp.eq.s32.totalorder %s9521_s3, 0 }
  0x1f   : > { %10901 = sst [smem:[#allocation19_spill]] %s9534_s4  ;;  %p9087_p6 = scmp.lt.s32.totalorder %s9375_s27, 2 }
  0x20   : > { %p9538_p7 = por %p167_p5, %p166_p3  ;;  %s9543_s5 = sand.u32 1, %s9371_s26  }
  0x21   : > { %p9545_p8 = pnand %p9087_p6, %p162_p4  ;;  %s636_s23 = sand.u32 1, %s9375_s27  }
  0x22   : > { %s10902_s30 = scalar_select %p9538_p7, 1, 0 }
  0x23   : > { %s7937_s1 = sshll.u32 %s9543_s5, 7  ;;  %s8077_s24 = sshll.u32 %s9375_s27, 11 }
  0x24   : > { %s640_s2 = scalar_lea.vmem [#allocation7], %s7937_s1  ;;  %s10904_s7 = sld [smem:[#allocation26_spill]] }
  0x25   : > { %s647_s29 = sshll.u32 %s640_s2, 4  ;;  %s9559_s26 = scalar_lea.sflag [#allocation8], %s636_s23  ;;  %s9557_s29 = int_to_ptr.vmem [resolvable:$true] %s647_s29 }
  0x26   : > { %p9565_p10 = pneg %p9545_p8 }
  0x2a   : > { %s9555_s28 = scalar_lea.hbm %s10904_s7, %s8077_s24  ;;  %s9188_s24 = scalar_lea.hbm %s10904_s7, 4096 }
  0x2b   : > { %s9183_s21 = scalar_lea.hbm %s9555_s28, 2048  ;;  %p9189_p13 = scmp.lt.u32.totalorder %s9555_s28, %s10904_s7 }
  0x2c   : > { %p9184_p9 = scmp.ne.s32.totalorder %s9555_s28, %s9183_s21  ;;  %p9190_p0 = scmp.lt.u32.totalorder %s9188_s24, %s9183_s21 }
  0x2d   : > { %p9192_p2 = scmp.lt.u32.totalorder %s9183_s21, %s9555_s28 }
  0x2e   : > { %p9186_p11 = pnand %p9565_p10, %p9184_p9  ;;  %p9191_p1 = por %p9190_p0, %p9189_p13 }
  0x30   : > { %p9187_p12 = pneg %p9186_p11  ;;  %p9193_p3 = por %p9192_p2, %p9191_p1 }
  0x32   : > { %p9194_p4 = pnand %p9193_p3, %p9187_p12 }
  0x34   : > { %9197 = shalt.err (!%p9194_p4)
}
  0x35   : > { %s9198_s23 = scalar_lea.vmem %s9557_s29, 2048  ;;  %s9377_s4 = smov [#allocation7]  }
  0x36   : > { %p9199_p5 = scmp.ne.s32.totalorder %s9557_s29, %s9198_s23  ;;  %s9203_s1 = sshll.u32 %s9377_s4, 4  ;;  %s9204_s1 = int_to_ptr.vmem [resolvable:$false] %s9203_s1 }
  0x37   : > { %s9205_s2 = scalar_lea.vmem %s9204_s1, 4096  ;;  %p9206_p11 = scmp.lt.s32.totalorder %s9557_s29, %s9204_s1 }
  0x38   : > { %p9201_p6 = pnand %p9199_p5, %p9565_p10  ;;  %p9207_p7 = scmp.lt.s32.totalorder %s9205_s2, %s9198_s23 }
  0x3a   : > { %p9202_p9 = pneg %p9201_p6  ;;  %p9208_p13 = por %p9207_p7, %p9206_p11 }
  0x3c   : > { %p9209_p0 = pnand %p9208_p13, %p9202_p9 }
  0x3e   : > { %9212 = shalt.err (!%p9209_p0)
}
  0x3f   : > { %s10881_s21 = smov 128   ;;  %s10882_s24 = smov 8  }
  0x40   : > { %9080 = dma.hbm_to_vmem [thread:$0]  (!%p9545_p8), %s9555_s28, 2048, %s9557_s29, %s9559_s26, %s10881_s21, %s10881_s21, %s10882_s24  }
  0x41   : > { %p7946_p7 = scmp.ge.s32.totalorder %s9375_s27, 1  ;;  %p740_p12 = scmp.lt.s32.totalorder %s9375_s27, 3 }
  0x42   : > { %s9058_s0 = smul.u32 384, %s9543_s5  ;;  %s10907_s7 = sld [smem:[#allocation25_spill]] }
  0x43   : > { %p9595_p1 = pnand %p7946_p7, %p740_p12  ;;  %s9059_s4 = smul.u32 6144, %s9375_s27 }
  0x44   : > { %s612_s19 = scalar_lea.vmem [#allocation4], %s9058_s0  ;;  %s609_s28 = scalar_lea.sflag [#allocation5], %s9543_s5 }
  0x45   : > { %s10906_s23 = scalar_select %p9595_p1, 1, 0 }
  0x46   : > { %s619_s17 = sshll.u32 %s612_s19, 4  ;;  %s9605_s17 = int_to_ptr.vmem [resolvable:$true] %s619_s17 }
  0x48   : > { %s9603_s18 = scalar_lea.hbm %s10907_s7, %s9059_s4  ;;  %s9218_s1 = scalar_lea.hbm %s10907_s7, 12288 }
  0x49   : > { %s9213_s29 = scalar_lea.hbm %s9603_s18, 6144  ;;  %p9219_p5 = scmp.lt.u32.totalorder %s9603_s18, %s10907_s7 }
  0x4a   : > { %p9214_p2 = scmp.ne.s32.totalorder %s9603_s18, %s9213_s29  ;;  %p9220_p6 = scmp.lt.u32.totalorder %s9218_s1, %s9213_s29 }
  0x4b   : > { %p9222_p11 = scmp.lt.u32.totalorder %s9213_s29, %s9603_s18 }
  0x4c   : > { %p9216_p3 = pnand %p9214_p2, %p9565_p10  ;;  %p9221_p9 = por %p9220_p6, %p9219_p5 }
  0x4e   : > { %p9217_p4 = pneg %p9216_p3  ;;  %p9223_p13 = por %p9222_p11, %p9221_p9 }
  0x50   : > { %p9224_p0 = pnand %p9223_p13, %p9217_p4 }
  0x52   : > { %9227 = shalt.err (!%p9224_p0)
}
  0x53   : > { %s9228_s19 = scalar_lea.vmem %s9605_s17, 6144  ;;  %s9380_s21 = smov [#allocation4]  }
  0x54   : > { %p9229_p7 = scmp.ne.s32.totalorder %s9605_s17, %s9228_s19  ;;  %s9233_s24 = sshll.u32 %s9380_s21, 4  ;;  %s9234_s24 = int_to_ptr.vmem [resolvable:$false] %s9233_s24 }
  0x55   : > { %s9235_s0 = scalar_lea.vmem %s9234_s24, 12288  ;;  %p9236_p3 = scmp.lt.s32.totalorder %s9605_s17, %s9234_s24 }
  0x56   : > { %p9231_p12 = pnand %p9229_p7, %p9565_p10  ;;  %p9237_p1 = scmp.lt.s32.totalorder %s9235_s0, %s9228_s19 }
  0x58   : > { %p9232_p2 = pneg %p9231_p12  ;;  %p9238_p5 = por %p9237_p1, %p9236_p3 }
  0x5a   : > { %p9239_p6 = pnand %p9238_p5, %p9232_p2 }
  0x5c   : > { %9242 = shalt.err (!%p9239_p6)
}
  0x5d   : > { %s9381_s29 = smov 384   ;;  %s9382_s1 = smov 24  }
  0x5e   : > { %9077 = dma.hbm_to_vmem [thread:$0]  (!%p9545_p8), %s9603_s18, 6144, %s9605_s17, %s609_s28, %s9381_s29, %s9381_s29, %s9382_s1  }
  0x5f   : > { %s7940_s4 = sshll.u32 %s9543_s5, 8  ;;  %s8078_s2 = sshll.u32 %s9375_s27, 12 }
  0x60   : > { %s10908_s11 = sld [smem:[#allocation27_spill]]  ;;  %s679_s0 = scalar_lea.vmem [#allocation9], %s7940_s4 }
  0x61   : > { %s686_s7 = sshll.u32 %s679_s0, 4  ;;  %s9642_s7 = int_to_ptr.vmem [resolvable:$true] %s686_s7 }
  0x66   : > { %s9638_s24 = scalar_lea.hbm %s10908_s11, %s8078_s2  ;;  %s9248_s28 = scalar_lea.hbm %s10908_s11, 8192 }
  0x67   : > { %s9243_s16 = scalar_lea.hbm %s9638_s24, 4096  ;;  %p9249_p11 = scmp.lt.u32.totalorder %s9638_s24, %s10908_s11 }
  0x68   : > { %p9244_p1 = scmp.ne.s32.totalorder %s9638_s24, %s9243_s16  ;;  %p9250_p13 = scmp.lt.u32.totalorder %s9248_s28, %s9243_s16 }
  0x69   : > { %p9252_p7 = scmp.lt.u32.totalorder %s9243_s16, %s9638_s24 }
  0x6a   : > { %p9246_p4 = pnand %p9244_p1, %p9565_p10  ;;  %p9251_p0 = por %p9250_p13, %p9249_p11 }
  0x6c   : > { %p9247_p9 = pneg %p9246_p4  ;;  %p9253_p12 = por %p9252_p7, %p9251_p0 }
  0x6e   : > { %p9254_p2 = pnand %p9253_p12, %p9247_p9 }
  0x70   : > { %9257 = shalt.err (!%p9254_p2)
}
  0x71   : > { %s9258_s19 = scalar_lea.vmem %s9642_s7, 4096  ;;  %s9383_s21 = smov [#allocation9]  }
  0x72   : > { %p9259_p3 = scmp.ne.s32.totalorder %s9642_s7, %s9258_s19  ;;  %s9263_s0 = sshll.u32 %s9383_s21, 4  ;;  %s9264_s0 = int_to_ptr.vmem [resolvable:$false] %s9263_s0 }
  0x73   : > { %s9265_s17 = scalar_lea.vmem %s9264_s0, 8192  ;;  %p9266_p1 = scmp.lt.s32.totalorder %s9642_s7, %s9264_s0 }
  0x74   : > { %p9261_p5 = pnand %p9259_p3, %p9565_p10  ;;  %p9267_p4 = scmp.lt.s32.totalorder %s9265_s17, %s9258_s19 }
  0x76   : > { %p9262_p6 = pneg %p9261_p5  ;;  %p9268_p11 = por %p9267_p4, %p9266_p1 }
  0x78   : > { %p9269_p13 = pnand %p9268_p11, %p9262_p6 }
  0x7a   : > { %9272 = shalt.err (!%p9269_p13)
}
  0x7b   : > { %s9384_s16 = smov 256   ;;  %s9385_s18 = smov 16  }
  0x7c   : > { %9083 = dma.hbm_to_vmem [thread:$0]  (!%p9545_p8), %s9638_s24, 4096, %s9642_s7, %s9559_s26, %s9384_s16, %s9384_s16, %s9385_s18  }
  0x7d   : > { %s10909_s13 = sld [smem:[#allocation28_spill]]  ;;  %s707_s19 = scalar_lea.vmem [#allocation10], %s7940_s4 }
  0x7e   : > { %s714_s21 = sshll.u32 %s707_s19, 4  ;;  %s704_s0 = scalar_lea.sflag [#allocation11], %s9543_s5  ;;  %s9675_s21 = int_to_ptr.vmem [resolvable:$true] %s714_s21 }
  0x83   : > { %s9671_s1 = scalar_lea.hbm %s10909_s13, %s8078_s2  ;;  %s9278_s27 = scalar_lea.hbm %s10909_s13, 8192 }
  0x84   : > { %s9273_s17 = scalar_lea.hbm %s9671_s1, 4096  ;;  %p9279_p12 = scmp.lt.u32.totalorder %s9671_s1, %s10909_s13 }
  0x85   : > { %p9274_p9 = scmp.ne.s32.totalorder %s9671_s1, %s9273_s17  ;;  %p9280_p2 = scmp.lt.u32.totalorder %s9278_s27, %s9273_s17 }
  0x86   : > { %p9282_p5 = scmp.lt.u32.totalorder %s9273_s17, %s9671_s1 }
  0x87   : > { %p9276_p0 = pnand %p9274_p9, %p9565_p10  ;;  %p9281_p3 = por %p9280_p2, %p9279_p12 }
  0x89   : > { %p9277_p7 = pneg %p9276_p0  ;;  %p9283_p6 = por %p9282_p5, %p9281_p3 }
  0x8b   : > { %p9284_p1 = pnand %p9283_p6, %p9277_p7 }
  0x8d   : > { %9287 = shalt.err (!%p9284_p1)
}
  0x8e   : > { %s9288_s4 = scalar_lea.vmem %s9675_s21, 4096  ;;  %s9386_s16 = smov [#allocation10]  }
  0x8f   : > { %p9289_p4 = scmp.ne.s32.totalorder %s9675_s21, %s9288_s4  ;;  %s9293_s18 = sshll.u32 %s9386_s16, 4  ;;  %s9294_s18 = int_to_ptr.vmem [resolvable:$false] %s9293_s18 }
  0x90   : > { %s9295_s28 = scalar_lea.vmem %s9294_s18, 8192  ;;  %p9296_p9 = scmp.lt.s32.totalorder %s9675_s21, %s9294_s18 }
  0x91   : > { %p9291_p11 = pnand %p9289_p4, %p9565_p10  ;;  %p9297_p0 = scmp.lt.s32.totalorder %s9295_s28, %s9288_s4 }
  0x93   : > { %p9292_p13 = pneg %p9291_p11  ;;  %p9298_p12 = por %p9297_p0, %p9296_p9 }
  0x95   : > { %p9299_p2 = pnand %p9298_p12, %p9292_p13 }
  0x97   : > { %9302 = shalt.err (!%p9299_p2)
}
  0x98   : > { %s10910_s29 = smov 8   ;;  %s10911_s19 = smov 128  }
  0x99   : > { %9086 = dma.hbm_to_vmem [thread:$0]  (!%p9545_p8), %s9671_s1, 4096, %s9675_s21, %s704_s0, %s10911_s19, %s10911_s19, %s10910_s29  }
  0x9a   : > { %p10912_p10 = scmp.ne.s32.totalorder %s10906_s23, 0 }
  0x9b   : > { %s746_s20 = sand.u32 (!%p10912_p10), 1, %s9367_s25   ;;  %p10913_p7 = scmp.ne.s32.totalorder (!%p10912_p10), %s10902_s30, 0 }
  0x9c   : > { %744 = sbr.rel (%p10912_p10) target bundleno = 5159 (0x1427), region = 104  ;;  %s747_s7 = scalar_lea.sflag (!%p10912_p10), [#allocation5], %s746_s20 }
  0x9d   : > { %s9060_s17 = smul.u32 (!%p10912_p10), 384, %s746_s20 }
  0x9f   : > { %s9707_s26 = scalar_lea.vmem (!%p10912_p10), [#allocation4], %s9060_s17 }
  0xa3   : > { %9346 = dma.done.wait (%p10913_p7), %s747_s7, 6144  }
  0xa4   : > { %9348 = vsyncadd (%p10913_p7), %s747_s7, 4294961152  ;;  %s755_s5 = sand.u32 1, %s9521_s3   ;;  %s7947_s22 = sshll.u32 %s746_s20, 7 }
  0xa5   : > { %s756_s1 = scalar_lea.sflag [#allocation8], %s755_s5  ;;  %s9714_s21 = scalar_lea.vmem [#allocation7], %s7947_s22 }
  0xa6   : > { %9350 = dma.done.wait (%p10913_p7), %s756_s1, 6144  }
  0xa7   : > { %9352 = vsyncadd (%p10913_p7), %s756_s1, 4294961152  ;;  %s7948_s23 = sshll.u32 %s746_s20, 8  ;;  %s774_s27 = scalar_lea.sflag [#allocation11], %s746_s20 }
  0xa8   : > { %s9720_s0 = scalar_lea.vmem [#allocation9], %s7948_s23  ;;  %s9722_s2 = scalar_lea.vmem [#allocation10], %s7948_s23 }
  0xa9   : > { %9354 = dma.done.wait (%p10913_p7), %s774_s27, 4096  }
  0xaa   : > { %9356 = vsyncadd (%p10913_p7), %s774_s27, 4294963200  ;;  %p872_p8 = scmp.lt.s32.totalorder %s9521_s3, 1  ;;  %s10914_s28 = sld [smem:[#allocation29_spill]] }
  0xab   : > { %p7951_p3 = scmp.ne.s32.totalorder %s9521_s3, 0 }
  0xac   : > { %s9730_s24 = scalar_select %p872_p8, %s9521_s3, 1 }
  0xad   : > { %901 = sbr.rel (%p7951_p3) target bundleno = 496 (0x1f0), region = 124  ;;  %s10915_s11 = sld [smem:[#allocation20_spill]] (!%p7951_p3) }
  0xae   : > { %s9061_s4 = smul.u32 3, %s9730_s24  ;;  %s7950_s23 = sshll.u32 %s9730_s24, 1 }
  0xaf   : > { %s9754_s13 = scalar_lea.vmem %s10860_s12, %s7950_s23  ;;  %s891_s30 = scalar_lea.vmem %s10862_s14, %s9730_s24 }
  0xb0   : > { %s9748_s1 = scalar_lea.vmem %s10854_s6, %s9061_s4  ;;  %s894_s20 = scalar_lea.vmem %s10863_s15, %s9730_s24 }
  0xb1   : > { %s897_s5 = scalar_lea.vmem %s10914_s28, %s9730_s24  ;;  %s10916_s7 = sld [smem:[#allocation21_spill]] (!%p7951_p3) }
  0xb2   : > { %s10917_s29 = sld [smem:[#allocation22_spill]] (!%p7951_p3) }
  0xb3   : > { %v902_v0 = vld [vmem:[%s10915_s11] sm:$0xff] (!%p7951_p3)  ;;  %v903_v1 = vld [vmem:[%s10915_s11 + $0x8] sm:$0xff] (!%p7951_p3) }
  0xb4   : > { %906 = vadd.xlane.f32.xlu0 %v902_v0 }
  0xb7   : > { %v7952_v17 = vld [vmem:[%s10916_s7] ss:$0 sm:$0xff] }
  0xb8   : > { %908 = vadd.xlane.f32.xlu0 %v903_v1  ;;  %v7953_v19 = vld [vmem:[%s10917_s29] ss:$0 sm:$0xff] }
 0x141   : > { %v907_v2 = vpop.xlane.xlu0 %906 }
 0x142   : > { %v911_v3 = vmul.f32 0.0078125, %v907_v2 }
 0x144   : > { %v913_v4 = vsub.f32 %v902_v0, %v911_v3 }
 0x145   : > { %v909_v5 = vpop.xlane.xlu0 %908 }
 0x146   : > { %v912_v6 = vmul.f32 0.0078125, %v909_v5  ;;  %v915_v7 = vmul.f32 %v913_v4, %v913_v4 }
 0x148   : > { %v914_v8 = vsub.f32 %v903_v1, %v912_v6  ;;  %917 = vadd.xlane.f32.xlu1 %v915_v7 }
 0x14a   : > { %v916_v9 = vmul.f32 %v914_v8, %v914_v8 }
 0x14c   : > { %919 = vadd.xlane.f32.xlu1 %v916_v9 }
 0x1d5   : > { %v918_v10 = vpop.xlane.xlu1 %917 }
 0x1d6   : > { %v921_v11 = vmul.f32 0.0078125, %v918_v10 }
 0x1d8   : > { %v923_v12 = vadd.f32 1e-12, %v921_v11 }
 0x1d9   : > { %v920_v13 = vpop.xlane.xlu1 %919 }
 0x1da   : > { %9133 = vrsqrt.f32 %v923_v12  ;;  %v922_v14 = vmul.f32 0.0078125, %v920_v13 }
 0x1dc   : > { %v924_v15 = vadd.f32 1e-12, %v922_v14 }
 0x1de   : > { %9135 = vrsqrt.f32 %v924_v15 }
 0x1e4   : > { %v9134_v16 = vpop.eup %9133 }
 0x1e5   : > { %v927_v18 = vmul.f32 %v9134_v16, %v913_v4 }
 0x1e7   : > { %v935_v20 = vmul.f32 %v7952_v17, %v927_v18 }
 0x1e8   : > { %v9136_v21 = vpop.eup %9135 }
 0x1e9   : > { %v943_v22 = vadd.f32 %v7953_v19, %v935_v20  ;;  %v928_v23 = vmul.f32 %v9136_v21, %v914_v8 }
 0x1eb   : > { %945 = vst [vmem:[#allocation2] sm:$0xff] %v943_v22  ;;  %v936_v24 = vmul.f32 %v7952_v17, %v928_v23 }
 0x1ed   : > { %v944_v25 = vadd.f32 %v7953_v19, %v936_v24 }
 0x1ef   : > { %946 = vst [vmem:[#allocation2 + $0x8] sm:$0xff] %v944_v25 }
 0x1f0 PF: > { %v958_v26 = vld [vmem:[%s9707_s26 + $0x8] sm:$0xff]  ;;  %v961_v27 = vld [vmem:[%s9707_s26 + $0x20] sm:$0xff]  ;;  %v960_v30 = vld [vmem:[%s9707_s26 + $0x18] sm:$0xff]  ;;  %v9387_v33 = vmov 0.0   ;;  %vm1226_vm0 = vcmask 523264   ;;  %vm9388_vm1 = vmmov 0   ;;  %s10921_s7 = scalar_lea.vmem %s10856_s8, %s9730_s24  ;;  %s10922_s18 = scalar_lea.vmem %s10857_s9, %s9730_s24 }
 0x1f1   : > { %v957_v28 = vld [vmem:[%s9707_s26] sm:$0xff]  ;;  %v8834_v29 = vpack.c.bf16 %v961_v27, %v958_v26  ;;  %v964_v31 = vld [vmem:[%s9707_s26 + $0x38] sm:$0xff]  ;;  %v967_v32 = vld [vmem:[%s9707_s26 + $0x50] sm:$0xff]  ;;  %1086 = vmatprep.mubr.f32.mxu0 %v9387_v33  ;;  %s9390_s19 = smov 64   ;;  %vm1836_vm2 = vcmask 1041409   ;;  %vm1839_vm3 = vcmask 1042434   ;;  %s10923_s4 = scalar_lea.vmem %s10858_s10, %s9730_s24 }
 0x1f2   : > { %v8836_v34 = vpack.c.bf16 %v960_v30, %v957_v28  ;;  %v8838_v35 = vpack.c.bf16 %v967_v32, %v964_v31  ;;  %v963_v36 = vld [vmem:[%s9707_s26 + $0x30] sm:$0xff]  ;;  %v966_v37 = vld [vmem:[%s9707_s26 + $0x48] sm:$0xff]  ;;  %v973_v39 = vld [vmem:[%s9707_s26 + $0x80] sm:$0xff]  ;;  %vm1842_vm4 = vcmask 1043459   ;;  %vm1845_vm5 = vcmask 1044484   ;;  %s10920_s16 = sld [smem:[#allocation23_spill]] }
 0x1f3   : > { %v970_v38 = vld [vmem:[%s9707_s26 + $0x68] sm:$0xff]  ;;  %8835 = vmatprep.subr.bf16.mxu0 %v8834_v29  ;;  %v8840_v40 = vpack.c.bf16 %v966_v37, %v963_v36  ;;  %v969_v42 = vld [vmem:[%s9707_s26 + $0x60] sm:$0xff]  ;;  %v972_v43 = vld [vmem:[%s9707_s26 + $0x78] sm:$0xff]  ;;  %vm1848_vm6 = vcmask 1045509   ;;  %vm1851_vm7 = vcmask 1046534   ;;  %vm1854_vm8 = vcmask 1047559  }
 0x1f4   : > { %8837 = vmatpush1.bf16.msra.mxu0 %v8836_v34  ;;  %v8842_v41 = vpack.c.bf16 %v973_v39, %v970_v38  ;;  %v976_v44 = vld [vmem:[%s9707_s26 + $0x98] sm:$0xff]  ;;  %v979_v45 = vld [vmem:[%s9707_s26 + $0xb0] sm:$0xff]  ;;  %v8844_v46 = vpack.c.bf16 %v972_v43, %v969_v42  ;;  %v978_v49 = vld [vmem:[%s9707_s26 + $0xa8] sm:$0xff]  ;;  %v9389_v43 = vmov 1966171168   ;;  %vm1937_vm9 = vcmask 64512  }
 0x1f5   : > { %8839 = vmatprep.subr.bf16.mxu0 %v8838_v35  ;;  %v8846_v47 = vpack.c.bf16 %v979_v45, %v976_v44  ;;  %v975_v48 = vld [vmem:[%s9707_s26 + $0x90] sm:$0xff]  ;;  %v982_v50 = vld [vmem:[%s9707_s26 + $0xc8] sm:$0xff]  ;;  %v985_v51 = vld [vmem:[%s9707_s26 + $0xe0] sm:$0xff]  ;;  %v1179_v44 = vunpack.c.l.s4 %v9389_v43  ;;  %vm4137_vm10 = vcmask 1048064   ;;  %p8070_p5 = scmp.ne.s32.totalorder %s9521_s3, 1 }
 0x1f6   : > { %v9800_v52 = vld [vmem:[#allocation2] sm:$0xff]  ;;  %v959_v53 = vld [vmem:[%s9707_s26 + $0x10] sm:$0xff]  ;;  %v962_v54 = vld [vmem:[%s9707_s26 + $0x28] sm:$0xff]  ;;  %v8848_v56 = vpack.c.bf16 %v978_v49, %v975_v48  ;;  %v8850_v60 = vpack.c.bf16 %v985_v51, %v982_v50  ;;  %s10925_s28 = sld [smem:[#allocation30_spill]] (!%p8070_p5)  ;;  %s10926_s27 = sld [smem:[#allocation32_spill]] (!%p8070_p5) }
 0x1f7   : > { %v965_v55 = vld [vmem:[%s9707_s26 + $0x40] sm:$0xff]  ;;  %8366 = vmatprep.mubr.f32.mxu1 %v9800_v52  ;;  %v8866_v58 = vpack.c.bf16 %v962_v54, %v959_v53  ;;  %v968_v59 = vld [vmem:[%s9707_s26 + $0x58] sm:$0xff]  ;;  %v971_v63 = vld [vmem:[%s9707_s26 + $0x70] sm:$0xff] }
 0x1f8   : > { %8841 = vmatpush1.bf16.msra.mxu0 %v8840_v40  ;;  %v981_v57 = vld [vmem:[%s9707_s26 + $0xc0] sm:$0xff]  ;;  %v984_v61 = vld [vmem:[%s9707_s26 + $0xd8] sm:$0xff]  ;;  %v8870_v62 = vpack.c.bf16 %v968_v59, %v965_v55  ;;  %v974_v0 = vld [vmem:[%s9707_s26 + $0x88] sm:$0xff]  ;;  %v1007_v40 = vlaneseq }
 0x1f9   : > { %8843 = vmatprep.subr.bf16.mxu0 %v8842_v41  ;;  %v988_v1 = vld [vmem:[%s9707_s26 + $0xf8] sm:$0xff]  ;;  %v991_v2 = vld [vmem:[%s9707_s26 + $0x110] sm:$0xff]  ;;  %8867 = vmatprep.subr.bf16.mxu1 %v8866_v58  ;;  %v8852_v3 = vpack.c.bf16 %v984_v61, %v981_v57  ;;  %v8874_v5 = vpack.c.bf16 %v974_v0, %v971_v63  ;;  %v990_v7 = vld [vmem:[%s9707_s26 + $0x108] sm:$0xff] }
 0x1fa   : > { %8869 = vmatpush3.bf16.msra.mxu1 %v8866_v58  ;;  %v987_v4 = vld [vmem:[%s9707_s26 + $0xf0] sm:$0xff]  ;;  %v8854_v6 = vpack.c.bf16 %v991_v2, %v988_v1  ;;  %v977_v8 = vld [vmem:[%s9707_s26 + $0xa0] sm:$0xff]  ;;  %v980_v9 = vld [vmem:[%s9707_s26 + $0xb8] sm:$0xff]  ;;  %v9857_v41 = vshrl.u32 %v1007_v40, 7 }
 0x1fb   : > { %8871 = vmatprep.subr.bf16.mxu1 %v8870_v62  ;;  %v994_v10 = vld [vmem:[%s9707_s26 + $0x128] sm:$0xff]  ;;  %v997_v11 = vld [vmem:[%s9707_s26 + $0x140] sm:$0xff]  ;;  %v8856_v12 = vpack.c.bf16 %v990_v7, %v987_v4  ;;  %v8878_v14 = vpack.c.bf16 %v980_v9, %v977_v8  ;;  %v996_v16 = vld [vmem:[%s9707_s26 + $0x138] sm:$0xff] }
 0x1fc   : > { %8845 = vmatpush1.bf16.msra.mxu0 %v8844_v46  ;;  %v993_v13 = vld [vmem:[%s9707_s26 + $0x120] sm:$0xff]  ;;  %v8858_v15 = vpack.c.bf16 %v997_v11, %v994_v10  ;;  %v983_v17 = vld [vmem:[%s9707_s26 + $0xd0] sm:$0xff]  ;;  %v986_v18 = vld [vmem:[%s9707_s26 + $0xe8] sm:$0xff]  ;;  %v9860_v42 = vsub.s32 0, %v9857_v41  ;;  %v1013_v53 = vsub.s32 1, %v9857_v41 }
 0x1fd   : > { %8847 = vmatprep.subr.bf16.mxu0 %v8846_v47  ;;  %v1000_v19 = vld [vmem:[%s9707_s26 + $0x158] sm:$0xff]  ;;  %v1003_v20 = vld [vmem:[%s9707_s26 + $0x170] sm:$0xff]  ;;  %v8860_v21 = vpack.c.bf16 %v996_v16, %v993_v13  ;;  %v8882_v23 = vpack.c.bf16 %v986_v18, %v983_v17  ;;  %v1002_v25 = vld [vmem:[%s9707_s26 + $0x168] sm:$0xff]  ;;  %v1180_v47 = vunpack.c.0.s8 %v1179_v44 }
 0x1fe   : > { %8873 = vmatpush3.bf16.msra.mxu1 %v8870_v62  ;;  %v999_v22 = vld [vmem:[%s9707_s26 + $0x150] sm:$0xff]  ;;  %v8862_v24 = vpack.c.bf16 %v1003_v20, %v1000_v19  ;;  %v989_v26 = vld [vmem:[%s9707_s26 + $0x100] sm:$0xff]  ;;  %v992_v27 = vld [vmem:[%s9707_s26 + $0x118] sm:$0xff]  ;;  %v1017_v20 = vsub.s32 2, %v9857_v41 }
 0x1ff   : > { %8875 = vmatprep.subr.bf16.mxu1 %v8874_v5  ;;  %v8864_v28 = vpack.c.bf16 %v1002_v25, %v999_v22  ;;  %v8886_v29 = vpack.c.bf16 %v992_v27, %v989_v26  ;;  %v995_v30 = vld [vmem:[%s9707_s26 + $0x130] sm:$0xff]  ;;  %v998_v31 = vld [vmem:[%s9707_s26 + $0x148] sm:$0xff]  ;;  %v1001_v34 = vld [vmem:[%s9707_s26 + $0x160] sm:$0xff]  ;;  %v9871_v50 = vsub.s32 %v1180_v47, %v9857_v41 }
 0x200   : > { %8849 = vmatpush1.bf16.msra.mxu0 %v8848_v56  ;;  %v8890_v32 = vpack.c.bf16 %v998_v31, %v995_v30  ;;  %v1004_v35 = vld [vmem:[%s9707_s26 + $0x178] sm:$0xff]  ;;  %v948_v37 = vld [vmem:[#allocation2 + $0x8] sm:$0xff]  ;;  %s10918_s26 = sld [smem:[#allocation24_spill]]  ;;  %v9863_v45 = vld [vmem:[%s9748_s1] sm:$0x7]  ;;  %s10927_s1 = smov (!%p8070_p5), %s10926_s27 }
 0x201   : > { %8851 = vmatprep.subr.bf16.mxu0 %v8850_v60  ;;  %v8894_v36 = vpack.c.bf16 %v1004_v35, %v1001_v34  ;;  %v9867_v46 = vrot.slane %v9863_v45, %v9860_v42  ;;  %v9890_v60 = vrot.slane %v9863_v45, %v1013_v53 }
 0x202   : > { %8877 = vmatpush3.bf16.msra.mxu1 %v8874_v5 }
 0x203   : > { %8879 = vmatprep.subr.bf16.mxu1 %v8878_v14 }
 0x204   : > { %8853 = vmatpush1.bf16.msra.mxu0 %v8852_v3 }
 0x205   : > { %8855 = vmatprep.subr.bf16.mxu0 %v8854_v6 }
 0x206   : > { %8881 = vmatpush3.bf16.msra.mxu1 %v8878_v14  ;;  %s10919_s22 = smov %s10918_s26  ;;  %v9840_v38 = vld [vmem:[%s10918_s26] sm:$0xff] }
 0x207   : > { %8883 = vmatprep.subr.bf16.mxu1 %v8882_v23  ;;  %v9850_v39 = vld [vmem:[%s10919_s22 + $0x30] sm:$0xff]  ;;  %v9885_v59 = vld [vmem:[%s10919_s22 + $0x8] sm:$0xff]  ;;  %v9922_v6 = vld [vmem:[%s10919_s22 + $0x18] sm:$0xff] }
 0x208   : > { %8857 = vmatpush1.bf16.msra.mxu0 %v8856_v12  ;;  %v9905_v1 = vld [vmem:[%s10919_s22 + $0x10] sm:$0xff]  ;;  %v9941_v9 = vld [vmem:[%s10919_s22 + $0x20] sm:$0xff]  ;;  %v9959_v12 = vld [vmem:[%s10919_s22 + $0x28] sm:$0xff] }
 0x209   : > { %8859 = vmatprep.subr.bf16.mxu0 %v8858_v15  ;;  %v9973_v14 = vld [vmem:[%s10919_s22 + $0x38] sm:$0xff] }
 0x20a   : > { %8885 = vmatpush3.bf16.msra.mxu1 %v8882_v23  ;;  %v9999_v23 = vrot.slane %v9863_v45, %v1017_v20 }
 0x20b   : > { %8887 = vmatprep.subr.bf16.mxu1 %v8886_v29 }
 0x20c   : > { %8861 = vmatpush1.bf16.msra.mxu0 %v8860_v21 }
 0x20d   : > { %8863 = vmatprep.subr.bf16.mxu0 %v8862_v24 }
 0x20e   : > { %8889 = vmatpush3.bf16.msra.mxu1 %v8886_v29 }
 0x20f   : > { %8891 = vmatprep.subr.bf16.mxu1 %v8890_v32 }
 0x210   : > { %8865 = vmatpush1.bf16.msra.mxu0 %v8864_v28 }
 0x211   : > { %8369 = vmatprep.subr.mxu0 %v9387_v33 }
 0x212   : > { %8893 = vmatpush3.bf16.msra.mxu1 %v8890_v32 }
 0x213   : > { %1087 = vmatmul.mubr.f32.vlgmr.msra.gmra.mrb[0].mxu0 %v9800_v52  ;;  %8895 = vmatprep.subr.bf16.mxu1 %v8894_v36 }
 0x214   : > { %1092 = vmatprep.mubr.f32.mxu0 %v9387_v33 }
 0x216   : > { %8897 = vmatpush3.bf16.msra.mxu1 %v8894_v36 }
 0x217   : > { %8399 = vmatprep.subr.mxu1 %v9387_v33  ;;  %1093 = vmatmul.mubr.f32.gmra.mrb[2].mxu0 %v948_v37 }
 0x218   : > { %8371 = vmatprep.mubr.msk.f32.mxu0 %vm9388_vm1, %v9387_v33 }
 0x219   : > { %8367 = vmatmul.mubr.f32.vlgmr.msra.gmra.mrb[0].mxu1 %v948_v37  ;;  %8370 = vmatpush3.xpose.msk.msra.mxu0 %vm1226_vm0, %v9840_v38 }
 0x21a   : > { %8374 = vmatprep.subr.mxu0 %v9387_v33  ;;  %8401 = vmatprep.mubr.msk.f32.mxu1 %vm9388_vm1, %v9387_v33 }
 0x21f   : > { %8400 = vmatpush3.xpose.msk.msra.mxu1 %vm1226_vm0, %v9850_v39 }
 0x220   : > { %8409 = vmatprep.subr.mxu1 %v9387_v33 }
 0x2e6   : > { %v1088_v48 = vpop.f32.mrb[0].mxu0 }
 0x2e7   : > { %v1089_v49 = vadd.f32 %v1088_v48, %v9867_v46  ;;  %v1090_v51 = vpop.f32.mrb[1].mxu0 }
 0x2e8   : > { %v1091_v2 = vadd.f32 %v1090_v51, %v9890_v60 }
 0x2e9   : > { %v9873_v52 = vmul.f32 0.125, %v1089_v49 }
 0x2ea   : > { %v9991_v18 = vpop.f32.mrb[2].mxu0 }
 0x2eb   : > { %v1177_v54 = vcombine.high %v9873_v52, %v9873_v52  ;;  %v1184_v55 = vrot.slane %v9873_v52, %v9871_v50  ;;  %v9993_v19 = vpop.f32.mrb[3].mxu0 }
 0x2ec   : > { %v8368_v21 = vpop.f32.mrb[0].mxu1 }
 0x2ed   : > { %v1191_v56 = vrot.slane %v1177_v54, %v9871_v50  ;;  %v1192_v57 = vcombine.high %v1184_v55, %v1184_v55  ;;  %v1200_v58 = vrot.slane %v1184_v55, %v9871_v50  ;;  %v9996_v22 = vpop.f32.mrb[1].mxu1  ;;  %v10002_v24 = vadd.f32 %v8368_v21, %v9999_v23 }
 0x2ef   : > { %v1207_v61 = vrot.slane %v1191_v56, %v9871_v50  ;;  %8372 = vmatmul.mubr.msk.f32.vlgmr.msra.gmra.mrb[4].mxu0 %vm1226_vm0, %v1200_v58  ;;  %v2674_v62 = vrot.slane %v1200_v58, %v9860_v42  ;;  %v1214_v63 = vrot.slane %v1192_v57, %v9871_v50  ;;  %v9917_v5 = vcombine.high %v1200_v58, %v1200_v58 }
 0x2f0   : > { %8375 = vmatpush3.xpose.msk.msra.mxu0 %vm1226_vm0, %v9885_v59  ;;  %8376 = vmatprep.mubr.msk.f32.mxu0 %vm9388_vm1, %v9387_v33  ;;  %v1193_v8 = vcombine.high %v1191_v56, %v1191_v56 }
 0x2f1   : > { %2675 = vrot.lane.b32.xlu1 %v2674_v62, %s9390_s19  ;;  %8379 = vmatprep.subr.mxu0 %v9387_v33  ;;  %v1223_v0 = vcombine.high %v1207_v61, %v1207_v61  ;;  %v2752_v3 = vrot.slane %v1214_v63, %v9860_v42  ;;  %v1224_v4 = vcombine.high %v1214_v63, %v1214_v63 }
 0x2f2   : > { %v2986_v10 = vrot.slane %v1207_v61, %v9860_v42  ;;  %v1221_v11 = vrot.slane %v1193_v8, %v9871_v50  ;;  %v2830_v21 = vrot.slane %v9917_v5, %v9860_v42 }
 0x2f3   : > { %8377 = vmatmul.mubr.msk.f32.vlgmr.msra.gmra.mrb[6].mxu0 %vm1226_vm0, %v1214_v63  ;;  %8402 = vmatmul.mubr.msk.f32.vlgmr.msra.gmra.mrb[2].mxu1 %vm1226_vm0, %v1223_v0  ;;  %v2908_v7 = vrot.slane %v1224_v4, %v9860_v42  ;;  %v3142_v15 = vrot.slane %v1223_v0, %v9860_v42 }
 0x2f4   : > { %8410 = vmatpush3.xpose.msk.msra.mxu1 %vm1226_vm0, %v1091_v2  ;;  %8380 = vmatpush3.xpose.msk.msra.mxu0 %vm1226_vm0, %v9905_v1  ;;  %v3064_v13 = vrot.slane %v1221_v11, %v9860_v42  ;;  %v1225_v16 = vcombine.high %v1221_v11, %v1221_v11 }
 0x2f5   : > { %2753 = vrot.lane.b32.xlu1 %v2752_v3, %s9390_s19  ;;  %8381 = vmatprep.mubr.msk.f32.mxu0 %vm9388_vm1, %v9387_v33 }
 0x2f6   : > { %8411 = vmatprep.mubr.msk.f32.mxu1 %vm9388_vm1, %v9387_v33  ;;  %8384 = vmatprep.subr.mxu0 %v9387_v33  ;;  %v3220_v17 = vrot.slane %v1225_v16, %v9860_v42 }
 0x2f7   : > { %8382 = vmatmul.mubr.msk.f32.vlgmr.msra.gmra.mrb[8].mxu0 %vm1226_vm0, %v9917_v5  ;;  %8412 = vmatmul.mubr.msk.f32.vlgmr.msra.gmra.mrb[4].mxu1 %vm1226_vm0, %v9873_v52 }
 0x2f8   : > { %8385 = vmatpush3.xpose.msk.msra.mxu0 %vm1226_vm0, %v9922_v6  ;;  %8386 = vmatprep.mubr.msk.f32.mxu0 %vm9388_vm1, %v9387_v33 }
 0x2f9   : > { %2909 = vrot.lane.b32.xlu1 %v2908_v7, %s9390_s19  ;;  %8389 = vmatprep.subr.mxu0 %v9387_v33 }
 0x2fa   : > { %8419 = vmatprep.subr.mxu1 %v9387_v33  ;;  %8421 = vmatprep.mubr.msk.f32.mxu1 %vm9388_vm1, %v9387_v33 }
 0x2fb   : > { %8387 = vmatmul.mubr.msk.f32.vlgmr.msra.gmra.mrb[10].mxu0 %vm1226_vm0, %v1224_v4  ;;  %8420 = vmatpush3.msra.mxu1 %v9885_v59  ;;  %v10013_v4 = vld [vmem:[%s10920_s16] ss:$0 sm:$0xff] }
 0x2fc   : > { %8390 = vmatpush3.xpose.msk.msra.mxu0 %vm1226_vm0, %v9941_v9  ;;  %8391 = vmatprep.mubr.msk.f32.mxu0 %vm9388_vm1, %v9387_v33 }
 0x2fd   : > { %2987 = vrot.lane.b32.xlu1 %v2986_v10, %s9390_s19  ;;  %8394 = vmatprep.subr.mxu0 %v9387_v33 }
 0x2fe   : > { %8429 = vmatprep.subr.mxu1 %v9387_v33 }
 0x2ff   : > { %8392 = vmatmul.mubr.msk.f32.vlgmr.msra.gmra.mrb[12].mxu0 %vm1226_vm0, %v1207_v61 }
 0x300   : > { %8395 = vmatpush3.xpose.msk.msra.mxu0 %vm1226_vm0, %v9959_v12  ;;  %8396 = vmatprep.mubr.msk.f32.mxu0 %vm9388_vm1, %v9387_v33 }
 0x301   : > { %3065 = vrot.lane.b32.xlu1 %v3064_v13, %s9390_s19  ;;  %8404 = vmatprep.subr.mxu0 %v9387_v33 }
 0x303   : > { %8397 = vmatmul.mubr.msk.f32.vlgmr.msra.gmra.mrb[14].mxu0 %vm1226_vm0, %v1221_v11 }
 0x304   : > { %8405 = vmatpush3.xpose.msk.msra.mxu0 %vm1226_vm0, %v9973_v14  ;;  %8406 = vmatprep.mubr.msk.f32.mxu0 %vm9388_vm1, %v9387_v33 }
 0x305   : > { %3143 = vrot.lane.b32.xlu1 %v3142_v15, %s9390_s19  ;;  %8414 = vmatprep.subr.mxu0 %v9387_v33 }
 0x307   : > { %8407 = vmatmul.mubr.msk.f32.vlgmr.msra.gmra.mrb[16].mxu0 %vm1226_vm0, %v1225_v16 }
 0x308   : > { %8415 = vmatpush3.msra.mxu0 %v9840_v38  ;;  %8416 = vmatprep.mubr.msk.f32.mxu0 %vm9388_vm1, %v9387_v33 }
 0x309   : > { %3221 = vrot.lane.b32.xlu1 %v3220_v17, %s9390_s19  ;;  %8424 = vmatprep.subr.mxu0 %v9387_v33 }
 0x30d   : > { %3297 = vrot.lane.b32.xlu1 %v1091_v2, %s9390_s19 }
 0x3c2   : > { %v1298_v25 = vpop.f32.mrb[4].mxu0 }
 0x3c3   : > { %v8373_v26 = vpop.f32.mrb[5].mxu0 }
 0x3c4   : > { %v2676_v26 = vpop.permute.xlu1 %2675 }
 0x3c6   : > { %v1373_v27 = vpop.f32.mrb[6].mxu0  ;;  %v1748_v28 = vpop.f32.mrb[2].mxu1 }
 0x3c7   : > { %v1835_v29 = vrot.slane %v1373_v27, 7  ;;  %v8378_v30 = vpop.f32.mrb[7].mxu0  ;;  %v8403_v31 = vpop.f32.mrb[3].mxu1  ;;  %v1850_v61 = vrot.slane %v1748_v28, 2 }
 0x3c8   : > { %v2754_v31 = vpop.permute.xlu1 %2753 }
 0x3c9   : > { %v1837_v32 = vsel %vm1836_vm2, %v1835_v29, %v1298_v25 }
 0x3ca   : > { %v1448_v34 = vpop.f32.mrb[8].mxu0  ;;  %v1928_v35 = vpop.f32.mrb[4].mxu1 }
 0x3cb   : > { %v1838_v36 = vrot.slane %v1448_v34, 6  ;;  %v8383_v37 = vpop.f32.mrb[9].mxu0  ;;  %v8413_v40 = vpop.f32.mrb[5].mxu1 }
 0x3cd   : > { %v1840_v43 = vsel %vm1839_vm3, %v1838_v36, %v1837_v32  ;;  %v2910_v36 = vpop.permute.xlu1 %2909 }
 0x3ce   : > { %v1523_v44 = vpop.f32.mrb[10].mxu0 }
 0x3cf   : > { %v1841_v45 = vrot.slane %v1523_v44, 5  ;;  %v8388_v47 = vpop.f32.mrb[11].mxu0 }
 0x3d1   : > { %v1843_v48 = vsel %vm1842_vm4, %v1841_v45, %v1840_v43  ;;  %v2988_v45 = vpop.permute.xlu1 %2987 }
 0x3d2   : > { %v1598_v49 = vpop.f32.mrb[12].mxu0 }
 0x3d3   : > { %v1844_v51 = vrot.slane %v1598_v49, 4  ;;  %v8393_v54 = vpop.f32.mrb[13].mxu0 }
 0x3d5   : > { %v1846_v55 = vsel %vm1845_vm5, %v1844_v51, %v1843_v48  ;;  %v10058_v48 = vadd.f32 %v9996_v22, %v9999_v23  ;;  %v3066_v22 = vpop.permute.xlu1 %3065 }
 0x3d6   : > { %v1673_v56 = vpop.f32.mrb[14].mxu0 }
 0x3d7   : > { %v1847_v57 = vrot.slane %v1673_v56, 3  ;;  %v8398_v58 = vpop.f32.mrb[15].mxu0 }
 0x3d9   : > { %v1849_v62 = vsel %vm1848_vm6, %v1847_v57, %v1846_v55  ;;  %v3144_v23 = vpop.permute.xlu1 %3143 }
 0x3da   : > { %v1823_v63 = vpop.f32.mrb[16].mxu0  ;;  %v1852_v0 = vsel %vm1851_vm7, %v1850_v61, %v1849_v62 }
 0x3db   : > { %v1853_v2 = vrot.slane %v1823_v63, 1  ;;  %v8408_v3 = vpop.f32.mrb[17].mxu0 }
 0x3dd   : > { %v1855_v7 = vsel %vm1854_vm8, %v1853_v2, %v1852_v0  ;;  %v3222_v54 = vpop.permute.xlu1 %3221 }
 0x3de   : > { %v1929_v8 = vadd.f32 %v1928_v35, %v1855_v7 }
 0x3e0   : > { %v1936_v10 = vadd.f32 %v10013_v4, %v1929_v8 }
 0x3e1   : > { %v3298_v55 = vpop.permute.xlu1 %3297 }
 0x3e2   : > { %v1938_v11 = vsel %vm1937_vm9, %v1936_v10, -inf }
 0x3e3   : > { %1939 = vmax.xlane.f32.xlu0 %v1938_v11 }
 0x470   : > { %v1940_v13 = vpop.xlane.xlu0 %1939 }
 0x471   : > { %v1941_v15 = vsub.f32 %v1936_v10, %v1940_v13 }
 0x473   : > { %v1942_v16 = vmul.f32 1.442695, %v1941_v15 }
 0x475   : > { %9137 = vpow2.f32 %v1942_v16 }
 0x47f   : > { %v9138_v17 = vpop.eup %9137 }
 0x480   : > { %v1944_v20 = vsel %vm1937_vm9, %v9138_v17, 0.0 }
 0x481   : > { %1945 = vadd.xlane.f32.xlu0 %v1944_v20 }
 0x497   : > { %2831 = vrot.lane.b32.xlu0 %v2830_v21, %s9390_s19 }
 0x49b   : > { %3295 = vrot.lane.b32.xlu0 %v9873_v52, %s9390_s19 }
 0x50e   : > { %v1946_v25 = vpop.xlane.xlu0 %1945 }
 0x50f   : > { %9139 = vrcp.f32 %v1946_v25 }
 0x512   : > { %v2832_v51 = vpop.permute.xlu0 %2831 }
 0x516   : > { %v3296_v56 = vpop.permute.xlu0 %3295 }
 0x519   : > { %v9140_v27 = vpop.eup %9139 }
 0x51a   : > { %v1948_v28 = vmul.f32 %v9140_v27, %v9138_v17 }
 0x51c   : > { %v1957_v29 = vrot.slane %v1948_v28, %v9871_v50  ;;  %v1950_v30 = vcombine.high %v1948_v28, %v1948_v28 }
 0x51e   : > { %v1973_v32 = vrot.slane %v1957_v29, %v9871_v50  ;;  %v1965_v34 = vcombine.high %v1957_v29, %v1957_v29  ;;  %v1964_v35 = vrot.slane %v1950_v30, %v9871_v50 }
 0x520   : > { %8417 = vmatmul.mubr.msk.f32.vlgmr.msra.gmra.mrb[18].mxu0 %vm1937_vm9, %v1973_v32  ;;  %v1987_v5 = vrot.slane %v1965_v34, %v9871_v50  ;;  %v1995_v52 = vcombine.high %v1973_v32, %v1973_v32  ;;  %v1966_v40 = vcombine.high %v1964_v35, %v1964_v35  ;;  %v1980_v43 = vrot.slane %v1964_v35, %v9871_v50 }
 0x521   : > { %8425 = vmatpush3.msra.mxu0 %v9905_v1  ;;  %8426 = vmatprep.mubr.msk.f32.mxu0 %vm9388_vm1, %v9387_v33 }
 0x522   : > { %8422 = vmatmul.mubr.msk.f32.vlgmr.msra.gmra.mrb[6].mxu1 %vm1937_vm9, %v1987_v5  ;;  %8434 = vmatprep.subr.mxu0 %v9387_v33  ;;  %v1997_v37 = vcombine.high %v1987_v5, %v1987_v5  ;;  %v1994_v44 = vrot.slane %v1966_v40, %v9871_v50  ;;  %v1996_v47 = vcombine.high %v1980_v43, %v1980_v43 }
 0x523   : > { %8430 = vmatpush3.msra.mxu1 %v9922_v6  ;;  %8431 = vmatprep.mubr.msk.f32.mxu1 %vm9388_vm1, %v9387_v33 }
 0x524   : > { %8427 = vmatmul.mubr.msk.f32.vlgmr.msra.gmra.mrb[20].mxu0 %vm1937_vm9, %v1995_v52  ;;  %8439 = vmatprep.subr.mxu1 %v9387_v33  ;;  %v1998_v49 = vcombine.high %v1994_v44, %v1994_v44 }
 0x525   : > { %8435 = vmatpush3.msra.mxu0 %v9941_v9  ;;  %8436 = vmatprep.mubr.msk.f32.mxu0 %vm9388_vm1, %v9387_v33 }
 0x526   : > { %8432 = vmatmul.mubr.msk.f32.vlgmr.msra.gmra.mrb[8].mxu1 %vm1937_vm9, %v1997_v37  ;;  %8444 = vmatprep.subr.mxu0 %v9387_v33 }
 0x527   : > { %8440 = vmatpush3.msra.mxu1 %v9959_v12  ;;  %8441 = vmatprep.mubr.msk.f32.mxu1 %vm9388_vm1, %v9387_v33 }
 0x528   : > { %8437 = vmatmul.mubr.msk.f32.vlgmr.msra.gmra.mrb[22].mxu0 %vm1937_vm9, %v1980_v43  ;;  %8449 = vmatprep.subr.mxu1 %v9387_v33 }
 0x529   : > { %8445 = vmatpush3.msra.mxu0 %v9850_v39  ;;  %8446 = vmatprep.mubr.msk.f32.mxu0 %vm9388_vm1, %v9387_v33 }
 0x52a   : > { %8442 = vmatmul.mubr.msk.f32.vlgmr.msra.gmra.mrb[10].mxu1 %vm1937_vm9, %v1994_v44  ;;  %8454 = vmatprep.subr.mxu0 %v9387_v33 }
 0x52b   : > { %8450 = vmatpush3.msra.mxu1 %v9973_v14  ;;  %8451 = vmatprep.mubr.msk.f32.mxu1 %vm9388_vm1, %v9387_v33 }
 0x52c   : > { %8447 = vmatmul.mubr.msk.f32.vlgmr.msra.gmra.mrb[24].mxu0 %vm1937_vm9, %v1996_v47  ;;  %8459 = vmatprep.subr.mxu1 %v9387_v33 }
 0x52d   : > { %8455 = vmatpush3.msra.mxu0 %v10058_v48  ;;  %8456 = vmatprep.mubr.msk.f32.mxu0 %vm9388_vm1, %v9387_v33 }
 0x52e   : > { %8452 = vmatmul.mubr.msk.f32.vlgmr.msra.gmra.mrb[12].mxu1 %vm1937_vm9, %v1998_v49  ;;  %8464 = vmatprep.subr.mxu0 %v9387_v33 }
 0x52f   : > { %8461 = vmatprep.mubr.msk.f32.mxu1 %vm9388_vm1, %v9387_v33 }
 0x530   : > { %8457 = vmatmul.mubr.msk.f32.vlgmr.msra.gmra.mrb[26].mxu0 %vm1937_vm9, %v1948_v28 }
 0x531   : > { %8466 = vmatprep.mubr.msk.f32.mxu0 %vm9388_vm1, %v9387_v33 }
 0x532   : > { %8460 = vmatpush3.xpose.msk.msra.mxu1 %vm1226_vm0, %v9840_v38 }
 0x533   : > { %8469 = vmatprep.subr.mxu1 %v9387_v33 }
 0x534   : > { %8465 = vmatpush3.xpose.msk.msra.mxu0 %vm1226_vm0, %v9885_v59 }
 0x535   : > { %8462 = vmatmul.mubr.msk.f32.vlgmr.msra.gmra.mrb[14].mxu1 %vm1226_vm0, %v2676_v26  ;;  %8474 = vmatprep.subr.mxu0 %v9387_v33 }
 0x536   : > { %8470 = vmatpush3.xpose.msk.msra.mxu1 %vm1226_vm0, %v9905_v1  ;;  %8471 = vmatprep.mubr.msk.f32.mxu1 %vm9388_vm1, %v9387_v33 }
 0x537   : > { %8467 = vmatmul.mubr.msk.f32.vlgmr.msra.gmra.mrb[28].mxu0 %vm1226_vm0, %v2754_v31  ;;  %8479 = vmatprep.subr.mxu1 %v9387_v33 }
 0x538   : > { %8475 = vmatpush3.xpose.msk.msra.mxu0 %vm1226_vm0, %v9922_v6  ;;  %8476 = vmatprep.mubr.msk.f32.mxu0 %vm9388_vm1, %v9387_v33 }
 0x539   : > { %8472 = vmatmul.mubr.msk.f32.vlgmr.msra.gmra.mrb[16].mxu1 %vm1226_vm0, %v2832_v51  ;;  %8484 = vmatprep.subr.mxu0 %v9387_v33 }
 0x53a   : > { %8480 = vmatpush3.xpose.msk.msra.mxu1 %vm1226_vm0, %v9941_v9  ;;  %8481 = vmatprep.mubr.msk.f32.mxu1 %vm9388_vm1, %v9387_v33 }
 0x53b   : > { %8477 = vmatmul.mubr.msk.f32.vlgmr.msra.gmra.mrb[30].mxu0 %vm1226_vm0, %v2910_v36  ;;  %8489 = vmatprep.subr.mxu1 %v9387_v33 }
 0x53c   : > { %8485 = vmatpush3.xpose.msk.msra.mxu0 %vm1226_vm0, %v9959_v12  ;;  %8486 = vmatprep.mubr.msk.f32.mxu0 %vm9388_vm1, %v9387_v33 }
 0x53d   : > { %8482 = vmatmul.mubr.msk.f32.vlgmr.msra.gmra.mrb[18].mxu1 %vm1226_vm0, %v2988_v45  ;;  %8494 = vmatprep.subr.mxu0 %v9387_v33 }
 0x53e   : > { %8490 = vmatpush3.xpose.msk.msra.mxu1 %vm1226_vm0, %v9850_v39  ;;  %8491 = vmatprep.mubr.msk.f32.mxu1 %vm9388_vm1, %v9387_v33 }
 0x53f   : > { %8487 = vmatmul.mubr.msk.f32.vlgmr.msra.gmra.mrb[32].mxu0 %vm1226_vm0, %v3066_v22  ;;  %8499 = vmatprep.subr.mxu1 %v9387_v33 }
 0x540   : > { %8495 = vmatpush3.xpose.msk.msra.mxu0 %vm1226_vm0, %v9973_v14  ;;  %8496 = vmatprep.mubr.msk.f32.mxu0 %vm9388_vm1, %v9387_v33 }
 0x541   : > { %8492 = vmatmul.mubr.msk.f32.vlgmr.msra.gmra.mrb[20].mxu1 %vm1226_vm0, %v3144_v23  ;;  %8504 = vmatprep.subr.mxu0 %v9387_v33 }
 0x542   : > { %8500 = vmatpush3.xpose.msk.msra.mxu1 %vm1226_vm0, %v3298_v55  ;;  %8501 = vmatprep.mubr.msk.f32.mxu1 %vm9388_vm1, %v9387_v33 }
 0x543   : > { %8497 = vmatmul.mubr.msk.f32.vlgmr.msra.gmra.mrb[34].mxu0 %vm1226_vm0, %v3222_v54  ;;  %8509 = vmatprep.subr.mxu1 %v9387_v33 }
 0x544   : > { %8505 = vmatpush3.msra.mxu0 %v9840_v38  ;;  %8506 = vmatprep.mubr.msk.f32.mxu0 %vm9388_vm1, %v9387_v33 }
 0x545   : > { %8502 = vmatmul.mubr.msk.f32.vlgmr.msra.gmra.mrb[22].mxu1 %vm1226_vm0, %v3296_v56  ;;  %8514 = vmatprep.subr.mxu0 %v9387_v33 }
 0x546   : > { %8510 = vmatpush3.msra.mxu1 %v9885_v59  ;;  %8511 = vmatprep.mubr.msk.f32.mxu1 %vm9388_vm1, %v9387_v33 }
 0x547   : > { %8519 = vmatprep.subr.mxu1 %v9387_v33 }
 0x5f3   : > { %v2067_v57 = vpop.f32.mrb[18].mxu0 }
 0x5f4   : > { %v8418_v58 = vpop.f32.mrb[19].mxu0 }
 0x5f5   : > { %v2139_v61 = vpop.f32.mrb[6].mxu1 }
 0x5f6   : > { %v2583_v62 = vrot.slane %v2139_v61, 7  ;;  %v8423_v63 = vpop.f32.mrb[7].mxu1 }
 0x5f7   : > { %v2211_v0 = vpop.f32.mrb[20].mxu0 }
 0x5f8   : > { %v2584_v2 = vsel %vm1836_vm2, %v2583_v62, %v2067_v57  ;;  %v2585_v3 = vrot.slane %v2211_v0, 6  ;;  %v8428_v7 = vpop.f32.mrb[21].mxu0 }
 0x5f9   : > { %v2283_v8 = vpop.f32.mrb[8].mxu1 }
 0x5fa   : > { %v2586_v10 = vsel %vm1839_vm3, %v2585_v3, %v2584_v2  ;;  %v2587_v11 = vrot.slane %v2283_v8, 5  ;;  %v8433_v13 = vpop.f32.mrb[9].mxu1 }
 0x5fb   : > { %v2355_v15 = vpop.f32.mrb[22].mxu0 }
 0x5fc   : > { %v2588_v16 = vsel %vm1842_vm4, %v2587_v11, %v2586_v10  ;;  %v2589_v17 = vrot.slane %v2355_v15, 4  ;;  %v8438_v20 = vpop.f32.mrb[23].mxu0 }
 0x5fd   : > { %v2427_v21 = vpop.f32.mrb[10].mxu1 }
 0x5fe   : > { %v2590_v25 = vsel %vm1845_vm5, %v2589_v17, %v2588_v16  ;;  %v2591_v26 = vrot.slane %v2427_v21, 3  ;;  %v8443_v27 = vpop.f32.mrb[11].mxu1 }
 0x5ff   : > { %v2499_v28 = vpop.f32.mrb[24].mxu0 }
 0x600   : > { %v2592_v29 = vsel %vm1848_vm6, %v2591_v26, %v2590_v25  ;;  %v2593_v30 = vrot.slane %v2499_v28, 2  ;;  %v8448_v31 = vpop.f32.mrb[25].mxu0 }
 0x601   : > { %v2571_v32 = vpop.f32.mrb[12].mxu1 }
 0x602   : > { %v2595_v34 = vrot.slane %v2571_v32, 1  ;;  %v8453_v5 = vpop.f32.mrb[13].mxu1  ;;  %v2594_v35 = vsel %vm1851_vm7, %v2593_v30, %v2592_v29 }
 0x603   : > { %v2666_v52 = vpop.f32.mrb[26].mxu0 }
 0x604   : > { %v2596_v36 = vsel %vm1854_vm8, %v2595_v34, %v2594_v35  ;;  %v8458_v37 = vpop.f32.mrb[27].mxu0 }
 0x605   : > { %v2667_v40 = vadd.f32 %v2666_v52, %v2596_v36  ;;  %v1095_v52 = vadd.f32 %v9991_v18, %v9867_v46 }
 0x607   : > { %2670 = vst.msk [vmem:[#allocation3] sm:$0xff] %vm1226_vm0, %v2667_v40  ;;  %v10152_v36 = vmul.f32 0.125, %v1095_v52 }
 0x608   : > { %v2745_v43 = vpop.f32.mrb[14].mxu1 }
 0x609   : > { %v8463_v44 = vpop.f32.mrb[15].mxu1  ;;  %v4149_v37 = vrot.slane %v10152_v36, %v9871_v50  ;;  %v4142_v40 = vcombine.high %v10152_v36, %v10152_v36 }
 0x60a   : > { %v2823_v45 = vpop.f32.mrb[28].mxu0 }
 0x60b   : > { %v3307_v47 = vrot.slane %v2823_v45, 7  ;;  %v8468_v49 = vpop.f32.mrb[29].mxu0  ;;  %v10162_v44 = vrot.slane %v4149_v37, %v9871_v50  ;;  %v10173_v45 = vrot.slane %v4142_v40, %v9871_v50 }
 0x60c   : > { %v2901_v22 = vpop.f32.mrb[16].mxu1 }
 0x60d   : > { %v3308_v23 = vsel %vm1836_vm2, %v3307_v47, %v2745_v43  ;;  %v3309_v51 = vrot.slane %v2901_v22, 6  ;;  %v8473_v54 = vpop.f32.mrb[17].mxu1  ;;  %v10170_v18 = vcombine.high %v10162_v44, %v10162_v44  ;;  %v10180_v49 = vrot.slane %v10173_v45, %v9871_v50 }
 0x60e   : > { %v2979_v55 = vpop.f32.mrb[30].mxu0 }
 0x60f   : > { %v3310_v56 = vsel %vm1839_vm3, %v3309_v51, %v3308_v23  ;;  %v3311_v57 = vrot.slane %v2979_v55, 5  ;;  %v8478_v58 = vpop.f32.mrb[31].mxu0  ;;  %v5762_v47 = vrot.slane %v10170_v18, %v9860_v42  ;;  %v10187_v22 = vcombine.high %v10180_v49, %v10180_v49 }
 0x610   : > { %v3057_v61 = vpop.f32.mrb[18].mxu1  ;;  %v10195_v51 = vadd.f32 %v9993_v19, %v9890_v60 }
 0x611   : > { %v3312_v62 = vsel %vm1842_vm4, %v3311_v57, %v3310_v56  ;;  %v3313_v63 = vrot.slane %v3057_v61, 4  ;;  %v8483_v0 = vpop.f32.mrb[19].mxu1  ;;  %v6074_v23 = vrot.slane %v10187_v22, %v9860_v42 }
 0x612   : > { %v3135_v2 = vpop.f32.mrb[32].mxu0 }
 0x613   : > { %v3314_v3 = vsel %vm1845_vm5, %v3313_v63, %v3312_v62  ;;  %v3315_v7 = vrot.slane %v3135_v2, 3  ;;  %v8488_v8 = vpop.f32.mrb[33].mxu0 }
 0x614   : > { %v3213_v10 = vpop.f32.mrb[20].mxu1 }
 0x615   : > { %v3316_v11 = vsel %vm1848_vm6, %v3315_v7, %v3314_v3  ;;  %v3317_v13 = vrot.slane %v3213_v10, 2  ;;  %v8493_v15 = vpop.f32.mrb[21].mxu1 }
 0x616   : > { %v3291_v16 = vpop.f32.mrb[34].mxu0 }
 0x617   : > { %v3319_v17 = vrot.slane %v3291_v16, 1  ;;  %v8498_v20 = vpop.f32.mrb[35].mxu0  ;;  %v3318_v21 = vsel %vm1851_vm7, %v3317_v13, %v3316_v11  ;;  %v4158_v13 = vcombine.high %v10173_v45, %v10173_v45 }
 0x618   : > { %v3392_v25 = vpop.f32.mrb[22].mxu1 }
 0x619   : > { %v3320_v26 = vsel %vm1854_vm8, %v3319_v17, %v3318_v21  ;;  %v8503_v27 = vpop.f32.mrb[23].mxu1  ;;  %v10287_v16 = vrot.slane %v4158_v13, %v9871_v50 }
 0x61a   : > { %v3393_v28 = vadd.f32 %v3392_v25, %v3320_v26 }
 0x61c   : > { %v3396_v29 = vadd.f32 %v10013_v4, %v3393_v28  ;;  %v4157_v4 = vcombine.high %v4149_v37, %v4149_v37 }
 0x61e   : > { %v3397_v30 = vsel %vm1937_vm9, %v3396_v29, -inf  ;;  %v10159_v43 = vrot.slane %v4157_v4, %v9871_v50 }
 0x61f   : > { %3398 = vmax.xlane.f32.xlu1 %v3397_v30 }
 0x620   : > { %v5684_v46 = vrot.slane %v10159_v43, %v9860_v42  ;;  %v10270_v15 = vcombine.high %v10159_v43, %v10159_v43 }
 0x6ac   : > { %v3399_v31 = vpop.xlane.xlu1 %3398 }
 0x6ad   : > { %v3400_v32 = vsub.f32 %v3396_v29, %v3399_v31 }
 0x6af   : > { %v3401_v34 = vmul.f32 1.442695, %v3400_v32 }
 0x6b1   : > { %9141 = vpow2.f32 %v3401_v34 }
 0x6bb   : > { %v9142_v5 = vpop.eup %9141 }
 0x6bc   : > { %v3403_v35 = vsel %vm1937_vm9, %v9142_v5, 0.0 }
 0x6bd   : > { %3404 = vadd.xlane.f32.xlu0 %v3403_v35 }
 0x6d3   : > { %4035 = vrot.lane.b32.xlu0 %v10058_v48, %s9390_s19  ;;  %v5918_v48 = vrot.slane %v10180_v49, %v9860_v42 }
 0x6d7   : > { %5685 = vrot.lane.b32.xlu0 %v5684_v46, %s9390_s19 }
 0x6db   : > { %5763 = vrot.lane.b32.xlu0 %v5762_v47, %s9390_s19 }
 0x6df   : > { %5919 = vrot.lane.b32.xlu0 %v5918_v48, %s9390_s19 }
 0x6e3   : > { %6075 = vrot.lane.b32.xlu0 %v6074_v23, %s9390_s19 }
 0x6e7   : > { %6229 = vrot.lane.b32.xlu0 %v10195_v51, %s9390_s19 }
 0x74a   : > { %v3405_v54 = vpop.xlane.xlu0 %3404 }
 0x74b   : > { %9143 = vrcp.f32 %v3405_v54 }
 0x74e   : > { %v4036_v10 = vpop.permute.xlu0 %4035 }
 0x755   : > { %v9144_v55 = vpop.eup %9143 }
 0x756   : > { %v3407_v56 = vmul.f32 %v9144_v55, %v9142_v5 }
 0x758   : > { %v3416_v57 = vrot.slane %v3407_v56, %v9871_v50  ;;  %v3409_v58 = vcombine.high %v3407_v56, %v3407_v56 }
 0x75a   : > { %v3432_v61 = vrot.slane %v3416_v57, %v9871_v50  ;;  %v3424_v62 = vcombine.high %v3416_v57, %v3416_v57  ;;  %v3423_v60 = vrot.slane %v3409_v58, %v9871_v50 }
 0x75c   : > { %8507 = vmatmul.mubr.msk.f32.vlgmr.msra.gmra.mrb[36].mxu0 %vm1937_vm9, %v3432_v61  ;;  %v3446_v63 = vrot.slane %v3424_v62, %v9871_v50  ;;  %v3454_v19 = vcombine.high %v3432_v61, %v3432_v61  ;;  %v3425_v2 = vcombine.high %v3423_v60, %v3423_v60  ;;  %v3439_v3 = vrot.slane %v3423_v60, %v9871_v50 }
 0x75d   : > { %8515 = vmatpush3.msra.mxu0 %v9905_v1  ;;  %8516 = vmatprep.mubr.msk.f32.mxu0 %vm9388_vm1, %v9387_v33 }
 0x75e   : > { %8512 = vmatmul.mubr.msk.f32.vlgmr.msra.gmra.mrb[24].mxu1 %vm1937_vm9, %v3446_v63  ;;  %8524 = vmatprep.subr.mxu0 %v9387_v33  ;;  %v3456_v0 = vcombine.high %v3446_v63, %v3446_v63  ;;  %v3453_v7 = vrot.slane %v3425_v2, %v9871_v50  ;;  %v3455_v8 = vcombine.high %v3439_v3, %v3439_v3 }
 0x75f   : > { %8520 = vmatpush3.msra.mxu1 %v9922_v6  ;;  %8521 = vmatprep.mubr.msk.f32.mxu1 %vm9388_vm1, %v9387_v33 }
 0x760   : > { %8517 = vmatmul.mubr.msk.f32.vlgmr.msra.gmra.mrb[38].mxu0 %vm1937_vm9, %v3454_v19  ;;  %8529 = vmatprep.subr.mxu1 %v9387_v33  ;;  %v3457_v11 = vcombine.high %v3453_v7, %v3453_v7 }
 0x761   : > { %8525 = vmatpush3.msra.mxu0 %v9941_v9  ;;  %8526 = vmatprep.mubr.msk.f32.mxu0 %vm9388_vm1, %v9387_v33 }
 0x762   : > { %8522 = vmatmul.mubr.msk.f32.vlgmr.msra.gmra.mrb[26].mxu1 %vm1937_vm9, %v3456_v0  ;;  %8534 = vmatprep.subr.mxu0 %v9387_v33 }
 0x763   : > { %8530 = vmatpush3.msra.mxu1 %v9959_v12  ;;  %8531 = vmatprep.mubr.msk.f32.mxu1 %vm9388_vm1, %v9387_v33 }
 0x764   : > { %8527 = vmatmul.mubr.msk.f32.vlgmr.msra.gmra.mrb[40].mxu0 %vm1937_vm9, %v3439_v3  ;;  %8539 = vmatprep.subr.mxu1 %v9387_v33 }
 0x765   : > { %8535 = vmatpush3.msra.mxu0 %v9850_v39  ;;  %8536 = vmatprep.mubr.msk.f32.mxu0 %vm9388_vm1, %v9387_v33 }
 0x766   : > { %8532 = vmatmul.mubr.msk.f32.vlgmr.msra.gmra.mrb[28].mxu1 %vm1937_vm9, %v3453_v7  ;;  %8544 = vmatprep.subr.mxu0 %v9387_v33 }
 0x767   : > { %8540 = vmatpush3.msra.mxu1 %v9973_v14  ;;  %8541 = vmatprep.mubr.msk.f32.mxu1 %vm9388_vm1, %v9387_v33 }
 0x768   : > { %8537 = vmatmul.mubr.msk.f32.vlgmr.msra.gmra.mrb[42].mxu0 %vm1937_vm9, %v3455_v8  ;;  %8549 = vmatprep.subr.mxu1 %v9387_v33 }
 0x769   : > { %8545 = vmatpush3.msra.mxu0 %v4036_v10  ;;  %8546 = vmatprep.mubr.msk.f32.mxu0 %vm9388_vm1, %v9387_v33 }
 0x76a   : > { %8542 = vmatmul.mubr.msk.f32.vlgmr.msra.gmra.mrb[30].mxu1 %vm1937_vm9, %v3457_v11  ;;  %8554 = vmatprep.subr.mxu0 %v9387_v33 }
 0x76b   : > { %8551 = vmatprep.mubr.msk.f32.mxu1 %vm9388_vm1, %v9387_v33 }
 0x76c   : > { %8547 = vmatmul.mubr.msk.f32.vlgmr.msra.gmra.mrb[44].mxu0 %vm1937_vm9, %v3407_v56 }
 0x76d   : > { %8556 = vmatprep.mubr.msk.f32.mxu0 %vm9388_vm1, %v9387_v33 }
 0x76e   : > { %8550 = vmatpush3.xpose.msk.msra.mxu1 %vm1226_vm0, %v9840_v38 }
 0x76f   : > { %8559 = vmatprep.subr.mxu1 %v9387_v33 }
 0x770   : > { %8555 = vmatpush3.xpose.msk.msra.mxu0 %vm1226_vm0, %v9885_v59 }
 0x771   : > { %8552 = vmatmul.mubr.msk.f32.vlgmr.msra.gmra.mrb[32].mxu1 %vm1226_vm0, %v10162_v44  ;;  %8564 = vmatprep.subr.mxu0 %v9387_v33 }
 0x772   : > { %8560 = vmatpush3.xpose.msk.msra.mxu1 %vm1226_vm0, %v9905_v1  ;;  %8561 = vmatprep.mubr.msk.f32.mxu1 %vm9388_vm1, %v9387_v33 }
 0x773   : > { %8557 = vmatmul.mubr.msk.f32.vlgmr.msra.gmra.mrb[46].mxu0 %vm1226_vm0, %v10159_v43  ;;  %8569 = vmatprep.subr.mxu1 %v9387_v33 }
 0x774   : > { %8565 = vmatpush3.xpose.msk.msra.mxu0 %vm1226_vm0, %v9922_v6  ;;  %8566 = vmatprep.mubr.msk.f32.mxu0 %vm9388_vm1, %v9387_v33 }
 0x775   : > { %8562 = vmatmul.mubr.msk.f32.vlgmr.msra.gmra.mrb[34].mxu1 %vm1226_vm0, %v10170_v18  ;;  %8574 = vmatprep.subr.mxu0 %v9387_v33 }
 0x776   : > { %8570 = vmatpush3.xpose.msk.msra.mxu1 %vm1226_vm0, %v9941_v9  ;;  %8571 = vmatprep.mubr.msk.f32.mxu1 %vm9388_vm1, %v9387_v33 }
 0x777   : > { %8567 = vmatmul.mubr.msk.f32.vlgmr.msra.gmra.mrb[48].mxu0 %vm1226_vm0, %v10270_v15  ;;  %8579 = vmatprep.subr.mxu1 %v9387_v33 }
 0x778   : > { %8575 = vmatpush3.xpose.msk.msra.mxu0 %vm1226_vm0, %v9959_v12  ;;  %8576 = vmatprep.mubr.msk.f32.mxu0 %vm9388_vm1, %v9387_v33 }
 0x779   : > { %8572 = vmatmul.mubr.msk.f32.vlgmr.msra.gmra.mrb[36].mxu1 %vm1226_vm0, %v10180_v49  ;;  %8584 = vmatprep.subr.mxu0 %v9387_v33 }
 0x77a   : > { %8580 = vmatpush3.xpose.msk.msra.mxu1 %vm1226_vm0, %v9850_v39  ;;  %8581 = vmatprep.mubr.msk.f32.mxu1 %vm9388_vm1, %v9387_v33  ;;  %v10305_v39 = vcombine.high %v10287_v16, %v10287_v16 }
 0x77b   : > { %8577 = vmatmul.mubr.msk.f32.vlgmr.msra.gmra.mrb[50].mxu0 %vm1226_vm0, %v10287_v16  ;;  %8589 = vmatprep.subr.mxu1 %v9387_v33 }
 0x77c   : > { %8585 = vmatpush3.xpose.msk.msra.mxu0 %vm1226_vm0, %v9973_v14  ;;  %8586 = vmatprep.mubr.msk.f32.mxu0 %vm9388_vm1, %v9387_v33 }
 0x77d   : > { %8582 = vmatmul.mubr.msk.f32.vlgmr.msra.gmra.mrb[38].mxu1 %vm1226_vm0, %v10187_v22  ;;  %8594 = vmatprep.subr.mxu0 %v9387_v33 }
 0x77e   : > { %8590 = vmatpush3.xpose.msk.msra.mxu1 %vm1226_vm0, %v10195_v51  ;;  %8591 = vmatprep.mubr.msk.f32.mxu1 %vm9388_vm1, %v9387_v33 }
 0x77f   : > { %8587 = vmatmul.mubr.msk.f32.vlgmr.msra.gmra.mrb[52].mxu0 %vm1226_vm0, %v10305_v39  ;;  %8599 = vmatprep.subr.mxu1 %v9387_v33 }
 0x780   : > { %8595 = vmatpush3.msra.mxu0 %v9840_v38  ;;  %8596 = vmatprep.mubr.msk.f32.mxu0 %vm9388_vm1, %v9387_v33 }
 0x781   : > { %8592 = vmatmul.mubr.msk.f32.vlgmr.msra.gmra.mrb[40].mxu1 %vm1226_vm0, %v10152_v36  ;;  %8604 = vmatprep.subr.mxu0 %v9387_v33 }
 0x782   : > { %8600 = vmatpush3.msra.mxu1 %v9885_v59  ;;  %8601 = vmatprep.mubr.msk.f32.mxu1 %vm9388_vm1, %v9387_v33 }
 0x783   : > { %8609 = vmatprep.subr.mxu1 %v9387_v33 }
 0x82f   : > { %v3526_v17 = vpop.f32.mrb[36].mxu0 }
 0x830   : > { %v8508_v20 = vpop.f32.mrb[37].mxu0 }
 0x831   : > { %v3598_v21 = vpop.f32.mrb[24].mxu1 }
 0x832   : > { %v4046_v25 = vrot.slane %v3598_v21, 7  ;;  %v8513_v38 = vpop.f32.mrb[25].mxu1 }
 0x833   : > { %v3670_v26 = vpop.f32.mrb[38].mxu0 }
 0x834   : > { %v4047_v27 = vsel %vm1836_vm2, %v4046_v25, %v3526_v17  ;;  %v4048_v28 = vrot.slane %v3670_v26, 6  ;;  %v8518_v29 = vpop.f32.mrb[39].mxu0 }
 0x835   : > { %v3742_v30 = vpop.f32.mrb[26].mxu1 }
 0x836   : > { %v4049_v31 = vsel %vm1839_vm3, %v4048_v28, %v4047_v27  ;;  %v4050_v32 = vrot.slane %v3742_v30, 5  ;;  %v8523_v59 = vpop.f32.mrb[27].mxu1 }
 0x837   : > { %v3814_v34 = vpop.f32.mrb[40].mxu0 }
 0x838   : > { %v4051_v5 = vsel %vm1842_vm4, %v4050_v32, %v4049_v31  ;;  %v4052_v35 = vrot.slane %v3814_v34, 4  ;;  %v8528_v52 = vpop.f32.mrb[41].mxu0 }
 0x839   : > { %v3886_v37 = vpop.f32.mrb[28].mxu1 }
 0x83a   : > { %v4053_v4 = vsel %vm1845_vm5, %v4052_v35, %v4051_v5  ;;  %v4054_v40 = vrot.slane %v3886_v37, 3  ;;  %v8533_v43 = vpop.f32.mrb[29].mxu1  ;;  %v10344_v37 = vld [vmem:[%s10920_s16 + $0x1] ss:$0 sm:$0xff] }
 0x83b   : > { %v3958_v46 = vpop.f32.mrb[42].mxu0 }
 0x83c   : > { %v4055_v18 = vsel %vm1848_vm6, %v4054_v40, %v4053_v4  ;;  %v4056_v45 = vrot.slane %v3958_v46, 2  ;;  %v8538_v47 = vpop.f32.mrb[43].mxu0 }
 0x83d   : > { %v4030_v49 = vpop.f32.mrb[30].mxu1 }
 0x83e   : > { %v4058_v48 = vrot.slane %v4030_v49, 1  ;;  %v8543_v22 = vpop.f32.mrb[31].mxu1  ;;  %v4057_v23 = vsel %vm1851_vm7, %v4056_v45, %v4055_v18 }
 0x83f   : > { %v4129_v51 = vpop.f32.mrb[44].mxu0  ;;  %v5840_v22 = vrot.slane %v10270_v15, %v9860_v42 }
 0x840   : > { %v4059_v54 = vsel %vm1854_vm8, %v4058_v48, %v4057_v23  ;;  %v8548_v55 = vpop.f32.mrb[45].mxu0  ;;  %v5606_v48 = vrot.slane %v10162_v44, %v9860_v42  ;;  %v5996_v23 = vrot.slane %v10287_v16, %v9860_v42 }
 0x841   : > { %v10332_v56 = vadd.f32 %v4129_v51, %v4059_v54  ;;  %v6152_v51 = vrot.slane %v10305_v39, %v9860_v42 }
 0x844   : > { %v4259_v57 = vpop.f32.mrb[32].mxu1 }
 0x845   : > { %v8553_v58 = vpop.f32.mrb[33].mxu1 }
 0x846   : > { %v4331_v61 = vpop.f32.mrb[46].mxu0 }
 0x847   : > { %v4775_v62 = vrot.slane %v4331_v61, 7  ;;  %v8558_v63 = vpop.f32.mrb[47].mxu0 }
 0x848   : > { %v4403_v60 = vpop.f32.mrb[34].mxu1 }
 0x849   : > { %v4776_v19 = vsel %vm1836_vm2, %v4775_v62, %v4259_v57  ;;  %v4777_v0 = vrot.slane %v4403_v60, 6  ;;  %v8563_v2 = vpop.f32.mrb[35].mxu1  ;;  %v10393_v60 = vld [vmem:[%s10919_s22 + $0x30] sm:$0xff] }
 0x84a   : > { %v4475_v3 = vpop.f32.mrb[48].mxu0 }
 0x84b   : > { %v4778_v7 = vsel %vm1839_vm3, %v4777_v0, %v4776_v19  ;;  %v4779_v8 = vrot.slane %v4475_v3, 5  ;;  %v8568_v10 = vpop.f32.mrb[49].mxu0  ;;  %v9170_v3 = vld [vmem:[%s10919_s22] sm:$0xff] }
 0x84c   : > { %v4547_v11 = vpop.f32.mrb[36].mxu1  ;;  %v10429_v10 = vld [vmem:[%s10919_s22 + $0x10] sm:$0xff] }
 0x84d   : > { %v4780_v13 = vsel %vm1842_vm4, %v4779_v8, %v4778_v7  ;;  %v4781_v17 = vrot.slane %v4547_v11, 4  ;;  %v8573_v20 = vpop.f32.mrb[37].mxu1  ;;  %v9171_v7 = vld [vmem:[%s10919_s22 + $0x8] sm:$0xff] }
 0x84e   : > { %v4619_v21 = vpop.f32.mrb[50].mxu0 }
 0x84f   : > { %v4782_v25 = vsel %vm1845_vm5, %v4781_v17, %v4780_v13  ;;  %v4783_v38 = vrot.slane %v4619_v21, 3  ;;  %v8578_v26 = vpop.f32.mrb[51].mxu0  ;;  %v10440_v13 = vld [vmem:[%s10919_s22 + $0x18] sm:$0xff]  ;;  %v10451_v17 = vld [vmem:[%s10919_s22 + $0x20] sm:$0xff]  ;;  %v10462_v21 = vld [vmem:[%s10919_s22 + $0x28] sm:$0xff] }
 0x850   : > { %v4691_v27 = vpop.f32.mrb[38].mxu1 }
 0x851   : > { %v4784_v28 = vsel %vm1848_vm6, %v4783_v38, %v4782_v25  ;;  %v4785_v29 = vrot.slane %v4691_v27, 2  ;;  %v8583_v30 = vpop.f32.mrb[39].mxu1  ;;  %v10479_v38 = vld [vmem:[%s10919_s22 + $0x38] sm:$0xff] }
 0x852   : > { %v4763_v31 = vpop.f32.mrb[52].mxu0 }
 0x853   : > { %v4787_v32 = vrot.slane %v4763_v31, 1  ;;  %v8588_v59 = vpop.f32.mrb[53].mxu0  ;;  %v4786_v34 = vsel %vm1851_vm7, %v4785_v29, %v4784_v28 }
 0x854   : > { %v4861_v5 = vpop.f32.mrb[40].mxu1 }
 0x855   : > { %v4788_v35 = vsel %vm1854_vm8, %v4787_v32, %v4786_v34  ;;  %v8593_v52 = vpop.f32.mrb[41].mxu1 }
 0x856   : > { %v4862_v4 = vadd.f32 %v4861_v5, %v4788_v35 }
 0x858   : > { %v4869_v40 = vadd.f32 %v10344_v37, %v4862_v4 }
 0x85a   : > { %v4870_v43 = vsel %vm1937_vm9, %v4869_v40, -inf }
 0x85b   : > { %4871 = vmax.xlane.f32.xlu1 %v4870_v43 }
 0x8e8   : > { %v4872_v46 = vpop.xlane.xlu1 %4871 }
 0x8e9   : > { %v4873_v18 = vsub.f32 %v4869_v40, %v4872_v46 }
 0x8eb   : > { %v4874_v45 = vmul.f32 1.442695, %v4873_v18 }
 0x8ed   : > { %9145 = vpow2.f32 %v4874_v45 }
 0x8f7   : > { %v9146_v47 = vpop.eup %9145 }
 0x8f8   : > { %v4876_v49 = vsel %vm1937_vm9, %v9146_v47, 0.0 }
 0x8f9   : > { %4877 = vadd.xlane.f32.xlu1 %v4876_v49 }
 0x90a   : > { %5607 = vrot.lane.b32.xlu1 %v5606_v48, %s9390_s19 }
 0x90e   : > { %5841 = vrot.lane.b32.xlu1 %v5840_v22, %s9390_s19 }
 0x912   : > { %5997 = vrot.lane.b32.xlu1 %v5996_v23, %s9390_s19 }
 0x916   : > { %6153 = vrot.lane.b32.xlu1 %v6152_v51, %s9390_s19 }
 0x91a   : > { %6227 = vrot.lane.b32.xlu1 %v10152_v36, %s9390_s19 }
 0x986   : > { %v4878_v44 = vpop.xlane.xlu1 %4877 }
 0x987   : > { %9147 = vrcp.f32 %v4878_v44 }
 0x98a   : > { %v5608_v19 = vpop.permute.xlu1 %5607 }
 0x991   : > { %v9148_v54 = vpop.eup %9147 }
 0x992   : > { %v4880_v55 = vmul.f32 %v9148_v54, %v9146_v47 }
 0x994   : > { %v4889_v15 = vrot.slane %v4880_v55, %v9871_v50  ;;  %v4882_v57 = vcombine.high %v4880_v55, %v4880_v55 }
 0x996   : > { %v4905_v58 = vrot.slane %v4889_v15, %v9871_v50  ;;  %v4897_v16 = vcombine.high %v4889_v15, %v4889_v15  ;;  %v4896_v39 = vrot.slane %v4882_v57, %v9871_v50 }
 0x998   : > { %8597 = vmatmul.mubr.msk.f32.vlgmr.msra.gmra.mrb[54].mxu0 %vm1937_vm9, %v4905_v58  ;;  %v4919_v61 = vrot.slane %v4897_v16, %v9871_v50  ;;  %v4927_v36 = vcombine.high %v4905_v58, %v4905_v58  ;;  %v4898_v63 = vcombine.high %v4896_v39, %v4896_v39 }
 0x999   : > { %8605 = vmatpush3.msra.mxu0 %v9905_v1  ;;  %8606 = vmatprep.mubr.msk.f32.mxu0 %vm9388_vm1, %v9387_v33  ;;  %v4912_v1 = vrot.slane %v4896_v39, %v9871_v50 }
 0x99a   : > { %8602 = vmatmul.mubr.msk.f32.vlgmr.msra.gmra.mrb[42].mxu1 %vm1937_vm9, %v4919_v61  ;;  %8614 = vmatprep.subr.mxu0 %v9387_v33  ;;  %v4929_v62 = vcombine.high %v4919_v61, %v4919_v61 }
 0x99b   : > { %8610 = vmatpush3.msra.mxu1 %v9922_v6  ;;  %8611 = vmatprep.mubr.msk.f32.mxu1 %vm9388_vm1, %v9387_v33  ;;  %v4926_v6 = vrot.slane %v4898_v63, %v9871_v50 }
 0x99c   : > { %8607 = vmatmul.mubr.msk.f32.vlgmr.msra.gmra.mrb[56].mxu0 %vm1937_vm9, %v4927_v36  ;;  %8619 = vmatprep.subr.mxu1 %v9387_v33 }
 0x99d   : > { %8615 = vmatpush3.msra.mxu0 %v9941_v9  ;;  %8616 = vmatprep.mubr.msk.f32.mxu0 %vm9388_vm1, %v9387_v33  ;;  %v5686_v9 = vpop.permute.xlu0 %5685  ;;  %v4930_v0 = vcombine.high %v4926_v6, %v4926_v6 }
 0x99e   : > { %8612 = vmatmul.mubr.msk.f32.vlgmr.msra.gmra.mrb[44].mxu1 %vm1937_vm9, %v4929_v62  ;;  %8624 = vmatprep.subr.mxu0 %v9387_v33 }
 0x99f   : > { %8620 = vmatpush3.msra.mxu1 %v9959_v12  ;;  %8621 = vmatprep.mubr.msk.f32.mxu1 %vm9388_vm1, %v9387_v33  ;;  %v4928_v12 = vcombine.high %v4912_v1, %v4912_v1 }
 0x9a0   : > { %8617 = vmatmul.mubr.msk.f32.vlgmr.msra.gmra.mrb[58].mxu0 %vm1937_vm9, %v4912_v1  ;;  %8629 = vmatprep.subr.mxu1 %v9387_v33 }
 0x9a1   : > { %8625 = vmatpush3.msra.mxu0 %v10393_v60  ;;  %8626 = vmatprep.mubr.msk.f32.mxu0 %vm9388_vm1, %v9387_v33  ;;  %v5764_v2 = vpop.permute.xlu0 %5763 }
 0x9a2   : > { %8622 = vmatmul.mubr.msk.f32.vlgmr.msra.gmra.mrb[46].mxu1 %vm1937_vm9, %v4926_v6  ;;  %8634 = vmatprep.subr.mxu0 %v9387_v33 }
 0x9a3   : > { %8630 = vmatpush3.msra.mxu1 %v9973_v14  ;;  %8631 = vmatprep.mubr.msk.f32.mxu1 %vm9388_vm1, %v9387_v33  ;;  %v5842_v14 = vpop.permute.xlu1 %5841 }
 0x9a4   : > { %8627 = vmatmul.mubr.msk.f32.vlgmr.msra.gmra.mrb[60].mxu0 %vm1937_vm9, %v4928_v12  ;;  %8639 = vmatprep.subr.mxu1 %v9387_v33 }
 0x9a5   : > { %8635 = vmatpush3.msra.mxu0 %v10002_v24  ;;  %8636 = vmatprep.mubr.msk.f32.mxu0 %vm9388_vm1, %v9387_v33  ;;  %v5920_v8 = vpop.permute.xlu0 %5919 }
 0x9a6   : > { %8632 = vmatmul.mubr.msk.f32.vlgmr.msra.gmra.mrb[48].mxu1 %vm1937_vm9, %v4930_v0  ;;  %8644 = vmatprep.subr.mxu0 %v9387_v33 }
 0x9a7   : > { %8641 = vmatprep.mubr.msk.f32.mxu1 %vm9388_vm1, %v9387_v33  ;;  %v5998_v11 = vpop.permute.xlu1 %5997 }
 0x9a8   : > { %8637 = vmatmul.mubr.msk.f32.vlgmr.msra.gmra.mrb[62].mxu0 %vm1937_vm9, %v4880_v55 }
 0x9a9   : > { %8646 = vmatprep.mubr.msk.f32.mxu0 %vm9388_vm1, %v9387_v33  ;;  %v6076_v20 = vpop.permute.xlu0 %6075 }
 0x9aa   : > { %8640 = vmatpush3.xpose.msk.msra.mxu1 %vm1226_vm0, %v9170_v3 }
 0x9ab   : > { %8649 = vmatprep.subr.mxu1 %v9387_v33  ;;  %v6154_v25 = vpop.permute.xlu1 %6153 }
 0x9ac   : > { %8645 = vmatpush3.xpose.msk.msra.mxu0 %vm1226_vm0, %v9171_v7 }
 0x9ad   : > { %8642 = vmatmul.mubr.msk.f32.vlgmr.msra.gmra.mrb[50].mxu1 %vm1226_vm0, %v5608_v19  ;;  %8654 = vmatprep.subr.mxu0 %v9387_v33  ;;  %v6230_v26 = vpop.permute.xlu0 %6229 }
 0x9ae   : > { %8650 = vmatpush3.xpose.msk.msra.mxu1 %vm1226_vm0, %v10429_v10  ;;  %8651 = vmatprep.mubr.msk.f32.mxu1 %vm9388_vm1, %v9387_v33 }
 0x9af   : > { %8647 = vmatmul.mubr.msk.f32.vlgmr.msra.gmra.mrb[64].mxu0 %vm1226_vm0, %v5686_v9  ;;  %8659 = vmatprep.subr.mxu1 %v9387_v33  ;;  %v6228_v27 = vpop.permute.xlu1 %6227 }
 0x9b0   : > { %8655 = vmatpush3.xpose.msk.msra.mxu0 %vm1226_vm0, %v10440_v13  ;;  %8656 = vmatprep.mubr.msk.f32.mxu0 %vm9388_vm1, %v9387_v33 }
 0x9b1   : > { %8652 = vmatmul.mubr.msk.f32.vlgmr.msra.gmra.mrb[52].mxu1 %vm1226_vm0, %v5764_v2  ;;  %8664 = vmatprep.subr.mxu0 %v9387_v33 }
 0x9b2   : > { %8660 = vmatpush3.xpose.msk.msra.mxu1 %vm1226_vm0, %v10451_v17  ;;  %8661 = vmatprep.mubr.msk.f32.mxu1 %vm9388_vm1, %v9387_v33 }
 0x9b3   : > { %8657 = vmatmul.mubr.msk.f32.vlgmr.msra.gmra.mrb[66].mxu0 %vm1226_vm0, %v5842_v14  ;;  %8669 = vmatprep.subr.mxu1 %v9387_v33 }
 0x9b4   : > { %8665 = vmatpush3.xpose.msk.msra.mxu0 %vm1226_vm0, %v10462_v21  ;;  %8666 = vmatprep.mubr.msk.f32.mxu0 %vm9388_vm1, %v9387_v33 }
 0x9b5   : > { %8662 = vmatmul.mubr.msk.f32.vlgmr.msra.gmra.mrb[54].mxu1 %vm1226_vm0, %v5920_v8  ;;  %8674 = vmatprep.subr.mxu0 %v9387_v33 }
 0x9b6   : > { %8670 = vmatpush3.xpose.msk.msra.mxu1 %vm1226_vm0, %v10393_v60  ;;  %8671 = vmatprep.mubr.msk.f32.mxu1 %vm9388_vm1, %v9387_v33 }
 0x9b7   : > { %8667 = vmatmul.mubr.msk.f32.vlgmr.msra.gmra.mrb[68].mxu0 %vm1226_vm0, %v5998_v11  ;;  %8679 = vmatprep.subr.mxu1 %v9387_v33 }
 0x9b8   : > { %8675 = vmatpush3.xpose.msk.msra.mxu0 %vm1226_vm0, %v10479_v38  ;;  %8676 = vmatprep.mubr.msk.f32.mxu0 %vm9388_vm1, %v9387_v33 }
 0x9b9   : > { %8672 = vmatmul.mubr.msk.f32.vlgmr.msra.gmra.mrb[56].mxu1 %vm1226_vm0, %v6076_v20  ;;  %8684 = vmatprep.subr.mxu0 %v9387_v33 }
 0x9ba   : > { %8680 = vmatpush3.xpose.msk.msra.mxu1 %vm1226_vm0, %v6230_v26  ;;  %8681 = vmatprep.mubr.msk.f32.mxu1 %vm9388_vm1, %v9387_v33 }
 0x9bb   : > { %8677 = vmatmul.mubr.msk.f32.vlgmr.msra.gmra.mrb[70].mxu0 %vm1226_vm0, %v6154_v25  ;;  %8689 = vmatprep.subr.mxu1 %v9387_v33 }
 0x9bc   : > { %8685 = vmatpush3.msra.mxu0 %v9170_v3  ;;  %8686 = vmatprep.mubr.msk.f32.mxu0 %vm9388_vm1, %v9387_v33 }
 0x9bd   : > { %8682 = vmatmul.mubr.msk.f32.vlgmr.msra.gmra.mrb[58].mxu1 %vm1226_vm0, %v6228_v27  ;;  %8694 = vmatprep.subr.mxu0 %v9387_v33 }
 0x9be   : > { %8690 = vmatpush3.msra.mxu1 %v9171_v7  ;;  %8691 = vmatprep.mubr.msk.f32.mxu1 %vm9388_vm1, %v9387_v33 }
 0x9bf   : > { %8699 = vmatprep.subr.mxu1 %v9387_v33 }
 0xa6b   : > { %v4999_v28 = vpop.f32.mrb[54].mxu0 }
 0xa6c   : > { %v8598_v29 = vpop.f32.mrb[55].mxu0 }
 0xa6d   : > { %v5071_v30 = vpop.f32.mrb[42].mxu1 }
 0xa6e   : > { %v5515_v31 = vrot.slane %v5071_v30, 7  ;;  %v8603_v32 = vpop.f32.mrb[43].mxu1 }
 0xa6f   : > { %v5143_v59 = vpop.f32.mrb[56].mxu0 }
 0xa70   : > { %v5516_v34 = vsel %vm1836_vm2, %v5515_v31, %v4999_v28  ;;  %v5517_v5 = vrot.slane %v5143_v59, 6  ;;  %v8608_v35 = vpop.f32.mrb[57].mxu0 }
 0xa71   : > { %v5215_v52 = vpop.f32.mrb[44].mxu1 }
 0xa72   : > { %v5518_v4 = vsel %vm1839_vm3, %v5517_v5, %v5516_v34  ;;  %v5519_v40 = vrot.slane %v5215_v52, 5  ;;  %v8613_v43 = vpop.f32.mrb[45].mxu1 }
 0xa73   : > { %v5287_v46 = vpop.f32.mrb[58].mxu0 }
 0xa74   : > { %v5520_v18 = vsel %vm1842_vm4, %v5519_v40, %v5518_v4  ;;  %v5521_v45 = vrot.slane %v5287_v46, 4  ;;  %v8618_v47 = vpop.f32.mrb[59].mxu0 }
 0xa75   : > { %v5359_v49 = vpop.f32.mrb[46].mxu1 }
 0xa76   : > { %v5522_v48 = vsel %vm1845_vm5, %v5521_v45, %v5520_v18  ;;  %v5523_v22 = vrot.slane %v5359_v49, 3  ;;  %v8623_v23 = vpop.f32.mrb[47].mxu1 }
 0xa77   : > { %v5431_v51 = vpop.f32.mrb[60].mxu0 }
 0xa78   : > { %v5524_v44 = vsel %vm1848_vm6, %v5523_v22, %v5522_v48  ;;  %v5525_v54 = vrot.slane %v5431_v51, 2  ;;  %v8628_v55 = vpop.f32.mrb[61].mxu0 }
 0xa79   : > { %v5503_v15 = vpop.f32.mrb[48].mxu1 }
 0xa7a   : > { %v5527_v57 = vrot.slane %v5503_v15, 1  ;;  %v8633_v58 = vpop.f32.mrb[49].mxu1  ;;  %v5526_v16 = vsel %vm1851_vm7, %v5525_v54, %v5524_v44 }
 0xa7b   : > { %v5598_v61 = vpop.f32.mrb[62].mxu0 }
 0xa7c   : > { %v5528_v39 = vsel %vm1854_vm8, %v5527_v57, %v5526_v16  ;;  %v8638_v36 = vpop.f32.mrb[63].mxu0 }
 0xa7d   : > { %v5599_v62 = vadd.f32 %v5598_v61, %v5528_v39 }
 0xa7f   : > { %5602 = vst.msk [vmem:[#allocation3 + $0x8] sm:$0xff] %vm1226_vm0, %v5599_v62 }
 0xa80   : > { %v5677_v63 = vpop.f32.mrb[50].mxu1 }
 0xa81   : > { %v8643_v1 = vpop.f32.mrb[51].mxu1 }
 0xa82   : > { %v5755_v6 = vpop.f32.mrb[64].mxu0  ;;  %v7074_v1 = vld [vmem:[%s9714_s21 + $0x10] sm:$0xff] }
 0xa83   : > { %v6239_v9 = vrot.slane %v5755_v6, 7  ;;  %v8648_v12 = vpop.f32.mrb[65].mxu0 }
 0xa84   : > { %v5833_v19 = vpop.f32.mrb[52].mxu1 }
 0xa85   : > { %v6240_v0 = vsel %vm1836_vm2, %v6239_v9, %v5677_v63  ;;  %v6241_v2 = vrot.slane %v5833_v19, 6  ;;  %v8653_v14 = vpop.f32.mrb[53].mxu1  ;;  %v7073_v63 = vld [vmem:[%s9714_s21 + $0x8] sm:$0xff]  ;;  %v7075_v9 = vld [vmem:[%s9714_s21 + $0x18] sm:$0xff]  ;;  %v7076_v19 = vld [vmem:[%s9714_s21 + $0x20] sm:$0xff] }
 0xa86   : > { %v5911_v3 = vpop.f32.mrb[66].mxu0  ;;  %v8902_v12 = vpack.c.bf16 %v7075_v9, %v7074_v1  ;;  %v7078_v14 = vld [vmem:[%s9714_s21 + $0x30] sm:$0xff]  ;;  %v9177_v9 = vld [vmem:[#allocation2 + $0x8] sm:$0xff] }
 0xa87   : > { %v6242_v7 = vsel %vm1839_vm3, %v6241_v2, %v6240_v0  ;;  %v6243_v8 = vrot.slane %v5911_v3, 5  ;;  %v8658_v11 = vpop.f32.mrb[67].mxu0  ;;  %v7077_v0 = vld [vmem:[%s9714_s21 + $0x28] sm:$0xff]  ;;  %v7079_v3 = vld [vmem:[%s9714_s21 + $0x38] sm:$0xff] }
 0xa88   : > { %v5989_v20 = vpop.f32.mrb[54].mxu1  ;;  %v8906_v2 = vpack.c.bf16 %v7077_v0, %v7076_v19  ;;  %v7081_v11 = vld [vmem:[%s9714_s21 + $0x48] sm:$0xff]  ;;  %v9178_v19 = vld [vmem:[#allocation2] sm:$0xff] }
 0xa89   : > { %v6244_v25 = vsel %vm1842_vm4, %v6243_v8, %v6242_v7  ;;  %v6245_v26 = vrot.slane %v5989_v20, 4  ;;  %v8663_v27 = vpop.f32.mrb[55].mxu1  ;;  %v8910_v7 = vpack.c.bf16 %v7079_v3, %v7078_v14  ;;  %v7080_v8 = vld [vmem:[%s9714_s21 + $0x40] sm:$0xff]  ;;  %v7216_v14 = vld [vmem:[%s9720_s0 + $0x18] sm:$0xff] }
 0xa8a   : > { %v6067_v28 = vpop.f32.mrb[68].mxu0  ;;  %v8914_v20 = vpack.c.bf16 %v7081_v11, %v7080_v8  ;;  %v7213_v3 = vld [vmem:[%s9720_s0] sm:$0xff]  ;;  %v7215_v8 = vld [vmem:[%s9720_s0 + $0x10] sm:$0xff]  ;;  %v7218_v11 = vld [vmem:[%s9720_s0 + $0x28] sm:$0xff] }
 0xa8b   : > { %v6246_v29 = vsel %vm1845_vm5, %v6245_v26, %v6244_v25  ;;  %v6247_v30 = vrot.slane %v6067_v28, 3  ;;  %v8668_v31 = vpop.f32.mrb[69].mxu0  ;;  %v7082_v25 = vld [vmem:[%s9714_s21 + $0x50] sm:$0xff]  ;;  %v7083_v26 = vld [vmem:[%s9714_s21 + $0x58] sm:$0xff] }
 0xa8c   : > { %v6145_v32 = vpop.f32.mrb[56].mxu1  ;;  %v8918_v27 = vpack.c.bf16 %v7083_v26, %v7082_v25  ;;  %v8932_v25 = vpack.c.bf16 %v7215_v8, %v7213_v3 }
 0xa8d   : > { %v6248_v59 = vsel %vm1848_vm6, %v6247_v30, %v6246_v29  ;;  %v6249_v34 = vrot.slane %v6145_v32, 2  ;;  %v8673_v5 = vpop.f32.mrb[57].mxu1 }
 0xa8e   : > { %v6223_v35 = vpop.f32.mrb[70].mxu0 }
 0xa8f   : > { %v6251_v52 = vrot.slane %v6223_v35, 1  ;;  %v8678_v4 = vpop.f32.mrb[71].mxu0  ;;  %v6250_v40 = vsel %vm1851_vm7, %v6249_v34, %v6248_v59 }
 0xa90   : > { %v6324_v43 = vpop.f32.mrb[58].mxu1  ;;  %v7085_v4 = vld [vmem:[%s9714_s21 + $0x68] sm:$0xff] }
 0xa91   : > { %v6252_v46 = vsel %vm1854_vm8, %v6251_v52, %v6250_v40  ;;  %v8683_v18 = vpop.f32.mrb[59].mxu1  ;;  %v7084_v52 = vld [vmem:[%s9714_s21 + $0x60] sm:$0xff] }
 0xa92   : > { %v6325_v45 = vadd.f32 %v6324_v43, %v6252_v46  ;;  %v8922_v43 = vpack.c.bf16 %v7085_v4, %v7084_v52 }
 0xa94   : > { %v6328_v47 = vadd.f32 %v10344_v37, %v6325_v45 }
 0xa96   : > { %v6329_v49 = vsel %vm1937_vm9, %v6328_v47, -inf }
 0xa97   : > { %6330 = vmax.xlane.f32.xlu0 %v6329_v49  ;;  %v7087_v49 = vld [vmem:[%s9714_s21 + $0x78] sm:$0xff] }
 0xaad   : > { %6967 = vrot.lane.b32.xlu0 %v10002_v24, %s9390_s19 }
 0xb24   : > { %v6331_v48 = vpop.xlane.xlu0 %6330 }
 0xb25   : > { %v6332_v22 = vsub.f32 %v6328_v47, %v6331_v48  ;;  %v7086_v47 = vld [vmem:[%s9714_s21 + $0x70] sm:$0xff] }
 0xb27   : > { %v6333_v23 = vmul.f32 1.442695, %v6332_v22  ;;  %v8926_v22 = vpack.c.bf16 %v7087_v49, %v7086_v47  ;;  %v7226_v47 = vld [vmem:[%s9720_s0 + $0x68] sm:$0xff]  ;;  %v7228_v49 = vld [vmem:[%s9720_s0 + $0x78] sm:$0xff] }
 0xb29   : > { %9149 = vpow2.f32 %v6333_v23 }
 0xb33   : > { %v9150_v51 = vpop.eup %9149 }
 0xb34   : > { %v6335_v44 = vsel %vm1937_vm9, %v9150_v51, 0.0 }
 0xb35   : > { %6336 = vadd.xlane.f32.xlu1 %v6335_v44 }
 0xb46   : > { %4134 = vrot.lane.b32.xlu1 %v10332_v56, %s9390_s19 }
 0xbc2   : > { %v6337_v54 = vpop.xlane.xlu1 %6336 }
 0xbc3   : > { %9151 = vrcp.f32 %v6337_v54 }
 0xbc6   : > { %v4135_v37 = vpop.permute.xlu1 %4134 }
 0xbc7   : > { %4138 = vst.msk [vmem:[#allocation3] sm:$0xff] %vm4137_vm10, %v4135_v37 }
 0xbcd   : > { %v9152_v55 = vpop.eup %9151 }
 0xbce   : > { %v6339_v15 = vmul.f32 %v9152_v55, %v9150_v51 }
 0xbd0   : > { %v6348_v24 = vrot.slane %v6339_v15, %v9871_v50  ;;  %v6341_v57 = vcombine.high %v6339_v15, %v6339_v15 }
 0xbd2   : > { %v6364_v58 = vrot.slane %v6348_v24, %v9871_v50  ;;  %v6356_v16 = vcombine.high %v6348_v24, %v6348_v24  ;;  %v6355_v56 = vrot.slane %v6341_v57, %v9871_v50 }
 0xbd4   : > { %8687 = vmatmul.mubr.msk.f32.vlgmr.msra.gmra.mrb[72].mxu0 %vm1937_vm9, %v6364_v58  ;;  %v6378_v61 = vrot.slane %v6356_v16, %v9871_v50  ;;  %v6386_v39 = vcombine.high %v6364_v58, %v6364_v58  ;;  %v6357_v62 = vcombine.high %v6355_v56, %v6355_v56 }
 0xbd5   : > { %8695 = vmatpush3.msra.mxu0 %v10429_v10  ;;  %8696 = vmatprep.mubr.msk.f32.mxu0 %vm9388_vm1, %v9387_v33  ;;  %v6371_v10 = vrot.slane %v6355_v56, %v9871_v50 }
 0xbd6   : > { %8692 = vmatmul.mubr.msk.f32.vlgmr.msra.gmra.mrb[60].mxu1 %vm1937_vm9, %v6378_v61  ;;  %8704 = vmatprep.subr.mxu0 %v9387_v33  ;;  %v6388_v36 = vcombine.high %v6378_v61, %v6378_v61 }
 0xbd7   : > { %8700 = vmatpush3.msra.mxu1 %v10440_v13  ;;  %8701 = vmatprep.mubr.msk.f32.mxu1 %vm9388_vm1, %v9387_v33  ;;  %v6385_v13 = vrot.slane %v6357_v62, %v9871_v50  ;;  %v6968_v50 = vpop.permute.xlu0 %6967 }
 0xbd8   : > { %8697 = vmatmul.mubr.msk.f32.vlgmr.msra.gmra.mrb[74].mxu0 %vm1937_vm9, %v6386_v39  ;;  %8709 = vmatprep.subr.mxu1 %v9387_v33 }
 0xbd9   : > { %8705 = vmatpush3.msra.mxu0 %v10451_v17  ;;  %8706 = vmatprep.mubr.msk.f32.mxu0 %vm9388_vm1, %v9387_v33  ;;  %v6387_v17 = vcombine.high %v6371_v10, %v6371_v10 }
 0xbda   : > { %8702 = vmatmul.mubr.msk.f32.vlgmr.msra.gmra.mrb[62].mxu1 %vm1937_vm9, %v6388_v36  ;;  %8714 = vmatprep.subr.mxu0 %v9387_v33 }
 0xbdb   : > { %8710 = vmatpush3.msra.mxu1 %v10462_v21  ;;  %8711 = vmatprep.mubr.msk.f32.mxu1 %vm9388_vm1, %v9387_v33  ;;  %v7070_v21 = vld [vmem:[#allocation3] sm:$0xff] }
 0xbdc   : > { %8707 = vmatmul.mubr.msk.f32.vlgmr.msra.gmra.mrb[76].mxu0 %vm1937_vm9, %v6371_v10  ;;  %8719 = vmatprep.subr.mxu1 %v9387_v33 }
 0xbdd   : > { %8715 = vmatpush3.msra.mxu0 %v10393_v60  ;;  %8716 = vmatprep.mubr.msk.f32.mxu0 %vm9388_vm1, %v9387_v33  ;;  %v6389_v60 = vcombine.high %v6385_v13, %v6385_v13 }
 0xbde   : > { %8712 = vmatmul.mubr.msk.f32.vlgmr.msra.gmra.mrb[64].mxu1 %vm1937_vm9, %v6385_v13  ;;  %8724 = vmatprep.subr.mxu0 %v9387_v33 }
 0xbdf   : > { %8720 = vmatpush3.msra.mxu1 %v10479_v38  ;;  %8721 = vmatprep.mubr.msk.f32.mxu1 %vm9388_vm1, %v9387_v33  ;;  %v7072_v38 = vld [vmem:[%s9714_s21] sm:$0xff] }
 0xbe0   : > { %8717 = vmatmul.mubr.msk.f32.vlgmr.msra.gmra.mrb[78].mxu0 %vm1937_vm9, %v6387_v17  ;;  %v8898_v6 = vpack.c.bf16 %v7073_v63, %v7072_v38 }
 0xbe1   : > { %8725 = vmatpush3.msra.mxu0 %v6968_v50  ;;  %8726 = vmatprep.mubr.msk.f32.mxu0 %vm9388_vm1, %v9387_v33 }
 0xbe2   : > { %8722 = vmatmul.mubr.msk.f32.vlgmr.msra.gmra.mrb[66].mxu1 %vm1937_vm9, %v6389_v60  ;;  %8899 = vmatprep.subr.bf16.mxu1 %v8898_v6 }
 0xbe3   : > { %8761 = vmatprep.mubr.f32.mxu1 %v7070_v21  ;;  %8901 = vmatpush3.bf16.msra.mxu1 %v8898_v6  ;;  %v8064_v21 = vld [vmem:[%s10921_s7] ss:$0 sm:$0xff]  ;;  %s10929_s7 = sld [smem:[#allocation33_spill]] (!%p8070_p5) }
 0xbe4   : > { %8727 = vmatmul.mubr.msk.f32.vlgmr.msra.gmra.mrb[80].mxu0 %vm1937_vm9, %v6339_v15  ;;  %8903 = vmatprep.subr.bf16.mxu1 %v8902_v12 }
 0xbe5   : > { %7321 = vmatprep.mubr.f32.mxu0 %v9387_v33 }
 0xbe7   : > { %8905 = vmatpush3.bf16.msra.mxu1 %v8902_v12 }
 0xbe8   : > { %8907 = vmatprep.subr.bf16.mxu1 %v8906_v2 }
 0xbeb   : > { %8909 = vmatpush3.bf16.msra.mxu1 %v8906_v2  ;;  %v7214_v2 = vld [vmem:[%s9720_s0 + $0x8] sm:$0xff] }
 0xbec   : > { %8911 = vmatprep.subr.bf16.mxu1 %v8910_v7 }
 0xbef   : > { %8913 = vmatpush3.bf16.msra.mxu1 %v8910_v7  ;;  %v8930_v7 = vpack.c.bf16 %v7216_v14, %v7214_v2  ;;  %v7371_v2 = vld [vmem:[%s9722_s2 + $0x8] sm:$0xff] }
 0xbf0   : > { %8915 = vmatprep.subr.bf16.mxu1 %v8914_v20 }
 0xbf1   : > { %8931 = vmatprep.subr.bf16.mxu0 %v8930_v7 }
 0xbf2   : > { %8933 = vmatpush1.bf16.msra.mxu0 %v8932_v25 }
 0xbf3   : > { %8917 = vmatpush3.bf16.msra.mxu1 %v8914_v20  ;;  %v7220_v20 = vld [vmem:[%s9720_s0 + $0x38] sm:$0xff] }
 0xbf4   : > { %8919 = vmatprep.subr.bf16.mxu1 %v8918_v27  ;;  %v8934_v26 = vpack.c.bf16 %v7220_v20, %v7218_v11 }
 0xbf6   : > { %8935 = vmatprep.subr.bf16.mxu0 %v8934_v26 }
 0xbf7   : > { %8921 = vmatpush3.bf16.msra.mxu1 %v8918_v27  ;;  %v7217_v27 = vld [vmem:[%s9720_s0 + $0x20] sm:$0xff] }
 0xbf8   : > { %8923 = vmatprep.subr.bf16.mxu1 %v8922_v43 }
 0xbfb   : > { %8925 = vmatpush3.bf16.msra.mxu1 %v8922_v43 }
 0xbfc   : > { %8927 = vmatprep.subr.bf16.mxu1 %v8926_v22 }
 0xbff   : > { %8929 = vmatpush3.bf16.msra.mxu1 %v8926_v22  ;;  %v7225_v22 = vld [vmem:[%s9720_s0 + $0x60] sm:$0xff] }
 0xca7   : > { %v6458_v28 = vpop.f32.mrb[72].mxu0 }
 0xca8   : > { %v8688_v29 = vpop.f32.mrb[73].mxu0 }
 0xca9   : > { %v6530_v30 = vpop.f32.mrb[60].mxu1  ;;  %v7222_v29 = vld [vmem:[%s9720_s0 + $0x48] sm:$0xff] }
 0xcaa   : > { %v6978_v31 = vrot.slane %v6530_v30, 7  ;;  %v8693_v32 = vpop.f32.mrb[61].mxu1  ;;  %v7224_v30 = vld [vmem:[%s9720_s0 + $0x58] sm:$0xff] }
 0xcab   : > { %v6602_v59 = vpop.f32.mrb[74].mxu0  ;;  %v8938_v32 = vpack.c.bf16 %v7224_v30, %v7222_v29 }
 0xcac   : > { %v6979_v34 = vsel %vm1836_vm2, %v6978_v31, %v6458_v28  ;;  %v6980_v5 = vrot.slane %v6602_v59, 6  ;;  %v8698_v35 = vpop.f32.mrb[75].mxu0  ;;  %v7219_v28 = vld [vmem:[%s9720_s0 + $0x30] sm:$0xff]  ;;  %v7221_v59 = vld [vmem:[%s9720_s0 + $0x40] sm:$0xff] }
 0xcad   : > { %v6674_v40 = vpop.f32.mrb[62].mxu1  ;;  %v8936_v31 = vpack.c.bf16 %v7219_v28, %v7217_v27  ;;  %v8065_v28 = vld [vmem:[%s10922_s18] ss:$0 sm:$0xff] }
 0xcae   : > { %v6981_v46 = vsel %vm1839_vm3, %v6980_v5, %v6979_v34  ;;  %v6982_v18 = vrot.slane %v6674_v40, 5  ;;  %v8703_v45 = vpop.f32.mrb[63].mxu1  ;;  %v7223_v34 = vld [vmem:[%s9720_s0 + $0x50] sm:$0xff] }
 0xcaf   : > { %v6746_v48 = vpop.f32.mrb[76].mxu0  ;;  %8937 = vmatpush1.bf16.msra.mxu0 %v8936_v31  ;;  %v8940_v5 = vpack.c.bf16 %v7223_v34, %v7221_v59  ;;  %v8066_v31 = vld [vmem:[%s10923_s4] ss:$0 sm:$0xff] }
 0xcb0   : > { %v6983_v23 = vsel %vm1842_vm4, %v6982_v18, %v6981_v46  ;;  %v6984_v51 = vrot.slane %v6746_v48, 4  ;;  %v8708_v44 = vpop.f32.mrb[77].mxu0  ;;  %8939 = vmatprep.subr.bf16.mxu0 %v8938_v32  ;;  %v8942_v48 = vpack.c.bf16 %v7228_v49, %v7226_v47  ;;  %v7374_v47 = vld [vmem:[%s9722_s2 + $0x20] sm:$0xff]  ;;  %v7375_v49 = vld [vmem:[%s9722_s2 + $0x28] sm:$0xff] }
 0xcb1   : > { %v6818_v54 = vpop.f32.mrb[64].mxu1  ;;  %v7230_v44 = vld [vmem:[%s9720_s0 + $0x88] sm:$0xff] }
 0xcb2   : > { %v6985_v37 = vsel %vm1845_vm5, %v6984_v51, %v6983_v23  ;;  %v6986_v55 = vrot.slane %v6818_v54, 3  ;;  %v8713_v15 = vpop.f32.mrb[65].mxu1  ;;  %v7227_v23 = vld [vmem:[%s9720_s0 + $0x70] sm:$0xff]  ;;  %v7232_v54 = vld [vmem:[%s9720_s0 + $0x98] sm:$0xff] }
 0xcb3   : > { %v6890_v24 = vpop.f32.mrb[78].mxu0  ;;  %8941 = vmatpush1.bf16.msra.mxu0 %v8940_v5  ;;  %v8944_v51 = vpack.c.bf16 %v7227_v23, %v7225_v22  ;;  %v7231_v15 = vld [vmem:[%s9720_s0 + $0x90] sm:$0xff]  ;;  %v7393_v23 = vld [vmem:[%s9722_s2 + $0xb8] sm:$0xff] }
 0xcb4   : > { %v6987_v57 = vsel %vm1848_vm6, %v6986_v55, %v6985_v37  ;;  %v6988_v58 = vrot.slane %v6890_v24, 2  ;;  %v8718_v16 = vpop.f32.mrb[79].mxu0  ;;  %8943 = vmatprep.subr.bf16.mxu0 %v8942_v48  ;;  %v8946_v37 = vpack.c.bf16 %v7232_v54, %v7230_v44  ;;  %v7229_v55 = vld [vmem:[%s9720_s0 + $0x80] sm:$0xff]  ;;  %v7234_v24 = vld [vmem:[%s9720_s0 + $0xa8] sm:$0xff]  ;;  %v8972_v48 = vpack.c.bf16 %v7375_v49, %v7374_v47  ;;  %v7392_v22 = vld [vmem:[%s9722_s2 + $0xb0] sm:$0xff] }
 0xcb5   : > { %v6962_v61 = vpop.f32.mrb[66].mxu1  ;;  %v7233_v16 = vld [vmem:[%s9720_s0 + $0xa0] sm:$0xff]  ;;  %v7376_v44 = vld [vmem:[%s9722_s2 + $0x30] sm:$0xff]  ;;  %v7377_v54 = vld [vmem:[%s9722_s2 + $0x38] sm:$0xff] }
 0xcb6   : > { %v6990_v56 = vrot.slane %v6962_v61, 1  ;;  %v8723_v39 = vpop.f32.mrb[67].mxu1  ;;  %v6989_v36 = vsel %vm1851_vm7, %v6988_v58, %v6987_v57  ;;  %v8948_v57 = vpack.c.bf16 %v7231_v15, %v7229_v55  ;;  %v7236_v58 = vld [vmem:[%s9720_s0 + $0xb8] sm:$0xff]  ;;  %v7235_v61 = vld [vmem:[%s9720_s0 + $0xb0] sm:$0xff]  ;;  %v7394_v55 = vld [vmem:[%s9722_s2 + $0xc0] sm:$0xff] }
 0xcb7   : > { %v7061_v62 = vpop.f32.mrb[80].mxu0  ;;  %8945 = vmatpush1.bf16.msra.mxu0 %v8944_v51  ;;  %v7238_v39 = vld [vmem:[%s9720_s0 + $0xc8] sm:$0xff]  ;;  %v8974_v51 = vpack.c.bf16 %v7393_v23, %v7392_v22 }
 0xcb8   : > { %v6991_v10 = vsel %vm1854_vm8, %v6990_v56, %v6989_v36  ;;  %v8728_v13 = vpop.f32.mrb[81].mxu0  ;;  %8947 = vmatprep.subr.bf16.mxu0 %v8946_v37  ;;  %v8950_v56 = vpack.c.bf16 %v7236_v58, %v7234_v24  ;;  %v7240_v36 = vld [vmem:[%s9720_s0 + $0xd8] sm:$0xff]  ;;  %v8976_v37 = vpack.c.bf16 %v7377_v54, %v7376_v44  ;;  %v7395_v15 = vld [vmem:[%s9722_s2 + $0xc8] sm:$0xff]  ;;  %v7378_v24 = vld [vmem:[%s9722_s2 + $0x40] sm:$0xff] }
 0xcb9   : > { %v7062_v17 = vadd.f32 %v7061_v62, %v6991_v10  ;;  %v8952_v62 = vpack.c.bf16 %v7235_v61, %v7233_v16  ;;  %v8954_v10 = vpack.c.bf16 %v7240_v36, %v7238_v39  ;;  %v7237_v13 = vld [vmem:[%s9720_s0 + $0xc0] sm:$0xff]  ;;  %v7379_v58 = vld [vmem:[%s9722_s2 + $0x48] sm:$0xff]  ;;  %v7396_v16 = vld [vmem:[%s9722_s2 + $0xd0] sm:$0xff] }
 0xcba   : > { %v7397_v61 = vld [vmem:[%s9722_s2 + $0xd8] sm:$0xff]  ;;  %v7380_v36 = vld [vmem:[%s9722_s2 + $0x50] sm:$0xff] }
 0xcbb   : > { %7066 = vrot.lane.b32.xlu0 %v7062_v17, %s9390_s19  ;;  %8949 = vmatpush1.bf16.msra.mxu0 %v8948_v57  ;;  %v7239_v17 = vld [vmem:[%s9720_s0 + $0xd0] sm:$0xff]  ;;  %v8978_v57 = vpack.c.bf16 %v7395_v15, %v7394_v55  ;;  %v8982_v39 = vpack.c.bf16 %v7397_v61, %v7396_v16 }
 0xcbc   : > { %8951 = vmatprep.subr.bf16.mxu0 %v8950_v56  ;;  %v8980_v56 = vpack.c.bf16 %v7379_v58, %v7378_v24 }
 0xcbf   : > { %8953 = vmatpush1.bf16.msra.mxu0 %v8952_v62  ;;  %v7381_v62 = vld [vmem:[%s9722_s2 + $0x58] sm:$0xff] }
 0xcc0   : > { %8955 = vmatprep.subr.bf16.mxu0 %v8954_v10  ;;  %v7398_v10 = vld [vmem:[%s9722_s2 + $0xe0] sm:$0xff] }
 0xd2d   : > { %v7067_v50 = vpop.permute.xlu0 %7066 }
 0xd2e   : > { %7069 = vst.msk [vmem:[#allocation3 + $0x8] sm:$0xff] %vm4137_vm10, %v7067_v50  ;;  %v7242_v50 = vld [vmem:[%s9720_s0 + $0xe8] sm:$0xff] }
 0xd35   : > { %v7071_v60 = vld [vmem:[#allocation3 + $0x8] sm:$0xff] }
 0xd36   : > { %8762 = vmatmul.mubr.f32.vlgmr.msra.gmra.mrb[68].mxu1 %v7071_v60  ;;  %v7244_v60 = vld [vmem:[%s9720_s0 + $0xf8] sm:$0xff] }
 0xe09   : > { %v8763_v38 = vpop.f32.mrb[68].mxu1 }
 0xe0a   : > { %v7167_v63 = vadd.f32 %v8763_v38, %v8064_v21  ;;  %v7161_v1 = vpop.f32.mrb[69].mxu1  ;;  %v8958_v38 = vpack.c.bf16 %v7244_v60, %v7242_v50  ;;  %v7382_v60 = vld [vmem:[%s9722_s2 + $0x60] sm:$0xff] }
 0xe0b   : > { %v7162_v6 = vadd.f32 %v8064_v21, %v7161_v1  ;;  %v8956_v21 = vpack.c.bf16 %v7239_v17, %v7237_v13  ;;  %v7243_v1 = vld [vmem:[%s9720_s0 + $0xf0] sm:$0xff]  ;;  %v7399_v13 = vld [vmem:[%s9722_s2 + $0xe8] sm:$0xff]  ;;  %v8984_v17 = vpack.c.bf16 %v7381_v62, %v7380_v36  ;;  %v8067_v62 = vld [vmem:[%s891_s30] ss:$0 sm:$0xff] }
 0xe0c   : > { %v7171_v12 = vadd.f32 %v9177_v9, %v7167_v63  ;;  %v7241_v63 = vld [vmem:[%s9720_s0 + $0xe0] sm:$0xff]  ;;  %v8986_v50 = vpack.c.bf16 %v7399_v13, %v7398_v10 }
 0xe0d   : > { %v7170_v0 = vadd.f32 %v9178_v19, %v7162_v6  ;;  %8957 = vmatpush1.bf16.msra.mxu0 %v8956_v21  ;;  %v8960_v6 = vpack.c.bf16 %v7243_v1, %v7241_v63  ;;  %v7386_v9 = vld [vmem:[%s9722_s2 + $0x80] sm:$0xff]  ;;  %v7383_v21 = vld [vmem:[%s9722_s2 + $0x68] sm:$0xff]  ;;  %v7401_v63 = vld [vmem:[%s9722_s2 + $0xf8] sm:$0xff] }
 0xe0e   : > { %7176 = vadd.xlane.f32.xlu0 %v7171_v12  ;;  %8959 = vmatprep.subr.bf16.mxu0 %v8958_v38  ;;  %v7370_v19 = vld [vmem:[%s9722_s2] sm:$0xff]  ;;  %v7400_v38 = vld [vmem:[%s9722_s2 + $0xf0] sm:$0xff]  ;;  %v8988_v1 = vpack.c.bf16 %v7383_v21, %v7382_v60 }
 0xe0f   : > { %7174 = vadd.xlane.f32.xlu1 %v7170_v0  ;;  %v8964_v14 = vpack.c.bf16 %v7371_v2, %v7370_v19 }
 0xe11   : > { %8961 = vmatpush1.bf16.msra.mxu0 %v8960_v6  ;;  %v8990_v6 = vpack.c.bf16 %v7401_v63, %v7400_v38 }
 0xe9b   : > { %v7177_v35 = vpop.xlane.xlu0 %7176 }
 0xe9c   : > { %v7180_v52 = vmul.f32 0.0078125, %v7177_v35  ;;  %v7175_v4 = vpop.xlane.xlu1 %7174  ;;  %v7388_v35 = vld [vmem:[%s9722_s2 + $0x90] sm:$0xff] }
 0xe9d   : > { %v7179_v40 = vmul.f32 0.0078125, %v7175_v4 }
 0xe9e   : > { %v10605_v43 = vsub.f32 %v7171_v12, %v7180_v52  ;;  %v7387_v12 = vld [vmem:[%s9722_s2 + $0x88] sm:$0xff]  ;;  %v7389_v52 = vld [vmem:[%s9722_s2 + $0x98] sm:$0xff] }
 0xe9f   : > { %v10607_v46 = vsub.f32 %v7170_v0, %v7179_v40  ;;  %v8962_v0 = vpack.c.bf16 %v7387_v12, %v7386_v9  ;;  %v8966_v4 = vpack.c.bf16 %v7389_v52, %v7388_v35  ;;  %v7372_v40 = vld [vmem:[%s9722_s2 + $0x10] sm:$0xff]  ;;  %v7385_v12 = vld [vmem:[%s9722_s2 + $0x78] sm:$0xff] }
 0xea0   : > { %v7184_v18 = vmul.f32 %v10605_v43, %v10605_v43  ;;  %v7384_v9 = vld [vmem:[%s9722_s2 + $0x70] sm:$0xff] }
 0xea1   : > { %v7183_v45 = vmul.f32 %v10607_v46, %v10607_v46  ;;  %8963 = vmatprep.subr.bf16.mxu1 %v8962_v0  ;;  %v8992_v19 = vpack.c.bf16 %v7385_v12, %v7384_v9  ;;  %v7245_v0 = vld [vmem:[%s9754_s13] sm:$0x3] }
 0xea2   : > { %7187 = vadd.xlane.f32.xlu1 %v7184_v18  ;;  %8965 = vmatpush3.bf16.msra.mxu1 %v8964_v14  ;;  %v7390_v18 = vld [vmem:[%s9722_s2 + $0xa0] sm:$0xff]  ;;  %v7250_v2 = vrot.slane %v7245_v0, %v9860_v42  ;;  %v7254_v14 = vrot.slane %v7245_v0, %v1013_v53 }
 0xea3   : > { %7185 = vadd.xlane.f32.xlu0 %v7183_v45  ;;  %8967 = vmatprep.subr.bf16.mxu1 %v8966_v4 }
 0xf2f   : > { %v7188_v3 = vpop.xlane.xlu1 %7187 }
 0xf30   : > { %v7190_v7 = vmul.f32 0.0078125, %v7188_v3  ;;  %v7186_v8 = vpop.xlane.xlu0 %7185 }
 0xf31   : > { %v7189_v11 = vmul.f32 0.0078125, %v7186_v8 }
 0xf32   : > { %v7192_v20 = vadd.f32 1e-12, %v7190_v7 }
 0xf33   : > { %v7191_v25 = vadd.f32 1e-12, %v7189_v11 }
 0xf34   : > { %9153 = vrsqrt.f32 %v7192_v20 }
 0xf35   : > { %9155 = vrsqrt.f32 %v7191_v25 }
 0xf3e   : > { %v9154_v26 = vpop.eup %9153 }
 0xf3f   : > { %v9156_v27 = vpop.eup %9155  ;;  %v7196_v30 = vmul.f32 %v9154_v26, %v10605_v43  ;;  %v7373_v43 = vld [vmem:[%s9722_s2 + $0x18] sm:$0xff] }
 0xf40   : > { %v7195_v29 = vmul.f32 %v9156_v27, %v10607_v46  ;;  %v8968_v46 = vpack.c.bf16 %v7373_v43, %v7372_v40 }
 0xf41   : > { %v7204_v34 = vmul.f32 %v8065_v28, %v7196_v30 }
 0xf42   : > { %v7203_v32 = vmul.f32 %v8065_v28, %v7195_v29  ;;  %8969 = vmatpush3.bf16.msra.mxu1 %v8968_v46 }
 0xf43   : > { %v10653_v5 = vadd.f32 %v8066_v31, %v7204_v34 }
 0xf44   : > { %v10649_v59 = vadd.f32 %v8066_v31, %v7203_v32 }
 0xf46   : > { %7322 = vmatmul.mubr.f32.vlgmr.msra.gmra.mrb[82].mxu0 %v10649_v59 }
 0xf47   : > { %7327 = vmatprep.mubr.f32.mxu0 %v9387_v33  ;;  %v7391_v33 = vld [vmem:[%s9722_s2 + $0xa8] sm:$0xff] }
 0xf48   : > { %v8970_v45 = vpack.c.bf16 %v7391_v33, %v7390_v18 }
 0xf4a   : > { %7328 = vmatmul.mubr.f32.gmra.mrb[84].mxu0 %v10653_v5  ;;  %8971 = vmatprep.subr.bf16.mxu1 %v8970_v45 }
 0xf4b   : > { %8973 = vmatpush3.bf16.msra.mxu1 %v8972_v48 }
 0xf4c   : > { %8975 = vmatprep.subr.bf16.mxu1 %v8974_v51 }
 0xf4f   : > { %8977 = vmatpush3.bf16.msra.mxu1 %v8976_v37 }
 0xf50   : > { %8979 = vmatprep.subr.bf16.mxu1 %v8978_v57 }
 0xf53   : > { %8981 = vmatpush3.bf16.msra.mxu1 %v8980_v56 }
 0xf54   : > { %8983 = vmatprep.subr.bf16.mxu1 %v8982_v39 }
 0xf57   : > { %8985 = vmatpush3.bf16.msra.mxu1 %v8984_v17 }
 0xf58   : > { %8987 = vmatprep.subr.bf16.mxu1 %v8986_v50 }
 0xf5b   : > { %8989 = vmatpush3.bf16.msra.mxu1 %v8988_v1 }
 0xf5c   : > { %8991 = vmatprep.subr.bf16.mxu1 %v8990_v6 }
 0xf5f   : > { %8993 = vmatpush3.bf16.msra.mxu1 %v8992_v19 }
0x1019   : > { %v7323_v3 = vpop.f32.mrb[82].mxu0 }
0x101a   : > { %v7324_v7 = vadd.f32 %v7323_v3, %v7250_v2  ;;  %v7325_v8 = vpop.f32.mrb[83].mxu0 }
0x101b   : > { %v7326_v11 = vadd.f32 %v7325_v8, %v7254_v14 }
0x101c   : > { %v7338_v20 = vmul.f32 0.044715, %v7324_v7  ;;  %v7334_v54 = vmul.f32 0.5, %v7324_v7 }
0x101d   : > { %v7339_v25 = vmul.f32 0.044715, %v7326_v11  ;;  %v7329_v26 = vpop.f32.mrb[84].mxu0  ;;  %v7335_v51 = vmul.f32 0.5, %v7326_v11 }
0x101e   : > { %v7342_v27 = vmul.f32 %v7338_v20, %v7324_v7  ;;  %v7330_v28 = vadd.f32 %v7329_v26, %v7250_v2  ;;  %v7331_v29 = vpop.f32.mrb[85].mxu0  ;;  %v8068_v26 = vld [vmem:[%s894_s20] ss:$0 sm:$0xff] }
0x101f   : > { %v7343_v30 = vmul.f32 %v7339_v25, %v7326_v11  ;;  %v7332_v31 = vadd.f32 %v7331_v29, %v7254_v14 }
0x1020   : > { %v7346_v32 = vmul.f32 %v7342_v27, %v7324_v7  ;;  %v7340_v34 = vmul.f32 0.044715, %v7330_v28  ;;  %v7336_v61 = vmul.f32 0.5, %v7330_v28 }
0x1021   : > { %v7341_v35 = vmul.f32 0.044715, %v7332_v31  ;;  %v7347_v52 = vmul.f32 %v7343_v30, %v7326_v11  ;;  %v7337_v58 = vmul.f32 0.5, %v7332_v31 }
0x1022   : > { %v7350_v42 = vadd.f32 %v7346_v32, %v7324_v7  ;;  %v7344_v4 = vmul.f32 %v7340_v34, %v7330_v28 }
0x1023   : > { %v7345_v41 = vmul.f32 %v7341_v35, %v7332_v31  ;;  %v7351_v53 = vadd.f32 %v7347_v52, %v7326_v11  ;;  %v7532_v52 = vld [vmem:[%s10925_s28] sm:$0xff] (!%p8070_p5) }
0x1024   : > { %v7354_v40 = vmul.f32 0.7978846, %v7350_v42  ;;  %v7348_v43 = vmul.f32 %v7344_v4, %v7330_v28  ;;  %v7533_v42 = vld [vmem:[%s10925_s28 + $0x8] sm:$0xff] (!%p8070_p5)  ;;  %v7534_v4 = vld [vmem:[%s10925_s28 + $0x10] sm:$0xff] (!%p8070_p5) }
0x1025   : > { %v7355_v46 = vmul.f32 0.7978846, %v7351_v53  ;;  %v7349_v18 = vmul.f32 %v7345_v41, %v7332_v31  ;;  %v8994_v41 = vpack.c.bf16 (!%p8070_p5), %v7533_v42, %v7532_v52  ;;  %v7535_v53 = vld [vmem:[%s10925_s28 + $0x18] sm:$0xff] (!%p8070_p5) }
0x1026   : > { %9157 = vtanh.f32 %v7354_v40  ;;  %v7352_v33 = vadd.f32 %v7348_v43, %v7330_v28  ;;  %v8069_v28 = vld [vmem:[%s897_s5] ss:$0 sm:$0xff]  ;;  %v8998_v40 = vpack.c.bf16 (!%p8070_p5), %v7535_v53, %v7534_v4 }
0x1027   : > { %9159 = vtanh.f32 %v7355_v46  ;;  %v7353_v45 = vadd.f32 %v7349_v18, %v7332_v31  ;;  %v7536_v43 = vld [vmem:[%s10925_s28 + $0x20] sm:$0xff] (!%p8070_p5)  ;;  %v7537_v46 = vld [vmem:[%s10925_s28 + $0x28] sm:$0xff] (!%p8070_p5)  ;;  %8995 = vmatprep.subr.bf16.mxu0 (!%p8070_p5), %v8994_v41 }
0x1028   : > { %v7356_v47 = vmul.f32 0.7978846, %v7352_v33  ;;  %8997 = vmatpush3.bf16.msra.mxu0 (!%p8070_p5), %v8994_v41  ;;  %v9002_v18 = vpack.c.bf16 (!%p8070_p5), %v7537_v46, %v7536_v43  ;;  %v7538_v33 = vld [vmem:[%s10925_s28 + $0x30] sm:$0xff] (!%p8070_p5) }
0x1029   : > { %v7357_v49 = vmul.f32 0.7978846, %v7353_v45  ;;  %8999 = vmatprep.subr.bf16.mxu0 (!%p8070_p5), %v8998_v40  ;;  %v7632_v45 = vld [vmem:[%s10926_s27] sm:$0xff] (!%p8070_p5)  ;;  %s10928_s27 = sld [smem:[#allocation31_spill]] (!%p8070_p5) }
0x102a   : > { %9161 = vtanh.f32 %v7356_v47  ;;  %v7633_v47 = vld [vmem:[%s10927_s1 + $0x8] sm:$0xff] (!%p8070_p5) }
0x102b   : > { %9163 = vtanh.f32 %v7357_v49  ;;  %v7539_v49 = vld [vmem:[%s10925_s28 + $0x38] sm:$0xff] (!%p8070_p5) }
0x102c   : > { %9001 = vmatpush3.bf16.msra.mxu0 (!%p8070_p5), %v8998_v40 }
0x102d   : > { %9003 = vmatprep.subr.bf16.mxu0 (!%p8070_p5), %v9002_v18 }
0x1030   : > { %v9158_v48 = vpop.eup %9157  ;;  %9005 = vmatpush3.bf16.msra.mxu0 (!%p8070_p5), %v9002_v18 }
0x1031   : > { %v9160_v22 = vpop.eup %9159  ;;  %v7362_v23 = vadd.f32 1.0, %v9158_v48  ;;  %v9026_v48 = vpack.c.bf16 (!%p8070_p5), %v7633_v47, %v7632_v45 }
0x1032   : > { %v7363_v44 = vadd.f32 1.0, %v9160_v22  ;;  %v7634_v22 = vld [vmem:[%s10927_s1 + $0x10] sm:$0xff] (!%p8070_p5) }
0x1033   : > { %v7366_v24 = vmul.f32 %v7362_v23, %v7334_v54  ;;  %v7635_v23 = vld [vmem:[%s10927_s1 + $0x18] sm:$0xff] (!%p8070_p5)  ;;  %v7637_v54 = vld [vmem:[%s10927_s1 + $0x28] sm:$0xff] (!%p8070_p5)  ;;  %9027 = vmatprep.subr.bf16.mxu1 (!%p8070_p5), %v9026_v48 }
0x1034   : > { %v9162_v37 = vpop.eup %9161  ;;  %v7367_v55 = vmul.f32 %v7363_v44, %v7335_v51  ;;  %v9030_v51 = vpack.c.bf16 (!%p8070_p5), %v7635_v23, %v7634_v22  ;;  %v7636_v44 = vld [vmem:[%s10927_s1 + $0x20] sm:$0xff] (!%p8070_p5) }
0x1035   : > { %v9164_v15 = vpop.eup %9163  ;;  %v7364_v57 = vadd.f32 1.0, %v9162_v37  ;;  %v9006_v37 = vpack.c.bf16 (!%p8070_p5), %v7539_v49, %v7538_v33 }
0x1036   : > { %7473 = vmatprep.mubr.f32.mxu1 %v7367_v55  ;;  %v7365_v16 = vadd.f32 1.0, %v9164_v15  ;;  %v7540_v55 = vld [vmem:[%s10925_s28 + $0x40] sm:$0xff] (!%p8070_p5)  ;;  %v7541_v15 = vld [vmem:[%s10925_s28 + $0x48] sm:$0xff] (!%p8070_p5) }
0x1037   : > { %7474 = vmatmul.mubr.f32.vlgmr.msra.gmra.mrb[70].mxu1 %v7366_v24  ;;  %v7368_v39 = vmul.f32 %v7364_v57, %v7336_v61  ;;  %v9034_v24 = vpack.c.bf16 (!%p8070_p5), %v7637_v54, %v7636_v44  ;;  %v7638_v57 = vld [vmem:[%s10927_s1 + $0x30] sm:$0xff] (!%p8070_p5)  ;;  %9007 = vmatprep.subr.bf16.mxu0 (!%p8070_p5), %v9006_v37 }
0x1038   : > { %v7369_v56 = vmul.f32 %v7365_v16, %v7337_v58  ;;  %9029 = vmatpush3.bf16.msra.mxu1 (!%p8070_p5), %v9026_v48  ;;  %v7639_v58 = vld [vmem:[%s10927_s1 + $0x38] sm:$0xff] (!%p8070_p5)  ;;  %v9010_v16 = vpack.c.bf16 (!%p8070_p5), %v7541_v15, %v7540_v55  ;;  %v7542_v61 = vld [vmem:[%s10925_s28 + $0x50] sm:$0xff] (!%p8070_p5)  ;;  %9009 = vmatpush3.bf16.msra.mxu0 (!%p8070_p5), %v9006_v37 }
0x1039   : > { %9031 = vmatprep.subr.bf16.mxu1 (!%p8070_p5), %v9030_v51 }
0x103a   : > { %7478 = vmatprep.mubr.f32.mxu1 %v7369_v56  ;;  %v7543_v56 = vld [vmem:[%s10925_s28 + $0x58] sm:$0xff] (!%p8070_p5)  ;;  %9011 = vmatprep.subr.bf16.mxu0 (!%p8070_p5), %v9010_v16 }
0x103b   : > { %7479 = vmatmul.mubr.f32.gmra.mrb[72].mxu1 %v7368_v39  ;;  %v9038_v39 = vpack.c.bf16 (!%p8070_p5), %v7639_v58, %v7638_v57 }
0x103c   : > { %9033 = vmatpush3.bf16.msra.mxu1 (!%p8070_p5), %v9030_v51  ;;  %9013 = vmatpush3.bf16.msra.mxu0 (!%p8070_p5), %v9010_v16 }
0x103d   : > { %9035 = vmatprep.subr.bf16.mxu1 (!%p8070_p5), %v9034_v24 }
0x1040   : > { %9037 = vmatpush3.bf16.msra.mxu1 (!%p8070_p5), %v9034_v24 }
0x1041   : > { %9039 = vmatprep.subr.bf16.mxu1 (!%p8070_p5), %v9038_v39 }
0x1044   : > { %9041 = vmatpush3.bf16.msra.mxu1 (!%p8070_p5), %v9038_v39 }
0x110a   : > { %v8292_v36 = vpop.f32.mrb[70].mxu1 }
0x110b   : > { %v8293_v10 = vpop.f32.mrb[71].mxu1 }
0x110c   : > { %v8294_v13 = vadd.f32 %v8293_v10, %v8292_v36  ;;  %v9014_v36 = vpack.c.bf16 (!%p8070_p5), %v7543_v56, %v7542_v61  ;;  %v7545_v10 = vld [vmem:[%s10925_s28 + $0x68] sm:$0xff] (!%p8070_p5) }
0x110e   : > { %v7476_v17 = vadd.f32 %v8294_v13, %v8067_v62  ;;  %v8295_v50 = vpop.f32.mrb[72].mxu1  ;;  %9015 = vmatprep.subr.bf16.mxu0 (!%p8070_p5), %v9014_v36 }
0x110f   : > { %v8296_v60 = vpop.f32.mrb[73].mxu1  ;;  %9017 = vmatpush3.bf16.msra.mxu0 (!%p8070_p5), %v9014_v36 }
0x1110   : > { %v8297_v21 = vadd.f32 %v8296_v60, %v8295_v50  ;;  %v7484_v38 = vadd.f32 %v7476_v17, %v10649_v59  ;;  %v7546_v17 = vld [vmem:[%s10925_s28 + $0x70] sm:$0xff] (!%p8070_p5)  ;;  %v7547_v50 = vld [vmem:[%s10925_s28 + $0x78] sm:$0xff] (!%p8070_p5) }
0x1111   : > { %v9022_v60 = vpack.c.bf16 (!%p8070_p5), %v7547_v50, %v7546_v17 }
0x1112   : > { %v7481_v63 = vadd.f32 %v8297_v21, %v8067_v62  ;;  %7488 = vadd.xlane.f32.xlu0 %v7484_v38  ;;  %v7544_v62 = vld [vmem:[%s10925_s28 + $0x60] sm:$0xff] (!%p8070_p5) }
0x1113   : > { %v9018_v13 = vpack.c.bf16 (!%p8070_p5), %v7545_v10, %v7544_v62  ;;  %v7640_v21 = vld [vmem:[%s10927_s1 + $0x40] sm:$0xff] (!%p8070_p5) }
0x1114   : > { %v7485_v1 = vadd.f32 %v7481_v63, %v10653_v5 }
0x1115   : > { %9019 = vmatprep.subr.bf16.mxu0 (!%p8070_p5), %v9018_v13 }
0x1116   : > { %7490 = vadd.xlane.f32.xlu1 %v7485_v1  ;;  %9021 = vmatpush3.bf16.msra.mxu0 (!%p8070_p5), %v9018_v13 }
0x1117   : > { %9023 = vmatprep.subr.bf16.mxu0 (!%p8070_p5), %v9022_v60 }
0x111a   : > { %9025 = vmatpush3.bf16.msra.mxu0 (!%p8070_p5), %v9022_v60 }
0x119f   : > { %v7489_v6 = vpop.xlane.xlu0 %7488 }
0x11a0   : > { %v7492_v9 = vmul.f32 0.0078125, %v7489_v6  ;;  %v7643_v6 = vld [vmem:[%s10927_s1 + $0x58] sm:$0xff] (!%p8070_p5) }
0x11a2   : > { %v7494_v12 = vsub.f32 %v7484_v38, %v7492_v9  ;;  %v7641_v38 = vld [vmem:[%s10927_s1 + $0x48] sm:$0xff] (!%p8070_p5) }
0x11a3   : > { %v7491_v19 = vpop.xlane.xlu1 %7490  ;;  %v9042_v63 = vpack.c.bf16 (!%p8070_p5), %v7641_v38, %v7640_v21 }
0x11a4   : > { %v7493_v0 = vmul.f32 0.0078125, %v7491_v19  ;;  %v7496_v2 = vmul.f32 %v7494_v12, %v7494_v12  ;;  %v7645_v19 = vld [vmem:[%s10927_s1 + $0x68] sm:$0xff] (!%p8070_p5) }
0x11a5   : > { %9043 = vmatprep.subr.bf16.mxu1 (!%p8070_p5), %v9042_v63 }
0x11a6   : > { %v7495_v14 = vsub.f32 %v7485_v1, %v7493_v0  ;;  %7498 = vadd.xlane.f32.xlu0 %v7496_v2  ;;  %9045 = vmatpush3.bf16.msra.mxu1 (!%p8070_p5), %v9042_v63  ;;  %v7642_v1 = vld [vmem:[%s10927_s1 + $0x50] sm:$0xff] (!%p8070_p5) }
0x11a7   : > { %v9046_v9 = vpack.c.bf16 (!%p8070_p5), %v7643_v6, %v7642_v1  ;;  %v7646_v0 = vld [vmem:[%s10927_s1 + $0x70] sm:$0xff] (!%p8070_p5) }
0x11a8   : > { %v7497_v3 = vmul.f32 %v7495_v14, %v7495_v14 }
0x11a9   : > { %9047 = vmatprep.subr.bf16.mxu1 (!%p8070_p5), %v9046_v9 }
0x11aa   : > { %7500 = vadd.xlane.f32.xlu1 %v7497_v3  ;;  %9049 = vmatpush3.bf16.msra.mxu1 (!%p8070_p5), %v9046_v9 }
0x1233   : > { %v7499_v7 = vpop.xlane.xlu0 %7498 }
0x1234   : > { %v7502_v8 = vmul.f32 0.0078125, %v7499_v7  ;;  %v8071_v7 = vld [vmem:[%s10928_s27] ss:$0 sm:$0xff] (!%p8070_p5) }
0x1236   : > { %v7504_v59 = vadd.f32 1e-12, %v7502_v8 }
0x1237   : > { %v7501_v11 = vpop.xlane.xlu1 %7500 }
0x1238   : > { %9165 = vrsqrt.f32 %v7504_v59  ;;  %v7503_v20 = vmul.f32 0.0078125, %v7501_v11 }
0x123a   : > { %v7505_v5 = vadd.f32 1e-12, %v7503_v20 }
0x123c   : > { %9167 = vrsqrt.f32 %v7505_v5 }
0x1242   : > { %v9166_v25 = vpop.eup %9165 }
0x1243   : > { %v7508_v27 = vmul.f32 %v9166_v25, %v7494_v12  ;;  %v7644_v12 = vld [vmem:[%s10927_s1 + $0x60] sm:$0xff] (!%p8070_p5) }
0x1244   : > { %v9050_v2 = vpack.c.bf16 (!%p8070_p5), %v7645_v19, %v7644_v12 }
0x1245   : > { %v7516_v29 = vmul.f32 %v8068_v26, %v7508_v27 }
0x1246   : > { %v9168_v30 = vpop.eup %9167  ;;  %9051 = vmatprep.subr.bf16.mxu1 (!%p8070_p5), %v9050_v2 }
0x1247   : > { %v7524_v31 = vadd.f32 %v8069_v28, %v7516_v29  ;;  %v7509_v32 = vmul.f32 %v9168_v30, %v7495_v14  ;;  %7531 = sbr.rel (%p8070_p5) target bundleno = 5128 (0x1408), region = 128  ;;  %v7647_v14 = vld [vmem:[%s10927_s1 + $0x78] sm:$0xff] (!%p8070_p5)  ;;  %9053 = vmatpush3.bf16.msra.mxu1 (!%p8070_p5), %v9050_v2 }
0x1248   : > { %v9054_v3 = vpack.c.bf16 (!%p8070_p5), %v7647_v14, %v7646_v0 }
0x1249   : > { %7526 = vst [vmem:[#allocation2] sm:$0xff] %v7524_v31  ;;  %v7517_v34 = vmul.f32 %v8068_v26, %v7509_v32  ;;  %8796 = vmatprep.mubr.f32.mxu0 (!%p8070_p5), %v7524_v31  ;;  %v8072_v26 = vld [vmem:[%s10929_s7] ss:$0 sm:$0xff] (!%p8070_p5) }
0x124a   : > { %9055 = vmatprep.subr.bf16.mxu1 (!%p8070_p5), %v9054_v3 }
0x124b   : > { %v10705_v35 = vadd.f32 %v8069_v28, %v7517_v34  ;;  %9057 = vmatpush3.bf16.msra.mxu1 (!%p8070_p5), %v9054_v3 }
0x124d   : > { %7527 = vst [vmem:[#allocation2 + $0x8] sm:$0xff] %v10705_v35  ;;  %8797 = vmatmul.mubr.f32.vlgmr.msra.gmra.mrb[0].mxu0 (!%p8070_p5), %v10705_v35 }
0x1320   : > { %v8798_v8 = vpop.f32.mrb[0].mxu0 }
0x1321   : > { %v7627_v59 = vadd.f32 %v8798_v8, %v8071_v7  ;;  %v7621_v11 = vpop.f32.mrb[1].mxu0 }
0x1322   : > { %v7622_v20 = vadd.f32 %v8071_v7, %v7621_v11 }
0x1324   : > { %9179 = vtanh.f32 %v7622_v20 }
0x1325   : > { %9181 = vtanh.f32 %v7627_v59 }
0x132e   : > { %v9180_v5 = vpop.eup %9179 }
0x132f   : > { %v9182_v25 = vpop.eup %9181  ;;  %8831 = vmatprep.mubr.f32.mxu1 %v9180_v5 }
0x1330   : > { %8832 = vmatmul.mubr.f32.vlgmr.msra.gmra.mrb[0].mxu1 %v9182_v25 }
0x1403   : > { %v8833_v27 = vpop.f32.mrb[0].mxu1 }
0x1404   : > { %v7727_v28 = vadd.f32 %v8833_v27, %v8072_v26  ;;  %v7721_v29 = vpop.f32.mrb[1].mxu1 }
0x1405   : > { %v7722_v30 = vadd.f32 %v8072_v26, %v7721_v29 }
0x1406   : > { %7731 = vst [vmem:[#allocation12 + $0x1] sm:$0x1] %v7727_v28 }
0x1407   : > { %7730 = vst [vmem:[#allocation12] sm:$0x1] %v7722_v30 }
0x1408 PF: > { %p9088_p6 = scmp.eq.s32.totalorder %s9521_s3, 1  ;;  %s9391_s24 = smov [#allocation12]  }
0x1409   : > { %s7739_s5 = sshll.u32 %s9391_s24, 4  ;;  %s7740_s5 = int_to_ptr.vmem [resolvable:$true] %s7739_s5 }
0x140a   : > { %s9303_s0 = scalar_lea.vmem %s7740_s5, 32  ;;  %p9310_p13 = scmp.lt.s32.totalorder %s7740_s5, %s7740_s5 }
0x140b   : > { %p9304_p1 = scmp.ne.s32.totalorder %s7740_s5, %s9303_s0  ;;  %p9311_p9 = scmp.lt.s32.totalorder %s9303_s0, %s9303_s0 }
0x140d   : > { %p9305_p4 = pnand %p9304_p1, %p9088_p6  ;;  %p9312_p0 = por %p9311_p9, %p9310_p13 }
0x140f   : > { %p9306_p11 = pneg %p9305_p4 }
0x1411   : > { %p9313_p12 = pnand %p9312_p0, %p9306_p11 }
0x1413   : > { %9316 = shalt.err (!%p9313_p12)
}
0x1414   : > { %s10930_s29 = sld [smem:[#allocation34_spill]] }
0x141a   : > { %s9317_s17 = scalar_lea.hbm %s10930_s29, 32 }
0x141b   : > { %p9318_p2 = scmp.ne.s32.totalorder %s10930_s29, %s9317_s17  ;;  %p9323_p8 = scmp.lt.u32.totalorder %s9317_s17, %s10930_s29 }
0x141d   : > { %p9319_p10 = pnand %p9318_p2, %p9088_p6 }
0x141f   : > { %p9320_p7 = pneg %p9319_p10 }
0x1421   : > { %p9325_p3 = pnand %p9323_p8, %p9320_p7 }
0x1423   : > { %9328 = shalt.err (!%p9325_p3)
}
0x1424   : > { %9071 = dma.vmem_to_hbm [thread:$0]  (%p9088_p6), %s7740_s5, 32, %s10930_s29, [#allocation6]  }
0x1425   : > { %9358 = dma.done.wait (%p9088_p6), [#allocation6], 32  }
0x1426   : > { %9360 = vsyncadd (%p9088_p6), [#allocation6], 4294967264 }
0x1427 PF: > { %s10931_s27 = sld [smem:[#allocation18_spill]]  ;;  %s10932_s20 = sld [smem:[#allocation17_spill]] }
0x1428   : > { %s10933_s26 = sld [smem:[#allocation19_spill]]  ;;  %s10934_s2 = smov %s9367_s25 }
0x142d   : > { %p38_p5 = scmp.ge.s32.totalorder %s10931_s27, 4   ;;  %s10935_s25 = smov %s10932_s20 }
0x142f   :  { %40 = sbr.rel (!%p38_p5) target bundleno = 24 (0x18), region = 210 }
0x1436   :  { %7752 = vsyncpa [#allocation5], 1 }
0x1437   :  { %7754 = vsyncpa [#allocation5 + $0x1], 1 }
0x1438   :  { %7755 = vsyncpa [#allocation8], 1 }
0x1439   :  { %7757 = vsyncpa [#allocation8 + $0x1], 1 }
0x143a   :  { %7758 = vsyncpa [#allocation11], 1 }
0x143b   :  { %7760 = vsyncpa [#allocation11 + $0x1], 1 }
0x143c   :  { %7761 = vsyncpa [#allocation6], 1 }
0x143d   :  { %7763 = vsyncpa [#allocation6 + $0x1], 1 }

</bundles_post_ra>
